<compile_context>
chip_gen: v7x
topology: tpu7x:2x2x1
jax: 0.10.0
libtpu: 0.0.40
codegen_flags: <defaults>
</compile_context>

<pallas_src>
import functools
import math

import jax
import jax.numpy as jnp
from jax.experimental import pallas as pl
from jax.experimental.pallas import tpu as pltpu


# ------------------------------ tiling helper -------------------------------

def _row_tile(M, cap=512):
    """Row tile (multiple of 8) dividing M; prefers >= 2 grid steps (v7x dual TC)."""
    limit = min(cap, M)
    if M % 2 == 0 and (M // 2) % 8 == 0:
        limit = min(limit, M // 2)
    for t in (512, 256, 128, 64, 32, 16, 8):
        if t <= limit and M % t == 0:
            return t
    return M  # TODO(synk): pad M + masked remainder for awkward B*S at prod shapes


# ----------------------------- Pallas kernels ------------------------------

def _linear_kernel(x_ref, w_ref, b_ref, o_ref):
    y = jnp.dot(x_ref[...], w_ref[...], preferred_element_type=jnp.float32)
    o_ref[...] = (y + b_ref[...]).astype(o_ref.dtype)


def linear_pallas(x, w, b):
    """x[M,K](bf16) @ w[K,N](bf16) + b(1,N f32) -> bf16.  f32 MXU accumulation."""
    M, K = x.shape
    N = w.shape[1]
    tm = _row_tile(M)
    return pl.pallas_call(
        _linear_kernel,
        out_shape=jax.ShapeDtypeStruct((M, N), jnp.bfloat16),
        grid=(M // tm,),
        in_specs=[
            pl.BlockSpec((tm, K), lambda i: (i, 0)),
            pl.BlockSpec((K, N), lambda i: (0, 0)),
            pl.BlockSpec((1, N), lambda i: (0, 0)),
        ],
        out_specs=pl.BlockSpec((tm, N), lambda i: (i, 0)),
        compiler_params=pltpu.CompilerParams(dimension_semantics=("parallel",)),
    )(x, w, b)


def _emb_kernel(cols_ref, w_ref, pe_ref, o_ref):
    y = jnp.dot(cols_ref[0], w_ref[...], preferred_element_type=jnp.float32)
    o_ref[0] = (y + pe_ref[...]).astype(o_ref.dtype)   # fused PE add


def embedding_pallas(cols, w, pe):
    """Token-embedding matmul (im2col'd circular conv) + fused sinusoidal PE add."""
    B, S, C3 = cols.shape
    D = w.shape[1]
    ts = _row_tile(S)
    return pl.pallas_call(
        _emb_kernel,
        out_shape=jax.ShapeDtypeStruct((B, S, D), jnp.bfloat16),
        grid=(B, S // ts),
        in_specs=[
            pl.BlockSpec((1, ts, C3), lambda b, s: (b, s, 0)),
            pl.BlockSpec((C3, D), lambda b, s: (0, 0)),
            pl.BlockSpec((ts, D), lambda b, s: (s, 0)),
        ],
        out_specs=pl.BlockSpec((1, ts, D), lambda b, s: (b, s, 0)),
        compiler_params=pltpu.CompilerParams(
            dimension_semantics=("parallel", "parallel")),
    )(cols, w, pe)


def _ffn_ln_kernel(x_ref, w1_ref, b1_ref, w2_ref, b2_ref, g_ref, b_ref, o_ref, *, eps):
    x = x_ref[...]                                               # (tm, D) bf16
    h = jnp.dot(x, w1_ref[...], preferred_element_type=jnp.float32)
    h = jnp.maximum(h + b1_ref[...], 0.0).astype(w2_ref.dtype)   # bf16 hidden, stays VMEM
    y = jnp.dot(h, w2_ref[...], preferred_element_type=jnp.float32) + b2_ref[...]
    y = y + x.astype(jnp.float32)                                # fused residual
    mu = jnp.mean(y, axis=-1, keepdims=True)
    yc = y - mu
    var = jnp.mean(yc * yc, axis=-1, keepdims=True)              # biased, as torch LN
    o_ref[...] = (yc * jax.lax.rsqrt(var + eps) * g_ref[...] + b_ref[...]
                  ).astype(o_ref.dtype)


def ffn_ln_pallas(x, w1, b1, w2, b2, gamma, beta, eps=1e-5):
    """Fused lin1 + ReLU + lin2 + residual + LayerNorm.  x: [M, D] bf16 -> bf16."""
    # TODO(synk): for prod dff=2048 on v7x, chunk dff inside the kernel so the
    # tm x dff f32 hidden never materializes whole.
    M, D = x.shape
    F = w1.shape[1]
    tm = _row_tile(M)
    return pl.pallas_call(
        functools.partial(_ffn_ln_kernel, eps=eps),
        out_shape=jax.ShapeDtypeStruct((M, D), jnp.bfloat16),
        grid=(M // tm,),
        in_specs=[
            pl.BlockSpec((tm, D), lambda i: (i, 0)),
            pl.BlockSpec((D, F), lambda i: (0, 0)),
            pl.BlockSpec((1, F), lambda i: (0, 0)),
            pl.BlockSpec((F, D), lambda i: (0, 0)),
            pl.BlockSpec((1, D), lambda i: (0, 0)),
            pl.BlockSpec((1, D), lambda i: (0, 0)),
            pl.BlockSpec((1, D), lambda i: (0, 0)),
        ],
        out_specs=pl.BlockSpec((tm, D), lambda i: (i, 0)),
        compiler_params=pltpu.CompilerParams(
            dimension_semantics=("parallel",),
            vmem_limit_bytes=32 * 1024 * 1024),
    )(x, w1, b1, w2, b2, gamma, beta)


def _mha_heads(q, k, v, attn_scr, *, nhead, scale, causal):
    """q:(Sq,D) k/v:(Sk,D) bf16; per-head softmax(q k^T / sqrt(Dh)) v written into
    the lane slice of a VMEM scratch (no concatenate / relayout)."""
    Sq, D = q.shape
    Sk = k.shape[0]
    Dh = D // nhead
    if causal:
        row = jax.lax.broadcasted_iota(jnp.int32, (Sq, Sk), 0)
        col = jax.lax.broadcasted_iota(jnp.int32, (Sq, Sk), 1)
        future = col > row
    # TODO(synk): for long prod sequences, tile Sk flash-style with online-softmax
    # accumulators instead of a full Sq x Sk score matrix per head.
    for h in range(nhead):                                 # static unroll over heads
        qh = q[:, h * Dh:(h + 1) * Dh]
        kh = k[:, h * Dh:(h + 1) * Dh]
        vh = v[:, h * Dh:(h + 1) * Dh]
        s = jax.lax.dot_general(qh, kh, (((1,), (1,)), ((), ())),
                                preferred_element_type=jnp.float32) * scale
        if causal:
            s = jnp.where(future, jnp.float32(-1e30), s)
        s = s - jnp.max(s, axis=-1, keepdims=True)
        p = jnp.exp(s)
        p = p * pl.reciprocal(jnp.sum(p, axis=-1, keepdims=True), approx=True)
        attn_scr[:, h * Dh:(h + 1) * Dh] = jnp.dot(
            p.astype(vh.dtype), vh, preferred_element_type=jnp.float32)


def _proj_res_ln(attn_scr, res, wo_ref, bo_ref, g_ref, b_ref, eps):
    """Output projection + fused residual add + LayerNorm (all f32 math)."""
    o = attn_scr[...].astype(wo_ref.dtype)
    y = jnp.dot(o, wo_ref[...], preferred_element_type=jnp.float32) + bo_ref[...]
    y = y + res.astype(jnp.float32)
    mu = jnp.mean(y, axis=-1, keepdims=True)
    yc = y - mu
    var = jnp.mean(yc * yc, axis=-1, keepdims=True)
    return yc * jax.lax.rsqrt(var + eps) * g_ref[...] + b_ref[...]


def _self_attn_ln_kernel(qkv_ref, res_ref, wo_ref, bo_ref, g_ref, b_ref, o_ref,
                         attn_scr, *, nhead, scale, causal, eps):
    qkv = qkv_ref[0]                                      # (S, 3D) bf16
    D = qkv.shape[1] // 3
    q, k, v = qkv[:, :D], qkv[:, D:2 * D], qkv[:, 2 * D:]  # split inside the kernel
    _mha_heads(q, k, v, attn_scr, nhead=nhead, scale=scale, causal=causal)
    o_ref[0] = _proj_res_ln(attn_scr, res_ref[0], wo_ref, bo_ref,
                            g_ref, b_ref, eps).astype(o_ref.dtype)


def _cross_attn_ln_kernel(q_ref, kv_ref, res_ref, wo_ref, bo_ref, g_ref, b_ref,
                          o_ref, attn_scr, *, nhead, scale, eps):
    q = q_ref[0]                                          # (Sq, D) bf16
    kv = kv_ref[0]                                        # (Sk, 2D) bf16
    D = q.shape[1]
    k, v = kv[:, :D], kv[:, D:]                           # split inside the kernel
    _mha_heads(q, k, v, attn_scr, nhead=nhead, scale=scale, causal=False)
    o_ref[0] = _proj_res_ln(attn_scr, res_ref[0], wo_ref, bo_ref,
                            g_ref, b_ref, eps).astype(o_ref.dtype)


def self_attn_ln_pallas(qkv, res, wo, bo, gamma, beta, nhead, causal, eps=1e-5):
    """qkv [B,S,3D], res [B,S,D] bf16 -> LN(res + MHA(qkv) @ Wo + bo)  (bf16)."""
    B, S, D3 = qkv.shape
    D = D3 // 3
    scale = 1.0 / math.sqrt(D // nhead)
    return pl.pallas_call(
        functools.partial(_self_attn_ln_kernel, nhead=nhead, scale=scale,
                          causal=causal, eps=eps),
        out_shape=jax.ShapeDtypeStruct((B, S, D), jnp.bfloat16),
        grid=(B,),
        in_specs=[
            pl.BlockSpec((1, S, D3), lambda b: (b, 0, 0)),
            pl.BlockSpec((1, S, D), lambda b: (b, 0, 0)),
            pl.BlockSpec((D, D), lambda b: (0, 0)),
            pl.BlockSpec((1, D), lambda b: (0, 0)),
            pl.BlockSpec((1, D), lambda b: (0, 0)),
            pl.BlockSpec((1, D), lambda b: (0, 0)),
        ],
        out_specs=pl.BlockSpec((1, S, D), lambda b: (b, 0, 0)),
        scratch_shapes=[pltpu.VMEM((S, D), jnp.float32)],
        compiler_params=pltpu.CompilerParams(dimension_semantics=("parallel",)),
    )(qkv, res, wo, bo, gamma, beta)


def cross_attn_ln_pallas(q, kv, res, wo, bo, gamma, beta, nhead, eps=1e-5):
    """q [B,Sq,D], kv [B,Sk,2D], res [B,Sq,D] bf16 -> LN(res + MHA @ Wo + bo)."""
    B, Sq, D = q.shape
    Sk = kv.shape[1]
    scale = 1.0 / math.sqrt(D // nhead)
    return pl.pallas_call(
        functools.partial(_cross_attn_ln_kernel, nhead=nhead, scale=scale, eps=eps),
        out_shape=jax.ShapeDtypeStruct((B, Sq, D), jnp.bfloat16),
        grid=(B,),
        in_specs=[
            pl.BlockSpec((1, Sq, D), lambda b: (b, 0, 0)),
            pl.BlockSpec((1, Sk, 2 * D), lambda b: (b, 0, 0)),
            pl.BlockSpec((1, Sq, D), lambda b: (b, 0, 0)),
            pl.BlockSpec((D, D), lambda b: (0, 0)),
            pl.BlockSpec((1, D), lambda b: (0, 0)),
            pl.BlockSpec((1, D), lambda b: (0, 0)),
            pl.BlockSpec((1, D), lambda b: (0, 0)),
        ],
        out_specs=pl.BlockSpec((1, Sq, D), lambda b: (b, 0, 0)),
        scratch_shapes=[pltpu.VMEM((Sq, D), jnp.float32)],
        compiler_params=pltpu.CompilerParams(dimension_semantics=("parallel",)),
    )(q, kv, res, wo, bo, gamma, beta)


def _ln_kernel(x_ref, g_ref, b_ref, o_ref, *, eps):
    x = x_ref[...].astype(jnp.float32)
    mu = jnp.mean(x, axis=-1, keepdims=True)
    xc = x - mu
    var = jnp.mean(xc * xc, axis=-1, keepdims=True)
    o_ref[...] = (xc * jax.lax.rsqrt(var + eps) * g_ref[...] + b_ref[...]
                  ).astype(o_ref.dtype)


def layernorm_pallas(x, gamma, beta, eps=1e-5):
    """Standalone LayerNorm (encoder final norm), bf16 in / bf16 out, f32 math."""
    M, D = x.shape
    tm = _row_tile(M)
    return pl.pallas_call(
        functools.partial(_ln_kernel, eps=eps),
        out_shape=jax.ShapeDtypeStruct((M, D), jnp.bfloat16),
        grid=(M // tm,),
        in_specs=[
            pl.BlockSpec((tm, D), lambda i: (i, 0)),
            pl.BlockSpec((1, D), lambda i: (0, 0)),
            pl.BlockSpec((1, D), lambda i: (0, 0)),
        ],
        out_specs=pl.BlockSpec((tm, D), lambda i: (i, 0)),
        compiler_params=pltpu.CompilerParams(dimension_semantics=("parallel",)),
    )(x, gamma, beta)


def _ln_head_kernel(x_ref, g_ref, b_ref, wp_ref, bp_ref, o_ref, *, eps):
    x = x_ref[...].astype(jnp.float32)
    mu = jnp.mean(x, axis=-1, keepdims=True)
    xc = x - mu
    var = jnp.mean(xc * xc, axis=-1, keepdims=True)
    xn = (xc * jax.lax.rsqrt(var + eps) * g_ref[...] + b_ref[...]).astype(wp_ref.dtype)
    o_ref[...] = (jnp.dot(xn, wp_ref[...], preferred_element_type=jnp.float32)
                  + bp_ref[...])


def ln_head_pallas(x, gamma, beta, wp, bp, eps=1e-5):
    """Fused decoder final LayerNorm + prediction head.  x [M,D] bf16 -> f32 [M,O]."""
    M, D = x.shape
    O = wp.shape[1]
    tm = _row_tile(M)
    return pl.pallas_call(
        functools.partial(_ln_head_kernel, eps=eps),
        out_shape=jax.ShapeDtypeStruct((M, O), jnp.float32),
        grid=(M // tm,),
        in_specs=[
            pl.BlockSpec((tm, D), lambda i: (i, 0)),
            pl.BlockSpec((1, D), lambda i: (0, 0)),
            pl.BlockSpec((1, D), lambda i: (0, 0)),
            pl.BlockSpec((D, O), lambda i: (0, 0)),
            pl.BlockSpec((1, O), lambda i: (0, 0)),
        ],
        out_specs=pl.BlockSpec((tm, O), lambda i: (i, 0)),
        compiler_params=pltpu.CompilerParams(dimension_semantics=("parallel",)),
    )(x, gamma, beta, wp, bp)


# ------------------------------ model pieces -------------------------------

def sinusoid_pe(S, D):
    pos = jnp.arange(S, dtype=jnp.float32)[:, None]
    div = jnp.exp(jnp.arange(0, D, 2, dtype=jnp.float32) * -(math.log(10000.0) / D))
    pe = jnp.zeros((S, D), jnp.float32)
    pe = pe.at[:, 0::2].set(jnp.sin(pos * div))
    pe = pe.at[:, 1::2].set(jnp.cos(pos * div))
    return pe


def data_embedding(x, emb_w):
    """Informer DataEmbedding: circular Conv1d(c_in, d_model, k=3, no bias) token
    embedding + fixed sinusoidal PE (dropout identity in eval). im2col is done in
    JAX (C_in is tiny); matmul + PE add are fused in one Pallas kernel."""
    B, S, C = x.shape
    xb = x.astype(jnp.bfloat16)
    xp = jnp.concatenate([xb[:, -1:, :], xb, xb[:, :1, :]], axis=1)   # circular pad
    cols = jnp.concatenate([xp[:, 0:S, :], xp[:, 1:S + 1, :], xp[:, 2:S + 2, :]],
                           axis=-1)                                    # [B, S, 3C]
    pe = sinusoid_pe(S, emb_w.shape[1])                                # compile-time const
    return embedding_pallas(cols, emb_w, pe)


def series_decomp(x, kernel_size=31):
    """Autoformer series_decomp (moving average, edge-replicate). Its result is unused
    by the reference forward; under jit XLA dead-code-eliminates it."""
    pad = (kernel_size - 1) // 2
    front = jnp.repeat(x[:, :1, :], pad, axis=1)
    end = jnp.repeat(x[:, -1:, :], pad, axis=1)
    xp = jnp.concatenate([front, x, end], axis=1)
    cs = jnp.cumsum(xp, axis=1)
    cs = jnp.concatenate([jnp.zeros_like(cs[:, :1]), cs], axis=1)
    mean = (cs[:, kernel_size:, :] - cs[:, :-kernel_size, :]) / kernel_size
    return x - mean, mean


def encoder_layer(x, p, nhead):
    """Post-norm TransformerEncoderLayer (relu, dropout=0 in eval)."""
    B, S, D = x.shape
    qkv = linear_pallas(x.reshape(B * S, D), p["self_attn"]["w_qkv"],
                        p["self_attn"]["b_qkv"]).reshape(B, S, 3 * D)
    x1 = self_attn_ln_pallas(qkv, x, p["self_attn"]["wo"], p["self_attn"]["bo"],
                             p["norm1"]["g"], p["norm1"]["b"], nhead, causal=False)
    x2 = ffn_ln_pallas(x1.reshape(B * S, D), p["lin1"]["w"], p["lin1"]["b"],
                       p["lin2"]["w"], p["lin2"]["b"],
                       p["norm2"]["g"], p["norm2"]["b"])
    return x2.reshape(B, S, D)


def decoder_layer(x, mem, p, nhead):
    """Post-norm TransformerDecoderLayer (causal self-attn + cross-attn + FFN)."""
    B, St, D = x.shape
    Sk = mem.shape[1]
    qkv = linear_pallas(x.reshape(B * St, D), p["self_attn"]["w_qkv"],
                        p["self_attn"]["b_qkv"]).reshape(B, St, 3 * D)
    x1 = self_attn_ln_pallas(qkv, x, p["self_attn"]["wo"], p["self_attn"]["bo"],
                             p["norm1"]["g"], p["norm1"]["b"], nhead, causal=True)
    q = linear_pallas(x1.reshape(B * St, D), p["cross_attn"]["wq"],
                      p["cross_attn"]["bq"]).reshape(B, St, D)
    kv = linear_pallas(mem.reshape(B * Sk, D), p["cross_attn"]["w_kv"],
                       p["cross_attn"]["b_kv"]).reshape(B, Sk, 2 * D)
    x2 = cross_attn_ln_pallas(q, kv, x1, p["cross_attn"]["wo"], p["cross_attn"]["bo"],
                              p["norm2"]["g"], p["norm2"]["b"], nhead)
    x3 = ffn_ln_pallas(x2.reshape(B * St, D), p["lin1"]["w"], p["lin1"]["b"],
                       p["lin2"]["w"], p["lin2"]["b"],
                       p["norm3"]["g"], p["norm3"]["b"])
    return x3.reshape(B, St, D)


@functools.partial(jax.jit, static_argnames=("nhead", "label_len", "pred_len"))
def seq2seq_transformer_forward(params, src, tgt, *, nhead, label_len=0, pred_len=0):
    """Matches Seq2Seq_Transfomer.forward (label_len / pred_len are unused there)."""
    del label_len, pred_len
    B, Ss, _ = src.shape
    St = tgt.shape[1]
    D = params["emb_w"].shape[1]

    src_e = data_embedding(src, params["emb_w"])   # self.embedding(src)  [B,Ss,D] bf16
    tgt_e = data_embedding(tgt, params["emb_w"])   # self.embedding(tgt)  [B,St,D] bf16

    # computed in the reference forward but never used; XLA DCE's it under jit
    _ = series_decomp(src_e.astype(jnp.float32), 31)

    # encoder stack + final encoder norm
    mem = src_e
    for lp in params["enc_layers"]:
        mem = encoder_layer(mem, lp, nhead)
    mem = layernorm_pallas(mem.reshape(B * Ss, D), params["enc_norm"]["g"],
                           params["enc_norm"]["b"]).reshape(B, Ss, D)

    # decoder stack; final decoder norm is fused with the prediction head
    x = tgt_e
    for lp in params["dec_layers"]:
        x = decoder_layer(x, mem, lp, nhead)

    out = ln_head_pallas(x.reshape(B * St, D), params["dec_norm"]["g"],
                         params["dec_norm"]["b"], params["pred"]["w"],
                         params["pred"]["b"])
    return out.reshape(B, St, -1)


# ------------------------------ parameter init ------------------------------

def init_params(key, input_dim, output_dim, d_model, n_enc, n_dec, dff):
    keys = iter(jax.random.split(key, 512))

    def w(i, o):
        return jax.random.normal(next(keys), (i, o), jnp.float32) / math.sqrt(i)

    def ln():
        return {"g": jnp.ones((d_model,), jnp.float32),
                "b": jnp.zeros((d_model,), jnp.float32)}

    def self_attn():
        return {"w_qkv": w(d_model, 3 * d_model),
                "b_qkv": jnp.zeros((3 * d_model,), jnp.float32),
                "wo": w(d_model, d_model), "bo": jnp.zeros((d_model,), jnp.float32)}

    def cross_attn():
        return {"wq": w(d_model, d_model), "bq": jnp.zeros((d_model,), jnp.float32),
                "w_kv": w(d_model, 2 * d_model),
                "b_kv": jnp.zeros((2 * d_model,), jnp.float32),
                "wo": w(d_model, d_model), "bo": jnp.zeros((d_model,), jnp.float32)}

    def ffn():
        return {"lin1": {"w": w(d_model, dff), "b": jnp.zeros((dff,), jnp.float32)},
                "lin2": {"w": w(dff, d_model), "b": jnp.zeros((d_model,), jnp.float32)}}

    def enc_layer():
        return {"self_attn": self_attn(), **ffn(), "norm1": ln(), "norm2": ln()}

    def dec_layer():
        return {"self_attn": self_attn(), "cross_attn": cross_attn(), **ffn(),
                "norm1": ln(), "norm2": ln(), "norm3": ln()}

    return {
        "emb_conv": jax.random.normal(next(keys), (3, input_dim, d_model), jnp.float32)
                    / math.sqrt(3 * input_dim),
        "enc_layers": [enc_layer() for _ in range(n_enc)],
        "dec_layers": [dec_layer() for _ in range(n_dec)],
        "enc_norm": ln(), "dec_norm": ln(),
        "pred": {"w": w(d_model, output_dim),
                 "b": jnp.zeros((output_dim,), jnp.float32)},
    }


def prepare_params(p):
    """One-time (outside jit) cast: matmul weights -> bf16, biases/LN params -> (1,N)
    f32.  No per-forward weight-cast HBM traffic remains inside the jitted graph."""
    bf = lambda a: a.astype(jnp.bfloat16)
    row = lambda a: a.reshape(1, -1).astype(jnp.float32)

    def lin(d): return {"w": bf(d["w"]), "b": row(d["b"])}
    def ln(d): return {"g": row(d["g"]), "b": row(d["b"])}

    def sa(d):
        return {"w_qkv": bf(d["w_qkv"]), "b_qkv": row(d["b_qkv"]),
                "wo": bf(d["wo"]), "bo": row(d["bo"])}

    def ca(d):
        return {"wq": bf(d["wq"]), "bq": row(d["bq"]),
                "w_kv": bf(d["w_kv"]), "b_kv": row(d["b_kv"]),
                "wo": bf(d["wo"]), "bo": row(d["bo"])}

    def enc(l):
        return {"self_attn": sa(l["self_attn"]), "lin1": lin(l["lin1"]),
                "lin2": lin(l["lin2"]), "norm1": ln(l["norm1"]),
                "norm2": ln(l["norm2"])}

    def dec(l):
        return {"self_attn": sa(l["self_attn"]), "cross_attn": ca(l["cross_attn"]),
                "lin1": lin(l["lin1"]), "lin2": lin(l["lin2"]),
                "norm1": ln(l["norm1"]), "norm2": ln(l["norm2"]),
                "norm3": ln(l["norm3"])}

    return {
        "emb_w": bf(p["emb_conv"].reshape(-1, p["emb_conv"].shape[-1])),
        "enc_layers": [enc(l) for l in p["enc_layers"]],
        "dec_layers": [dec(l) for l in p["dec_layers"]],
        "enc_norm": ln(p["enc_norm"]), "dec_norm": ln(p["dec_norm"]),
        "pred": lin(p["pred"]),
    }


# ----------------------------------- main -----------------------------------

if __name__ == "__main__":
    key = jax.random.PRNGKey(0)
    B, S_src, S_tgt = 2, 8, 8
    input_dim, output_dim = 4, 4
    # small but structurally-faithful hyperparameters (module defaults 512/4/4/2048);
    # d_model=128 keeps every activation block lane-dense (128-lane multiple).
    d_model, nhead, n_enc, n_dec, dff = 128, 4, 2, 2, 256

    k_param, k_src, k_tgt = jax.random.split(key, 3)
    params = prepare_params(init_params(k_param, input_dim, output_dim,
                                        d_model, n_enc, n_dec, dff))
    src = jax.random.normal(k_src, (B, S_src, input_dim), jnp.float32)
    tgt = jax.random.normal(k_tgt, (B, S_tgt, input_dim), jnp.float32)

    out = seq2seq_transformer_forward(params, src, tgt, nhead=nhead,
                                      label_len=4, pred_len=4)
    out = jax.block_until_ready(out)

    assert out.shape == (B, S_tgt, output_dim), out.shape
    assert bool(jnp.all(jnp.isfinite(out)))
    print("KERNEL_OK")
</pallas_src>

<mosaic_0001>
module attributes {stable_mosaic.version = 11 : i64} {
  func.func @_linear_kernel(%arg0: i32, %arg1: memref<8x128xbf16, #tpu.memory_space<vmem>>, %arg2: memref<128x384xbf16, #tpu.memory_space<vmem>>, %arg3: memref<1x384xf32, #tpu.memory_space<vmem>>, %arg4: memref<8x384xbf16, #tpu.memory_space<vmem>>) attributes {dimension_semantics = [#tpu.dimension_semantics<parallel>], iteration_bounds = array<i64: 2>, scalar_prefetch = 0 : i64, scratch_operands = 0 : i64, tpu.core_type = #tpu.core_type<tc>, window_params = [{transform_indices = @transform_0, window_bounds = array<i64: 8, 128>}, {pipeline_mode = #tpu.pipeline_mode<synchronous>, transform_indices = @transform_1, window_bounds = array<i64: 128, 384>}, {pipeline_mode = #tpu.pipeline_mode<synchronous>, transform_indices = @transform_2, window_bounds = array<i64: 1, 384>}, {transform_indices = @transform_3, window_bounds = array<i64: 8, 384>}]} {
    %c0 = arith.constant 0 : index
    %c0_0 = arith.constant 0 : index
    %0 = vector.load %arg1[%c0, %c0_0] : memref<8x128xbf16, #tpu.memory_space<vmem>>, vector<8x128xbf16>
    %c0_1 = arith.constant 0 : index
    %c0_2 = arith.constant 0 : index
    %1 = vector.load %arg2[%c0_1, %c0_2] : memref<128x384xbf16, #tpu.memory_space<vmem>>, vector<128x384xbf16>
    %cst = arith.constant dense<0.000000e+00> : vector<8x384xf32>
    %2 = tpu.matmul %0, %1, %cst {dimension_numbers = #tpu.dot_dimension_numbers<[1], [0], [0], [1], [0, 0, 1, 1], [], []>} : vector<8x128xbf16>, vector<128x384xbf16>, vector<8x384xf32> -> vector<8x384xf32>
    %c0_3 = arith.constant 0 : index
    %c0_4 = arith.constant 0 : index
    %3 = vector.load %arg3[%c0_3, %c0_4] : memref<1x384xf32, #tpu.memory_space<vmem>>, vector<1x384xf32>
    %4 = vector.broadcast %3 : vector<1x384xf32> to vector<8x384xf32>
    %5 = arith.addf %2, %4 : vector<8x384xf32>
    %6 = arith.truncf %5 : vector<8x384xf32> to vector<8x384xbf16>
    %c0_5 = arith.constant 0 : index
    %c0_6 = arith.constant 0 : index
    %7 = vector.load %arg4[%c0_5, %c0_6] : memref<8x384xbf16, #tpu.memory_space<vmem>>, vector<8x384xbf16>
    tpu.vector_store %arg4[%c0_5, %c0_6], %6 {strides = array<i32>} : memref<8x384xbf16, #tpu.memory_space<vmem>>, vector<8x384xbf16>,
    return
  }
  func.func @transform_0(%arg0: i32) -> (i32, i32) {
    %c0_i32 = arith.constant 0 : i32
    %c0_i32_0 = arith.constant 0 : i32
    return %arg0, %c0_i32 : i32, i32
  }
  func.func @transform_1(%arg0: i32) -> (i32, i32) {
    %c0_i32 = arith.constant 0 : i32
    %c0_i32_0 = arith.constant 0 : i32
    %c0_i32_1 = arith.constant 0 : i32
    return %c0_i32, %c0_i32_0 : i32, i32
  }
  func.func @transform_2(%arg0: i32) -> (i32, i32) {
    %c0_i32 = arith.constant 0 : i32
    %c0_i32_0 = arith.constant 0 : i32
    %c0_i32_1 = arith.constant 0 : i32
    return %c0_i32, %c0_i32_0 : i32, i32
  }
  func.func @transform_3(%arg0: i32) -> (i32, i32) {
    %c0_i32 = arith.constant 0 : i32
    %c0_i32_0 = arith.constant 0 : i32
    return %arg0, %c0_i32 : i32, i32
  }
}

module attributes {stable_mosaic.version = 11 : i64} {
  func.func @_emb_kernel(%arg0: i32, %arg1: i32, %arg2: memref<1x8x12xbf16, #tpu.memory_space<vmem>>, %arg3: memref<12x128xbf16, #tpu.memory_space<vmem>>, %arg4: memref<8x128xf32, #tpu.memory_space<vmem>>, %arg5: memref<1x8x128xbf16, #tpu.memory_space<vmem>>) attributes {dimension_semantics = [#tpu.dimension_semantics<parallel>, #tpu.dimension_semantics<parallel>], iteration_bounds = array<i64: 2, 1>, scalar_prefetch = 0 : i64, scratch_operands = 0 : i64, tpu.core_type = #tpu.core_type<tc>, window_params = [{transform_indices = @transform_0, window_bounds = array<i64: 1, 8, 12>}, {pipeline_mode = #tpu.pipeline_mode<synchronous>, transform_indices = @transform_1, window_bounds = array<i64: 12, 128>}, {transform_indices = @transform_2, window_bounds = array<i64: 8, 128>}, {transform_indices = @transform_3, window_bounds = array<i64: 1, 8, 128>}]} {
    %c0 = arith.constant 0 : index
    %c0_0 = arith.constant 0 : index
    %c0_1 = arith.constant 0 : index
    %0 = vector.load %arg2[%c0, %c0_0, %c0_1] : memref<1x8x12xbf16, #tpu.memory_space<vmem>>, vector<1x8x12xbf16>
    %1 = vector.shape_cast %0 : vector<1x8x12xbf16> to vector<8x12xbf16>
    %c0_2 = arith.constant 0 : index
    %c0_3 = arith.constant 0 : index
    %2 = vector.load %arg3[%c0_2, %c0_3] : memref<12x128xbf16, #tpu.memory_space<vmem>>, vector<12x128xbf16>
    %cst = arith.constant dense<0.000000e+00> : vector<8x128xf32>
    %3 = tpu.matmul %1, %2, %cst {dimension_numbers = #tpu.dot_dimension_numbers<[1], [0], [0], [1], [0, 0, 1, 1], [], []>} : vector<8x12xbf16>, vector<12x128xbf16>, vector<8x128xf32> -> vector<8x128xf32>
    %c0_4 = arith.constant 0 : index
    %c0_5 = arith.constant 0 : index
    %4 = vector.load %arg4[%c0_4, %c0_5] : memref<8x128xf32, #tpu.memory_space<vmem>>, vector<8x128xf32>
    %5 = arith.addf %3, %4 : vector<8x128xf32>
    %6 = arith.truncf %5 : vector<8x128xf32> to vector<8x128xbf16>
    %c0_6 = arith.constant 0 : index
    %c0_7 = arith.constant 0 : index
    %c0_8 = arith.constant 0 : index
    %7 = vector.load %arg5[%c0_6, %c0_7, %c0_8] : memref<1x8x128xbf16, #tpu.memory_space<vmem>>, vector<1x8x128xbf16>
    %8 = vector.shape_cast %7 : vector<1x8x128xbf16> to vector<8x128xbf16>
    %9 = vector.shape_cast %6 : vector<8x128xbf16> to vector<1x8x128xbf16>
    tpu.vector_store %arg5[%c0_6, %c0_7, %c0_8], %9 {strides = array<i32>} : memref<1x8x128xbf16, #tpu.memory_space<vmem>>, vector<1x8x128xbf16>,
    return
  }
  func.func @transform_0(%arg0: i32, %arg1: i32) -> (i32, i32, i32) {
    %c0_i32 = arith.constant 0 : i32
    %c0_i32_0 = arith.constant 0 : i32
    return %arg0, %arg1, %c0_i32 : i32, i32, i32
  }
  func.func @transform_1(%arg0: i32, %arg1: i32) -> (i32, i32) {
    %c0_i32 = arith.constant 0 : i32
    %c0_i32_0 = arith.constant 0 : i32
    %c0_i32_1 = arith.constant 0 : i32
    return %c0_i32, %c0_i32_0 : i32, i32
  }
  func.func @transform_2(%arg0: i32, %arg1: i32) -> (i32, i32) {
    %c0_i32 = arith.constant 0 : i32
    %c0_i32_0 = arith.constant 0 : i32
    return %arg1, %c0_i32 : i32, i32
  }
  func.func @transform_3(%arg0: i32, %arg1: i32) -> (i32, i32, i32) {
    %c0_i32 = arith.constant 0 : i32
    %c0_i32_0 = arith.constant 0 : i32
    return %arg0, %arg1, %c0_i32 : i32, i32, i32
  }
}

module attributes {stable_mosaic.version = 11 : i64} {
  func.func @_ffn_ln_kernel(%arg0: i32, %arg1: memref<8x128xbf16, #tpu.memory_space<vmem>>, %arg2: memref<128x256xbf16, #tpu.memory_space<vmem>>, %arg3: memref<1x256xf32, #tpu.memory_space<vmem>>, %arg4: memref<256x128xbf16, #tpu.memory_space<vmem>>, %arg5: memref<1x128xf32, #tpu.memory_space<vmem>>, %arg6: memref<1x128xf32, #tpu.memory_space<vmem>>, %arg7: memref<1x128xf32, #tpu.memory_space<vmem>>, %arg8: memref<8x128xbf16, #tpu.memory_space<vmem>>) attributes {dimension_semantics = [#tpu.dimension_semantics<parallel>], iteration_bounds = array<i64: 2>, scalar_prefetch = 0 : i64, scratch_operands = 0 : i64, tpu.core_type = #tpu.core_type<tc>, window_params = [{transform_indices = @transform_0, window_bounds = array<i64: 8, 128>}, {pipeline_mode = #tpu.pipeline_mode<synchronous>, transform_indices = @transform_1, window_bounds = array<i64: 128, 256>}, {pipeline_mode = #tpu.pipeline_mode<synchronous>, transform_indices = @transform_2, window_bounds = array<i64: 1, 256>}, {pipeline_mode = #tpu.pipeline_mode<synchronous>, transform_indices = @transform_3, window_bounds = array<i64: 256, 128>}, {pipeline_mode = #tpu.pipeline_mode<synchronous>, transform_indices = @transform_4, window_bounds = array<i64: 1, 128>}, {pipeline_mode = #tpu.pipeline_mode<synchronous>, transform_indices = @transform_5, window_bounds = array<i64: 1, 128>}, {pipeline_mode = #tpu.pipeline_mode<synchronous>, transform_indices = @transform_6, window_bounds = array<i64: 1, 128>}, {transform_indices = @transform_7, window_bounds = array<i64: 8, 128>}]} {
    %c0 = arith.constant 0 : index
    %c0_0 = arith.constant 0 : index
    %0 = vector.load %arg1[%c0, %c0_0] : memref<8x128xbf16, #tpu.memory_space<vmem>>, vector<8x128xbf16>
    %c0_1 = arith.constant 0 : index
    %c0_2 = arith.constant 0 : index
    %1 = vector.load %arg2[%c0_1, %c0_2] : memref<128x256xbf16, #tpu.memory_space<vmem>>, vector<128x256xbf16>
    %cst = arith.constant dense<0.000000e+00> : vector<8x256xf32>
    %2 = tpu.matmul %0, %1, %cst {dimension_numbers = #tpu.dot_dimension_numbers<[1], [0], [0], [1], [0, 0, 1, 1], [], []>} : vector<8x128xbf16>, vector<128x256xbf16>, vector<8x256xf32> -> vector<8x256xf32>
    %c0_3 = arith.constant 0 : index
    %c0_4 = arith.constant 0 : index
    %3 = vector.load %arg3[%c0_3, %c0_4] : memref<1x256xf32, #tpu.memory_space<vmem>>, vector<1x256xf32>
    %4 = vector.broadcast %3 : vector<1x256xf32> to vector<8x256xf32>
    %5 = arith.addf %2, %4 : vector<8x256xf32>
    %cst_5 = arith.constant 0.000000e+00 : f32
    %6 = vector.broadcast %cst_5 : f32 to vector<8x256xf32>
    %7 = arith.maximumf %5, %6 : vector<8x256xf32>
    %8 = arith.truncf %7 : vector<8x256xf32> to vector<8x256xbf16>
    %c0_6 = arith.constant 0 : index
    %c0_7 = arith.constant 0 : index
    %9 = vector.load %arg4[%c0_6, %c0_7] : memref<256x128xbf16, #tpu.memory_space<vmem>>, vector<256x128xbf16>
    %cst_8 = arith.constant dense<0.000000e+00> : vector<8x128xf32>
    %10 = tpu.matmul %8, %9, %cst_8 {dimension_numbers = #tpu.dot_dimension_numbers<[1], [0], [0], [1], [0, 0, 1, 1], [], []>} : vector<8x256xbf16>, vector<256x128xbf16>, vector<8x128xf32> -> vector<8x128xf32>
    %c0_9 = arith.constant 0 : index
    %c0_10 = arith.constant 0 : index
    %11 = vector.load %arg5[%c0_9, %c0_10] : memref<1x128xf32, #tpu.memory_space<vmem>>, vector<1x128xf32>
    %12 = vector.broadcast %11 : vector<1x128xf32> to vector<8x128xf32>
    %13 = arith.addf %10, %12 : vector<8x128xf32>
    %14 = arith.extf %0 : vector<8x128xbf16> to vector<8x128xf32>
    %15 = arith.addf %13, %14 : vector<8x128xf32>
    %cst_11 = arith.constant dense<0.000000e+00> : vector<8xf32>
    %16 = vector.multi_reduction <add>, %15, %cst_11 [1] : vector<8x128xf32> to vector<8xf32>
    %17 = vector.shape_cast %16 : vector<8xf32> to vector<8x1xf32>
    %cst_12 = arith.constant 1.280000e+02 : f32
    %18 = vector.broadcast %cst_12 : f32 to vector<8x1xf32>
    %19 = arith.divf %17, %18 : vector<8x1xf32>
    %20 = vector.broadcast %19 : vector<8x1xf32> to vector<8x128xf32>
    %21 = arith.subf %15, %20 : vector<8x128xf32>
    %22 = arith.mulf %21, %21 : vector<8x128xf32>
    %cst_13 = arith.constant dense<0.000000e+00> : vector<8xf32>
    %23 = vector.multi_reduction <add>, %22, %cst_13 [1] : vector<8x128xf32> to vector<8xf32>
    %24 = vector.shape_cast %23 : vector<8xf32> to vector<8x1xf32>
    %cst_14 = arith.constant 1.280000e+02 : f32
    %25 = vector.broadcast %cst_14 : f32 to vector<8x1xf32>
    %26 = arith.divf %24, %25 : vector<8x1xf32>
    %cst_15 = arith.constant 9.99999974E-6 : f32
    %27 = vector.broadcast %cst_15 : f32 to vector<8x1xf32>
    %28 = arith.addf %26, %27 : vector<8x1xf32>
    %29 = math.rsqrt %28 : vector<8x1xf32>
    %30 = vector.broadcast %29 : vector<8x1xf32> to vector<8x128xf32>
    %31 = arith.mulf %21, %30 : vector<8x128xf32>
    %c0_16 = arith.constant 0 : index
    %c0_17 = arith.constant 0 : index
    %32 = vector.load %arg6[%c0_16, %c0_17] : memref<1x128xf32, #tpu.memory_space<vmem>>, vector<1x128xf32>
    %33 = vector.broadcast %32 : vector<1x128xf32> to vector<8x128xf32>
    %34 = arith.mulf %31, %33 : vector<8x128xf32>
    %c0_18 = arith.constant 0 : index
    %c0_19 = arith.constant 0 : index
    %35 = vector.load %arg7[%c0_18, %c0_19] : memref<1x128xf32, #tpu.memory_space<vmem>>, vector<1x128xf32>
    %36 = vector.broadcast %35 : vector<1x128xf32> to vector<8x128xf32>
    %37 = arith.addf %34, %36 : vector<8x128xf32>
    %38 = arith.truncf %37 : vector<8x128xf32> to vector<8x128xbf16>
    %c0_20 = arith.constant 0 : index
    %c0_21 = arith.constant 0 : index
    %39 = vector.load %arg8[%c0_20, %c0_21] : memref<8x128xbf16, #tpu.memory_space<vmem>>, vector<8x128xbf16>
    tpu.vector_store %arg8[%c0_20, %c0_21], %38 {strides = array<i32>} : memref<8x128xbf16, #tpu.memory_space<vmem>>, vector<8x128xbf16>,
    return
  }
  func.func @transform_0(%arg0: i32) -> (i32, i32) {
    %c0_i32 = arith.constant 0 : i32
    %c0_i32_0 = arith.constant 0 : i32
    return %arg0, %c0_i32 : i32, i32
  }
  func.func @transform_1(%arg0: i32) -> (i32, i32) {
    %c0_i32 = arith.constant 0 : i32
    %c0_i32_0 = arith.constant 0 : i32
    %c0_i32_1 = arith.constant 0 : i32
    return %c0_i32, %c0_i32_0 : i32, i32
  }
  func.func @transform_2(%arg0: i32) -> (i32, i32) {
    %c0_i32 = arith.constant 0 : i32
    %c0_i32_0 = arith.constant 0 : i32
    %c0_i32_1 = arith.constant 0 : i32
    return %c0_i32, %c0_i32_0 : i32, i32
  }
  func.func @transform_3(%arg0: i32) -> (i32, i32) {
    %c0_i32 = arith.constant 0 : i32
    %c0_i32_0 = arith.constant 0 : i32
    %c0_i32_1 = arith.constant 0 : i32
    return %c0_i32, %c0_i32_0 : i32, i32
  }
  func.func @transform_4(%arg0: i32) -> (i32, i32) {
    %c0_i32 = arith.constant 0 : i32
    %c0_i32_0 = arith.constant 0 : i32
    %c0_i32_1 = arith.constant 0 : i32
    return %c0_i32, %c0_i32_0 : i32, i32
  }
  func.func @transform_5(%arg0: i32) -> (i32, i32) {
    %c0_i32 = arith.constant 0 : i32
    %c0_i32_0 = arith.constant 0 : i32
    %c0_i32_1 = arith.constant 0 : i32
    return %c0_i32, %c0_i32_0 : i32, i32
  }
  func.func @transform_6(%arg0: i32) -> (i32, i32) {
    %c0_i32 = arith.constant 0 : i32
    %c0_i32_0 = arith.constant 0 : i32
    %c0_i32_1 = arith.constant 0 : i32
    return %c0_i32, %c0_i32_0 : i32, i32
  }
  func.func @transform_7(%arg0: i32) -> (i32, i32) {
    %c0_i32 = arith.constant 0 : i32
    %c0_i32_0 = arith.constant 0 : i32
    return %arg0, %c0_i32 : i32, i32
  }
}

module attributes {stable_mosaic.version = 11 : i64} {
  func.func @_self_attn_ln_kernel(%arg0: i32, %arg1: memref<1x8x384xbf16, #tpu.memory_space<vmem>>, %arg2: memref<1x8x128xbf16, #tpu.memory_space<vmem>>, %arg3: memref<128x128xbf16, #tpu.memory_space<vmem>>, %arg4: memref<1x128xf32, #tpu.memory_space<vmem>>, %arg5: memref<1x128xf32, #tpu.memory_space<vmem>>, %arg6: memref<1x128xf32, #tpu.memory_space<vmem>>, %arg7: memref<1x8x128xbf16, #tpu.memory_space<vmem>>, %arg8: memref<8x128xf32, #tpu.memory_space<vmem>>) attributes {dimension_semantics = [#tpu.dimension_semantics<parallel>], iteration_bounds = array<i64: 2>, scalar_prefetch = 0 : i64, scratch_operands = 1 : i64, tpu.core_type = #tpu.core_type<tc>, window_params = [{transform_indices = @transform_0, window_bounds = array<i64: 1, 8, 384>}, {transform_indices = @transform_1, window_bounds = array<i64: 1, 8, 128>}, {pipeline_mode = #tpu.pipeline_mode<synchronous>, transform_indices = @transform_2, window_bounds = array<i64: 128, 128>}, {pipeline_mode = #tpu.pipeline_mode<synchronous>, transform_indices = @transform_3, window_bounds = array<i64: 1, 128>}, {pipeline_mode = #tpu.pipeline_mode<synchronous>, transform_indices = @transform_4, window_bounds = array<i64: 1, 128>}, {pipeline_mode = #tpu.pipeline_mode<synchronous>, transform_indices = @transform_5, window_bounds = array<i64: 1, 128>}, {transform_indices = @transform_6, window_bounds = array<i64: 1, 8, 128>}]} {
    %c0 = arith.constant 0 : index
    %c0_0 = arith.constant 0 : index
    %c0_1 = arith.constant 0 : index
    %0 = vector.load %arg1[%c0, %c0_0, %c0_1] : memref<1x8x384xbf16, #tpu.memory_space<vmem>>, vector<1x8x384xbf16>
    %1 = vector.shape_cast %0 : vector<1x8x384xbf16> to vector<8x384xbf16>
    %2 = vector.extract_strided_slice %1 {offsets = [0, 0], sizes = [8, 128], strides = [1, 1]} : vector<8x384xbf16> to vector<8x128xbf16>
    %3 = vector.extract_strided_slice %1 {offsets = [0, 128], sizes = [8, 128], strides = [1, 1]} : vector<8x384xbf16> to vector<8x128xbf16>
    %4 = vector.extract_strided_slice %1 {offsets = [0, 256], sizes = [8, 128], strides = [1, 1]} : vector<8x384xbf16> to vector<8x128xbf16>
    %5 = vector.extract_strided_slice %2 {offsets = [0, 0], sizes = [8, 32], strides = [1, 1]} : vector<8x128xbf16> to vector<8x32xbf16>
    %6 = vector.extract_strided_slice %3 {offsets = [0, 0], sizes = [8, 32], strides = [1, 1]} : vector<8x128xbf16> to vector<8x32xbf16>
    %7 = vector.extract_strided_slice %4 {offsets = [0, 0], sizes = [8, 32], strides = [1, 1]} : vector<8x128xbf16> to vector<8x32xbf16>
    %cst = arith.constant dense<0.000000e+00> : vector<8x8xf32>
    %8 = tpu.matmul %5, %6, %cst {dimension_numbers = #tpu.dot_dimension_numbers<[1], [1], [0], [0], [0, 0, 1, 0], [], []>} : vector<8x32xbf16>, vector<8x32xbf16>, vector<8x8xf32> -> vector<8x8xf32>
    %cst_2 = arith.constant 0.176776692 : f32
    %9 = vector.broadcast %cst_2 : f32 to vector<8x8xf32>
    %10 = arith.mulf %8, %9 : vector<8x8xf32>
    %cst_3 = arith.constant dense<0xFF800000> : vector<8xf32>
    %11 = vector.multi_reduction <maximumf>, %10, %cst_3 [1] : vector<8x8xf32> to vector<8xf32>
    %12 = vector.shape_cast %11 : vector<8xf32> to vector<8x1xf32>
    %13 = vector.broadcast %12 : vector<8x1xf32> to vector<8x8xf32>
    %14 = arith.subf %10, %13 : vector<8x8xf32>
    %15 = math.exp %14 : vector<8x8xf32>
    %cst_4 = arith.constant dense<0.000000e+00> : vector<8xf32>
    %16 = vector.multi_reduction <add>, %15, %cst_4 [1] : vector<8x8xf32> to vector<8xf32>
    %17 = vector.shape_cast %16 : vector<8xf32> to vector<8x1xf32>
    %18 = tpu.reciprocal %17 {approx = true} : vector<8x1xf32> -> vector<8x1xf32>
    %19 = vector.broadcast %18 : vector<8x1xf32> to vector<8x8xf32>
    %20 = arith.mulf %15, %19 : vector<8x8xf32>
    %21 = arith.truncf %20 : vector<8x8xf32> to vector<8x8xbf16>
    %cst_5 = arith.constant dense<0.000000e+00> : vector<8x32xf32>
    %22 = tpu.matmul %21, %7, %cst_5 {dimension_numbers = #tpu.dot_dimension_numbers<[1], [0], [0], [1], [0, 0, 1, 1], [], []>} : vector<8x8xbf16>, vector<8x32xbf16>, vector<8x32xf32> -> vector<8x32xf32>
    %c0_6 = arith.constant 0 : index
    %c0_7 = arith.constant 0 : index
    %23 = vector.load %arg8[%c0_6, %c0_7] : memref<8x128xf32, #tpu.memory_space<vmem>>, vector<8x32xf32>
    tpu.vector_store %arg8[%c0_6, %c0_7], %22 {strides = array<i32>} : memref<8x128xf32, #tpu.memory_space<vmem>>, vector<8x32xf32>,
    %24 = vector.extract_strided_slice %2 {offsets = [0, 32], sizes = [8, 32], strides = [1, 1]} : vector<8x128xbf16> to vector<8x32xbf16>
    %25 = vector.extract_strided_slice %3 {offsets = [0, 32], sizes = [8, 32], strides = [1, 1]} : vector<8x128xbf16> to vector<8x32xbf16>
    %26 = vector.extract_strided_slice %4 {offsets = [0, 32], sizes = [8, 32], strides = [1, 1]} : vector<8x128xbf16> to vector<8x32xbf16>
    %cst_8 = arith.constant dense<0.000000e+00> : vector<8x8xf32>
    %27 = tpu.matmul %24, %25, %cst_8 {dimension_numbers = #tpu.dot_dimension_numbers<[1], [1], [0], [0], [0, 0, 1, 0], [], []>} : vector<8x32xbf16>, vector<8x32xbf16>, vector<8x8xf32> -> vector<8x8xf32>
    %cst_9 = arith.constant 0.176776692 : f32
    %28 = vector.broadcast %cst_9 : f32 to vector<8x8xf32>
    %29 = arith.mulf %27, %28 : vector<8x8xf32>
    %cst_10 = arith.constant dense<0xFF800000> : vector<8xf32>
    %30 = vector.multi_reduction <maximumf>, %29, %cst_10 [1] : vector<8x8xf32> to vector<8xf32>
    %31 = vector.shape_cast %30 : vector<8xf32> to vector<8x1xf32>
    %32 = vector.broadcast %31 : vector<8x1xf32> to vector<8x8xf32>
    %33 = arith.subf %29, %32 : vector<8x8xf32>
    %34 = math.exp %33 : vector<8x8xf32>
    %cst_11 = arith.constant dense<0.000000e+00> : vector<8xf32>
    %35 = vector.multi_reduction <add>, %34, %cst_11 [1] : vector<8x8xf32> to vector<8xf32>
    %36 = vector.shape_cast %35 : vector<8xf32> to vector<8x1xf32>
    %37 = tpu.reciprocal %36 {approx = true} : vector<8x1xf32> -> vector<8x1xf32>
    %38 = vector.broadcast %37 : vector<8x1xf32> to vector<8x8xf32>
    %39 = arith.mulf %34, %38 : vector<8x8xf32>
    %40 = arith.truncf %39 : vector<8x8xf32> to vector<8x8xbf16>
    %cst_12 = arith.constant dense<0.000000e+00> : vector<8x32xf32>
    %41 = tpu.matmul %40, %26, %cst_12 {dimension_numbers = #tpu.dot_dimension_numbers<[1], [0], [0], [1], [0, 0, 1, 1], [], []>} : vector<8x8xbf16>, vector<8x32xbf16>, vector<8x32xf32> -> vector<8x32xf32>
    %c0_13 = arith.constant 0 : index
    %c32 = arith.constant 32 : index
    %42 = vector.load %arg8[%c0_13, %c32] : memref<8x128xf32, #tpu.memory_space<vmem>>, vector<8x32xf32>
    tpu.vector_store %arg8[%c0_13, %c32], %41 {strides = array<i32>} : memref<8x128xf32, #tpu.memory_space<vmem>>, vector<8x32xf32>,
    %43 = vector.extract_strided_slice %2 {offsets = [0, 64], sizes = [8, 32], strides = [1, 1]} : vector<8x128xbf16> to vector<8x32xbf16>
    %44 = vector.extract_strided_slice %3 {offsets = [0, 64], sizes = [8, 32], strides = [1, 1]} : vector<8x128xbf16> to vector<8x32xbf16>
    %45 = vector.extract_strided_slice %4 {offsets = [0, 64], sizes = [8, 32], strides = [1, 1]} : vector<8x128xbf16> to vector<8x32xbf16>
    %cst_14 = arith.constant dense<0.000000e+00> : vector<8x8xf32>
    %46 = tpu.matmul %43, %44, %cst_14 {dimension_numbers = #tpu.dot_dimension_numbers<[1], [1], [0], [0], [0, 0, 1, 0], [], []>} : vector<8x32xbf16>, vector<8x32xbf16>, vector<8x8xf32> -> vector<8x8xf32>
    %cst_15 = arith.constant 0.176776692 : f32
    %47 = vector.broadcast %cst_15 : f32 to vector<8x8xf32>
    %48 = arith.mulf %46, %47 : vector<8x8xf32>
    %cst_16 = arith.constant dense<0xFF800000> : vector<8xf32>
    %49 = vector.multi_reduction <maximumf>, %48, %cst_16 [1] : vector<8x8xf32> to vector<8xf32>
    %50 = vector.shape_cast %49 : vector<8xf32> to vector<8x1xf32>
    %51 = vector.broadcast %50 : vector<8x1xf32> to vector<8x8xf32>
    %52 = arith.subf %48, %51 : vector<8x8xf32>
    %53 = math.exp %52 : vector<8x8xf32>
    %cst_17 = arith.constant dense<0.000000e+00> : vector<8xf32>
    %54 = vector.multi_reduction <add>, %53, %cst_17 [1] : vector<8x8xf32> to vector<8xf32>
    %55 = vector.shape_cast %54 : vector<8xf32> to vector<8x1xf32>
    %56 = tpu.reciprocal %55 {approx = true} : vector<8x1xf32> -> vector<8x1xf32>
    %57 = vector.broadcast %56 : vector<8x1xf32> to vector<8x8xf32>
    %58 = arith.mulf %53, %57 : vector<8x8xf32>
    %59 = arith.truncf %58 : vector<8x8xf32> to vector<8x8xbf16>
    %cst_18 = arith.constant dense<0.000000e+00> : vector<8x32xf32>
    %60 = tpu.matmul %59, %45, %cst_18 {dimension_numbers = #tpu.dot_dimension_numbers<[1], [0], [0], [1], [0, 0, 1, 1], [], []>} : vector<8x8xbf16>, vector<8x32xbf16>, vector<8x32xf32> -> vector<8x32xf32>
    %c0_19 = arith.constant 0 : index
    %c64 = arith.constant 64 : index
    %61 = vector.load %arg8[%c0_19, %c64] : memref<8x128xf32, #tpu.memory_space<vmem>>, vector<8x32xf32>
    tpu.vector_store %arg8[%c0_19, %c64], %60 {strides = array<i32>} : memref<8x128xf32, #tpu.memory_space<vmem>>, vector<8x32xf32>,
    %62 = vector.extract_strided_slice %2 {offsets = [0, 96], sizes = [8, 32], strides = [1, 1]} : vector<8x128xbf16> to vector<8x32xbf16>
    %63 = vector.extract_strided_slice %3 {offsets = [0, 96], sizes = [8, 32], strides = [1, 1]} : vector<8x128xbf16> to vector<8x32xbf16>
    %64 = vector.extract_strided_slice %4 {offsets = [0, 96], sizes = [8, 32], strides = [1, 1]} : vector<8x128xbf16> to vector<8x32xbf16>
    %cst_20 = arith.constant dense<0.000000e+00> : vector<8x8xf32>
    %65 = tpu.matmul %62, %63, %cst_20 {dimension_numbers = #tpu.dot_dimension_numbers<[1], [1], [0], [0], [0, 0, 1, 0], [], []>} : vector<8x32xbf16>, vector<8x32xbf16>, vector<8x8xf32> -> vector<8x8xf32>
    %cst_21 = arith.constant 0.176776692 : f32
    %66 = vector.broadcast %cst_21 : f32 to vector<8x8xf32>
    %67 = arith.mulf %65, %66 : vector<8x8xf32>
    %cst_22 = arith.constant dense<0xFF800000> : vector<8xf32>
    %68 = vector.multi_reduction <maximumf>, %67, %cst_22 [1] : vector<8x8xf32> to vector<8xf32>
    %69 = vector.shape_cast %68 : vector<8xf32> to vector<8x1xf32>
    %70 = vector.broadcast %69 : vector<8x1xf32> to vector<8x8xf32>
    %71 = arith.subf %67, %70 : vector<8x8xf32>
    %72 = math.exp %71 : vector<8x8xf32>
    %cst_23 = arith.constant dense<0.000000e+00> : vector<8xf32>
    %73 = vector.multi_reduction <add>, %72, %cst_23 [1] : vector<8x8xf32> to vector<8xf32>
    %74 = vector.shape_cast %73 : vector<8xf32> to vector<8x1xf32>
    %75 = tpu.reciprocal %74 {approx = true} : vector<8x1xf32> -> vector<8x1xf32>
    %76 = vector.broadcast %75 : vector<8x1xf32> to vector<8x8xf32>
    %77 = arith.mulf %72, %76 : vector<8x8xf32>
    %78 = arith.truncf %77 : vector<8x8xf32> to vector<8x8xbf16>
    %cst_24 = arith.constant dense<0.000000e+00> : vector<8x32xf32>
    %79 = tpu.matmul %78, %64, %cst_24 {dimension_numbers = #tpu.dot_dimension_numbers<[1], [0], [0], [1], [0, 0, 1, 1], [], []>} : vector<8x8xbf16>, vector<8x32xbf16>, vector<8x32xf32> -> vector<8x32xf32>
    %c0_25 = arith.constant 0 : index
    %c96 = arith.constant 96 : index
    %80 = vector.load %arg8[%c0_25, %c96] : memref<8x128xf32, #tpu.memory_space<vmem>>, vector<8x32xf32>
    tpu.vector_store %arg8[%c0_25, %c96], %79 {strides = array<i32>} : memref<8x128xf32, #tpu.memory_space<vmem>>, vector<8x32xf32>,
    %c0_26 = arith.constant 0 : index
    %c0_27 = arith.constant 0 : index
    %c0_28 = arith.constant 0 : index
    %81 = vector.load %arg2[%c0_26, %c0_27, %c0_28] : memref<1x8x128xbf16, #tpu.memory_space<vmem>>, vector<1x8x128xbf16>
    %82 = vector.shape_cast %81 : vector<1x8x128xbf16> to vector<8x128xbf16>
    %c0_29 = arith.constant 0 : index
    %c0_30 = arith.constant 0 : index
    %83 = vector.load %arg8[%c0_29, %c0_30] : memref<8x128xf32, #tpu.memory_space<vmem>>, vector<8x128xf32>
    %84 = arith.truncf %83 : vector<8x128xf32> to vector<8x128xbf16>
    %c0_31 = arith.constant 0 : index
    %c0_32 = arith.constant 0 : index
    %85 = vector.load %arg3[%c0_31, %c0_32] : memref<128x128xbf16, #tpu.memory_space<vmem>>, vector<128x128xbf16>
    %cst_33 = arith.constant dense<0.000000e+00> : vector<8x128xf32>
    %86 = tpu.matmul %84, %85, %cst_33 {dimension_numbers = #tpu.dot_dimension_numbers<[1], [0], [0], [1], [0, 0, 1, 1], [], []>} : vector<8x128xbf16>, vector<128x128xbf16>, vector<8x128xf32> -> vector<8x128xf32>
    %c0_34 = arith.constant 0 : index
    %c0_35 = arith.constant 0 : index
    %87 = vector.load %arg4[%c0_34, %c0_35] : memref<1x128xf32, #tpu.memory_space<vmem>>, vector<1x128xf32>
    %88 = vector.broadcast %87 : vector<1x128xf32> to vector<8x128xf32>
    %89 = arith.addf %86, %88 : vector<8x128xf32>
    %90 = arith.extf %82 : vector<8x128xbf16> to vector<8x128xf32>
    %91 = arith.addf %89, %90 : vector<8x128xf32>
    %cst_36 = arith.constant dense<0.000000e+00> : vector<8xf32>
    %92 = vector.multi_reduction <add>, %91, %cst_36 [1] : vector<8x128xf32> to vector<8xf32>
    %93 = vector.shape_cast %92 : vector<8xf32> to vector<8x1xf32>
    %cst_37 = arith.constant 1.280000e+02 : f32
    %94 = vector.broadcast %cst_37 : f32 to vector<8x1xf32>
    %95 = arith.divf %93, %94 : vector<8x1xf32>
    %96 = vector.broadcast %95 : vector<8x1xf32> to vector<8x128xf32>
    %97 = arith.subf %91, %96 : vector<8x128xf32>
    %98 = arith.mulf %97, %97 : vector<8x128xf32>
    %cst_38 = arith.constant dense<0.000000e+00> : vector<8xf32>
    %99 = vector.multi_reduction <add>, %98, %cst_38 [1] : vector<8x128xf32> to vector<8xf32>
    %100 = vector.shape_cast %99 : vector<8xf32> to vector<8x1xf32>
    %cst_39 = arith.constant 1.280000e+02 : f32
    %101 = vector.broadcast %cst_39 : f32 to vector<8x1xf32>
    %102 = arith.divf %100, %101 : vector<8x1xf32>
    %cst_40 = arith.constant 9.99999974E-6 : f32
    %103 = vector.broadcast %cst_40 : f32 to vector<8x1xf32>
    %104 = arith.addf %102, %103 : vector<8x1xf32>
    %105 = math.rsqrt %104 : vector<8x1xf32>
    %106 = vector.broadcast %105 : vector<8x1xf32> to vector<8x128xf32>
    %107 = arith.mulf %97, %106 : vector<8x128xf32>
    %c0_41 = arith.constant 0 : index
    %c0_42 = arith.constant 0 : index
    %108 = vector.load %arg5[%c0_41, %c0_42] : memref<1x128xf32, #tpu.memory_space<vmem>>, vector<1x128xf32>
    %109 = vector.broadcast %108 : vector<1x128xf32> to vector<8x128xf32>
    %110 = arith.mulf %107, %109 : vector<8x128xf32>
    %c0_43 = arith.constant 0 : index
    %c0_44 = arith.constant 0 : index
    %111 = vector.load %arg6[%c0_43, %c0_44] : memref<1x128xf32, #tpu.memory_space<vmem>>, vector<1x128xf32>
    %112 = vector.broadcast %111 : vector<1x128xf32> to vector<8x128xf32>
    %113 = arith.addf %110, %112 : vector<8x128xf32>
    %114 = arith.truncf %113 : vector<8x128xf32> to vector<8x128xbf16>
    %c0_45 = arith.constant 0 : index
    %c0_46 = arith.constant 0 : index
    %c0_47 = arith.constant 0 : index
    %115 = vector.load %arg7[%c0_45, %c0_46, %c0_47] : memref<1x8x128xbf16, #tpu.memory_space<vmem>>, vector<1x8x128xbf16>
    %116 = vector.shape_cast %115 : vector<1x8x128xbf16> to vector<8x128xbf16>
    %117 = vector.shape_cast %114 : vector<8x128xbf16> to vector<1x8x128xbf16>
    tpu.vector_store %arg7[%c0_45, %c0_46, %c0_47], %117 {strides = array<i32>} : memref<1x8x128xbf16, #tpu.memory_space<vmem>>, vector<1x8x128xbf16>,
    return
  }
  func.func @transform_0(%arg0: i32) -> (i32, i32, i32) {
    %c0_i32 = arith.constant 0 : i32
    %c0_i32_0 = arith.constant 0 : i32
    %c0_i32_1 = arith.constant 0 : i32
    return %arg0, %c0_i32, %c0_i32_0 : i32, i32, i32
  }
  func.func @transform_1(%arg0: i32) -> (i32, i32, i32) {
    %c0_i32 = arith.constant 0 : i32
    %c0_i32_0 = arith.constant 0 : i32
    %c0_i32_1 = arith.constant 0 : i32
    return %arg0, %c0_i32, %c0_i32_0 : i32, i32, i32
  }
  func.func @transform_2(%arg0: i32) -> (i32, i32) {
    %c0_i32 = arith.constant 0 : i32
    %c0_i32_0 = arith.constant 0 : i32
    %c0_i32_1 = arith.constant 0 : i32
    return %c0_i32, %c0_i32_0 : i32, i32
  }
  func.func @transform_3(%arg0: i32) -> (i32, i32) {
    %c0_i32 = arith.constant 0 : i32
    %c0_i32_0 = arith.constant 0 : i32
    %c0_i32_1 = arith.constant 0 : i32
    return %c0_i32, %c0_i32_0 : i32, i32
  }
  func.func @transform_4(%arg0: i32) -> (i32, i32) {
    %c0_i32 = arith.constant 0 : i32
    %c0_i32_0 = arith.constant 0 : i32
    %c0_i32_1 = arith.constant 0 : i32
    return %c0_i32, %c0_i32_0 : i32, i32
  }
  func.func @transform_5(%arg0: i32) -> (i32, i32) {
    %c0_i32 = arith.constant 0 : i32
    %c0_i32_0 = arith.constant 0 : i32
    %c0_i32_1 = arith.constant 0 : i32
    return %c0_i32, %c0_i32_0 : i32, i32
  }
  func.func @transform_6(%arg0: i32) -> (i32, i32, i32) {
    %c0_i32 = arith.constant 0 : i32
    %c0_i32_0 = arith.constant 0 : i32
    %c0_i32_1 = arith.constant 0 : i32
    return %arg0, %c0_i32, %c0_i32_0 : i32, i32, i32
  }
}

module attributes {stable_mosaic.version = 11 : i64} {
  func.func @_linear_kernel(%arg0: i32, %arg1: memref<8x128xbf16, #tpu.memory_space<vmem>>, %arg2: memref<128x256xbf16, #tpu.memory_space<vmem>>, %arg3: memref<1x256xf32, #tpu.memory_space<vmem>>, %arg4: memref<8x256xbf16, #tpu.memory_space<vmem>>) attributes {dimension_semantics = [#tpu.dimension_semantics<parallel>], iteration_bounds = array<i64: 2>, scalar_prefetch = 0 : i64, scratch_operands = 0 : i64, tpu.core_type = #tpu.core_type<tc>, window_params = [{transform_indices = @transform_0, window_bounds = array<i64: 8, 128>}, {pipeline_mode = #tpu.pipeline_mode<synchronous>, transform_indices = @transform_1, window_bounds = array<i64: 128, 256>}, {pipeline_mode = #tpu.pipeline_mode<synchronous>, transform_indices = @transform_2, window_bounds = array<i64: 1, 256>}, {transform_indices = @transform_3, window_bounds = array<i64: 8, 256>}]} {
    %c0 = arith.constant 0 : index
    %c0_0 = arith.constant 0 : index
    %0 = vector.load %arg1[%c0, %c0_0] : memref<8x128xbf16, #tpu.memory_space<vmem>>, vector<8x128xbf16>
    %c0_1 = arith.constant 0 : index
    %c0_2 = arith.constant 0 : index
    %1 = vector.load %arg2[%c0_1, %c0_2] : memref<128x256xbf16, #tpu.memory_space<vmem>>, vector<128x256xbf16>
    %cst = arith.constant dense<0.000000e+00> : vector<8x256xf32>
    %2 = tpu.matmul %0, %1, %cst {dimension_numbers = #tpu.dot_dimension_numbers<[1], [0], [0], [1], [0, 0, 1, 1], [], []>} : vector<8x128xbf16>, vector<128x256xbf16>, vector<8x256xf32> -> vector<8x256xf32>
    %c0_3 = arith.constant 0 : index
    %c0_4 = arith.constant 0 : index
    %3 = vector.load %arg3[%c0_3, %c0_4] : memref<1x256xf32, #tpu.memory_space<vmem>>, vector<1x256xf32>
    %4 = vector.broadcast %3 : vector<1x256xf32> to vector<8x256xf32>
    %5 = arith.addf %2, %4 : vector<8x256xf32>
    %6 = arith.truncf %5 : vector<8x256xf32> to vector<8x256xbf16>
    %c0_5 = arith.constant 0 : index
    %c0_6 = arith.constant 0 : index
    %7 = vector.load %arg4[%c0_5, %c0_6] : memref<8x256xbf16, #tpu.memory_space<vmem>>, vector<8x256xbf16>
    tpu.vector_store %arg4[%c0_5, %c0_6], %6 {strides = array<i32>} : memref<8x256xbf16, #tpu.memory_space<vmem>>, vector<8x256xbf16>,
    return
  }
  func.func @transform_0(%arg0: i32) -> (i32, i32) {
    %c0_i32 = arith.constant 0 : i32
    %c0_i32_0 = arith.constant 0 : i32
    return %arg0, %c0_i32 : i32, i32
  }
  func.func @transform_1(%arg0: i32) -> (i32, i32) {
    %c0_i32 = arith.constant 0 : i32
    %c0_i32_0 = arith.constant 0 : i32
    %c0_i32_1 = arith.constant 0 : i32
    return %c0_i32, %c0_i32_0 : i32, i32
  }
  func.func @transform_2(%arg0: i32) -> (i32, i32) {
    %c0_i32 = arith.constant 0 : i32
    %c0_i32_0 = arith.constant 0 : i32
    %c0_i32_1 = arith.constant 0 : i32
    return %c0_i32, %c0_i32_0 : i32, i32
  }
  func.func @transform_3(%arg0: i32) -> (i32, i32) {
    %c0_i32 = arith.constant 0 : i32
    %c0_i32_0 = arith.constant 0 : i32
    return %arg0, %c0_i32 : i32, i32
  }
}

module attributes {stable_mosaic.version = 11 : i64} {
  func.func @_ln_kernel(%arg0: i32, %arg1: memref<8x128xbf16, #tpu.memory_space<vmem>>, %arg2: memref<1x128xf32, #tpu.memory_space<vmem>>, %arg3: memref<1x128xf32, #tpu.memory_space<vmem>>, %arg4: memref<8x128xbf16, #tpu.memory_space<vmem>>) attributes {dimension_semantics = [#tpu.dimension_semantics<parallel>], iteration_bounds = array<i64: 2>, scalar_prefetch = 0 : i64, scratch_operands = 0 : i64, tpu.core_type = #tpu.core_type<tc>, window_params = [{transform_indices = @transform_0, window_bounds = array<i64: 8, 128>}, {pipeline_mode = #tpu.pipeline_mode<synchronous>, transform_indices = @transform_1, window_bounds = array<i64: 1, 128>}, {pipeline_mode = #tpu.pipeline_mode<synchronous>, transform_indices = @transform_2, window_bounds = array<i64: 1, 128>}, {transform_indices = @transform_3, window_bounds = array<i64: 8, 128>}]} {
    %c0 = arith.constant 0 : index
    %c0_0 = arith.constant 0 : index
    %0 = vector.load %arg1[%c0, %c0_0] : memref<8x128xbf16, #tpu.memory_space<vmem>>, vector<8x128xbf16>
    %1 = arith.extf %0 : vector<8x128xbf16> to vector<8x128xf32>
    %cst = arith.constant dense<0.000000e+00> : vector<8xf32>
    %2 = vector.multi_reduction <add>, %1, %cst [1] : vector<8x128xf32> to vector<8xf32>
    %3 = vector.shape_cast %2 : vector<8xf32> to vector<8x1xf32>
    %cst_1 = arith.constant 1.280000e+02 : f32
    %4 = vector.broadcast %cst_1 : f32 to vector<8x1xf32>
    %5 = arith.divf %3, %4 : vector<8x1xf32>
    %6 = vector.broadcast %5 : vector<8x1xf32> to vector<8x128xf32>
    %7 = arith.subf %1, %6 : vector<8x128xf32>
    %8 = arith.mulf %7, %7 : vector<8x128xf32>
    %cst_2 = arith.constant dense<0.000000e+00> : vector<8xf32>
    %9 = vector.multi_reduction <add>, %8, %cst_2 [1] : vector<8x128xf32> to vector<8xf32>
    %10 = vector.shape_cast %9 : vector<8xf32> to vector<8x1xf32>
    %cst_3 = arith.constant 1.280000e+02 : f32
    %11 = vector.broadcast %cst_3 : f32 to vector<8x1xf32>
    %12 = arith.divf %10, %11 : vector<8x1xf32>
    %cst_4 = arith.constant 9.99999974E-6 : f32
    %13 = vector.broadcast %cst_4 : f32 to vector<8x1xf32>
    %14 = arith.addf %12, %13 : vector<8x1xf32>
    %15 = math.rsqrt %14 : vector<8x1xf32>
    %16 = vector.broadcast %15 : vector<8x1xf32> to vector<8x128xf32>
    %17 = arith.mulf %7, %16 : vector<8x128xf32>
    %c0_5 = arith.constant 0 : index
    %c0_6 = arith.constant 0 : index
    %18 = vector.load %arg2[%c0_5, %c0_6] : memref<1x128xf32, #tpu.memory_space<vmem>>, vector<1x128xf32>
    %19 = vector.broadcast %18 : vector<1x128xf32> to vector<8x128xf32>
    %20 = arith.mulf %17, %19 : vector<8x128xf32>
    %c0_7 = arith.constant 0 : index
    %c0_8 = arith.constant 0 : index
    %21 = vector.load %arg3[%c0_7, %c0_8] : memref<1x128xf32, #tpu.memory_space<vmem>>, vector<1x128xf32>
    %22 = vector.broadcast %21 : vector<1x128xf32> to vector<8x128xf32>
    %23 = arith.addf %20, %22 : vector<8x128xf32>
    %24 = arith.truncf %23 : vector<8x128xf32> to vector<8x128xbf16>
    %c0_9 = arith.constant 0 : index
    %c0_10 = arith.constant 0 : index
    %25 = vector.load %arg4[%c0_9, %c0_10] : memref<8x128xbf16, #tpu.memory_space<vmem>>, vector<8x128xbf16>
    tpu.vector_store %arg4[%c0_9, %c0_10], %24 {strides = array<i32>} : memref<8x128xbf16, #tpu.memory_space<vmem>>, vector<8x128xbf16>,
    return
  }
  func.func @transform_0(%arg0: i32) -> (i32, i32) {
    %c0_i32 = arith.constant 0 : i32
    %c0_i32_0 = arith.constant 0 : i32
    return %arg0, %c0_i32 : i32, i32
  }
  func.func @transform_1(%arg0: i32) -> (i32, i32) {
    %c0_i32 = arith.constant 0 : i32
    %c0_i32_0 = arith.constant 0 : i32
    %c0_i32_1 = arith.constant 0 : i32
    return %c0_i32, %c0_i32_0 : i32, i32
  }
  func.func @transform_2(%arg0: i32) -> (i32, i32) {
    %c0_i32 = arith.constant 0 : i32
    %c0_i32_0 = arith.constant 0 : i32
    %c0_i32_1 = arith.constant 0 : i32
    return %c0_i32, %c0_i32_0 : i32, i32
  }
  func.func @transform_3(%arg0: i32) -> (i32, i32) {
    %c0_i32 = arith.constant 0 : i32
    %c0_i32_0 = arith.constant 0 : i32
    return %arg0, %c0_i32 : i32, i32
  }
}

module attributes {stable_mosaic.version = 11 : i64} {
  func.func @_self_attn_ln_kernel(%arg0: i32, %arg1: memref<1x8x384xbf16, #tpu.memory_space<vmem>>, %arg2: memref<1x8x128xbf16, #tpu.memory_space<vmem>>, %arg3: memref<128x128xbf16, #tpu.memory_space<vmem>>, %arg4: memref<1x128xf32, #tpu.memory_space<vmem>>, %arg5: memref<1x128xf32, #tpu.memory_space<vmem>>, %arg6: memref<1x128xf32, #tpu.memory_space<vmem>>, %arg7: memref<1x8x128xbf16, #tpu.memory_space<vmem>>, %arg8: memref<8x128xf32, #tpu.memory_space<vmem>>) attributes {dimension_semantics = [#tpu.dimension_semantics<parallel>], iteration_bounds = array<i64: 2>, scalar_prefetch = 0 : i64, scratch_operands = 1 : i64, tpu.core_type = #tpu.core_type<tc>, window_params = [{transform_indices = @transform_0, window_bounds = array<i64: 1, 8, 384>}, {transform_indices = @transform_1, window_bounds = array<i64: 1, 8, 128>}, {pipeline_mode = #tpu.pipeline_mode<synchronous>, transform_indices = @transform_2, window_bounds = array<i64: 128, 128>}, {pipeline_mode = #tpu.pipeline_mode<synchronous>, transform_indices = @transform_3, window_bounds = array<i64: 1, 128>}, {pipeline_mode = #tpu.pipeline_mode<synchronous>, transform_indices = @transform_4, window_bounds = array<i64: 1, 128>}, {pipeline_mode = #tpu.pipeline_mode<synchronous>, transform_indices = @transform_5, window_bounds = array<i64: 1, 128>}, {transform_indices = @transform_6, window_bounds = array<i64: 1, 8, 128>}]} {
    %c0 = arith.constant 0 : index
    %c0_0 = arith.constant 0 : index
    %c0_1 = arith.constant 0 : index
    %0 = vector.load %arg1[%c0, %c0_0, %c0_1] : memref<1x8x384xbf16, #tpu.memory_space<vmem>>, vector<1x8x384xbf16>
    %1 = vector.shape_cast %0 : vector<1x8x384xbf16> to vector<8x384xbf16>
    %2 = vector.extract_strided_slice %1 {offsets = [0, 0], sizes = [8, 128], strides = [1, 1]} : vector<8x384xbf16> to vector<8x128xbf16>
    %3 = vector.extract_strided_slice %1 {offsets = [0, 128], sizes = [8, 128], strides = [1, 1]} : vector<8x384xbf16> to vector<8x128xbf16>
    %4 = vector.extract_strided_slice %1 {offsets = [0, 256], sizes = [8, 128], strides = [1, 1]} : vector<8x384xbf16> to vector<8x128xbf16>
    %5 = tpu.iota {dimensions = array<i32: 0>} : vector<8x8xi32>
    %6 = tpu.iota {dimensions = array<i32: 1>} : vector<8x8xi32>
    %7 = arith.cmpi sgt, %6, %5 : vector<8x8xi32>
    %8 = vector.extract_strided_slice %2 {offsets = [0, 0], sizes = [8, 32], strides = [1, 1]} : vector<8x128xbf16> to vector<8x32xbf16>
    %9 = vector.extract_strided_slice %3 {offsets = [0, 0], sizes = [8, 32], strides = [1, 1]} : vector<8x128xbf16> to vector<8x32xbf16>
    %10 = vector.extract_strided_slice %4 {offsets = [0, 0], sizes = [8, 32], strides = [1, 1]} : vector<8x128xbf16> to vector<8x32xbf16>
    %cst = arith.constant dense<0.000000e+00> : vector<8x8xf32>
    %11 = tpu.matmul %8, %9, %cst {dimension_numbers = #tpu.dot_dimension_numbers<[1], [1], [0], [0], [0, 0, 1, 0], [], []>} : vector<8x32xbf16>, vector<8x32xbf16>, vector<8x8xf32> -> vector<8x8xf32>
    %cst_2 = arith.constant 0.176776692 : f32
    %12 = vector.broadcast %cst_2 : f32 to vector<8x8xf32>
    %13 = arith.mulf %11, %12 : vector<8x8xf32>
    %cst_3 = arith.constant -1.000000e+30 : f32
    %14 = vector.broadcast %cst_3 : f32 to vector<8x8xf32>
    %15 = arith.select %7, %14, %13 : vector<8x8xi1>, vector<8x8xf32>
    %cst_4 = arith.constant dense<0xFF800000> : vector<8xf32>
    %16 = vector.multi_reduction <maximumf>, %15, %cst_4 [1] : vector<8x8xf32> to vector<8xf32>
    %17 = vector.shape_cast %16 : vector<8xf32> to vector<8x1xf32>
    %18 = vector.broadcast %17 : vector<8x1xf32> to vector<8x8xf32>
    %19 = arith.subf %15, %18 : vector<8x8xf32>
    %20 = math.exp %19 : vector<8x8xf32>
    %cst_5 = arith.constant dense<0.000000e+00> : vector<8xf32>
    %21 = vector.multi_reduction <add>, %20, %cst_5 [1] : vector<8x8xf32> to vector<8xf32>
    %22 = vector.shape_cast %21 : vector<8xf32> to vector<8x1xf32>
    %23 = tpu.reciprocal %22 {approx = true} : vector<8x1xf32> -> vector<8x1xf32>
    %24 = vector.broadcast %23 : vector<8x1xf32> to vector<8x8xf32>
    %25 = arith.mulf %20, %24 : vector<8x8xf32>
    %26 = arith.truncf %25 : vector<8x8xf32> to vector<8x8xbf16>
    %cst_6 = arith.constant dense<0.000000e+00> : vector<8x32xf32>
    %27 = tpu.matmul %26, %10, %cst_6 {dimension_numbers = #tpu.dot_dimension_numbers<[1], [0], [0], [1], [0, 0, 1, 1], [], []>} : vector<8x8xbf16>, vector<8x32xbf16>, vector<8x32xf32> -> vector<8x32xf32>
    %c0_7 = arith.constant 0 : index
    %c0_8 = arith.constant 0 : index
    %28 = vector.load %arg8[%c0_7, %c0_8] : memref<8x128xf32, #tpu.memory_space<vmem>>, vector<8x32xf32>
    tpu.vector_store %arg8[%c0_7, %c0_8], %27 {strides = array<i32>} : memref<8x128xf32, #tpu.memory_space<vmem>>, vector<8x32xf32>,
    %29 = vector.extract_strided_slice %2 {offsets = [0, 32], sizes = [8, 32], strides = [1, 1]} : vector<8x128xbf16> to vector<8x32xbf16>
    %30 = vector.extract_strided_slice %3 {offsets = [0, 32], sizes = [8, 32], strides = [1, 1]} : vector<8x128xbf16> to vector<8x32xbf16>
    %31 = vector.extract_strided_slice %4 {offsets = [0, 32], sizes = [8, 32], strides = [1, 1]} : vector<8x128xbf16> to vector<8x32xbf16>
    %cst_9 = arith.constant dense<0.000000e+00> : vector<8x8xf32>
    %32 = tpu.matmul %29, %30, %cst_9 {dimension_numbers = #tpu.dot_dimension_numbers<[1], [1], [0], [0], [0, 0, 1, 0], [], []>} : vector<8x32xbf16>, vector<8x32xbf16>, vector<8x8xf32> -> vector<8x8xf32>
    %cst_10 = arith.constant 0.176776692 : f32
    %33 = vector.broadcast %cst_10 : f32 to vector<8x8xf32>
    %34 = arith.mulf %32, %33 : vector<8x8xf32>
    %cst_11 = arith.constant -1.000000e+30 : f32
    %35 = vector.broadcast %cst_11 : f32 to vector<8x8xf32>
    %36 = arith.select %7, %35, %34 : vector<8x8xi1>, vector<8x8xf32>
    %cst_12 = arith.constant dense<0xFF800000> : vector<8xf32>
    %37 = vector.multi_reduction <maximumf>, %36, %cst_12 [1] : vector<8x8xf32> to vector<8xf32>
    %38 = vector.shape_cast %37 : vector<8xf32> to vector<8x1xf32>
    %39 = vector.broadcast %38 : vector<8x1xf32> to vector<8x8xf32>
    %40 = arith.subf %36, %39 : vector<8x8xf32>
    %41 = math.exp %40 : vector<8x8xf32>
    %cst_13 = arith.constant dense<0.000000e+00> : vector<8xf32>
    %42 = vector.multi_reduction <add>, %41, %cst_13 [1] : vector<8x8xf32> to vector<8xf32>
    %43 = vector.shape_cast %42 : vector<8xf32> to vector<8x1xf32>
    %44 = tpu.reciprocal %43 {approx = true} : vector<8x1xf32> -> vector<8x1xf32>
    %45 = vector.broadcast %44 : vector<8x1xf32> to vector<8x8xf32>
    %46 = arith.mulf %41, %45 : vector<8x8xf32>
    %47 = arith.truncf %46 : vector<8x8xf32> to vector<8x8xbf16>
    %cst_14 = arith.constant dense<0.000000e+00> : vector<8x32xf32>
    %48 = tpu.matmul %47, %31, %cst_14 {dimension_numbers = #tpu.dot_dimension_numbers<[1], [0], [0], [1], [0, 0, 1, 1], [], []>} : vector<8x8xbf16>, vector<8x32xbf16>, vector<8x32xf32> -> vector<8x32xf32>
    %c0_15 = arith.constant 0 : index
    %c32 = arith.constant 32 : index
    %49 = vector.load %arg8[%c0_15, %c32] : memref<8x128xf32, #tpu.memory_space<vmem>>, vector<8x32xf32>
    tpu.vector_store %arg8[%c0_15, %c32], %48 {strides = array<i32>} : memref<8x128xf32, #tpu.memory_space<vmem>>, vector<8x32xf32>,
    %50 = vector.extract_strided_slice %2 {offsets = [0, 64], sizes = [8, 32], strides = [1, 1]} : vector<8x128xbf16> to vector<8x32xbf16>
    %51 = vector.extract_strided_slice %3 {offsets = [0, 64], sizes = [8, 32], strides = [1, 1]} : vector<8x128xbf16> to vector<8x32xbf16>
    %52 = vector.extract_strided_slice %4 {offsets = [0, 64], sizes = [8, 32], strides = [1, 1]} : vector<8x128xbf16> to vector<8x32xbf16>
    %cst_16 = arith.constant dense<0.000000e+00> : vector<8x8xf32>
    %53 = tpu.matmul %50, %51, %cst_16 {dimension_numbers = #tpu.dot_dimension_numbers<[1], [1], [0], [0], [0, 0, 1, 0], [], []>} : vector<8x32xbf16>, vector<8x32xbf16>, vector<8x8xf32> -> vector<8x8xf32>
    %cst_17 = arith.constant 0.176776692 : f32
    %54 = vector.broadcast %cst_17 : f32 to vector<8x8xf32>
    %55 = arith.mulf %53, %54 : vector<8x8xf32>
    %cst_18 = arith.constant -1.000000e+30 : f32
    %56 = vector.broadcast %cst_18 : f32 to vector<8x8xf32>
    %57 = arith.select %7, %56, %55 : vector<8x8xi1>, vector<8x8xf32>
    %cst_19 = arith.constant dense<0xFF800000> : vector<8xf32>
    %58 = vector.multi_reduction <maximumf>, %57, %cst_19 [1] : vector<8x8xf32> to vector<8xf32>
    %59 = vector.shape_cast %58 : vector<8xf32> to vector<8x1xf32>
    %60 = vector.broadcast %59 : vector<8x1xf32> to vector<8x8xf32>
    %61 = arith.subf %57, %60 : vector<8x8xf32>
    %62 = math.exp %61 : vector<8x8xf32>
    %cst_20 = arith.constant dense<0.000000e+00> : vector<8xf32>
    %63 = vector.multi_reduction <add>, %62, %cst_20 [1] : vector<8x8xf32> to vector<8xf32>
    %64 = vector.shape_cast %63 : vector<8xf32> to vector<8x1xf32>
    %65 = tpu.reciprocal %64 {approx = true} : vector<8x1xf32> -> vector<8x1xf32>
    %66 = vector.broadcast %65 : vector<8x1xf32> to vector<8x8xf32>
    %67 = arith.mulf %62, %66 : vector<8x8xf32>
    %68 = arith.truncf %67 : vector<8x8xf32> to vector<8x8xbf16>
    %cst_21 = arith.constant dense<0.000000e+00> : vector<8x32xf32>
    %69 = tpu.matmul %68, %52, %cst_21 {dimension_numbers = #tpu.dot_dimension_numbers<[1], [0], [0], [1], [0, 0, 1, 1], [], []>} : vector<8x8xbf16>, vector<8x32xbf16>, vector<8x32xf32> -> vector<8x32xf32>
    %c0_22 = arith.constant 0 : index
    %c64 = arith.constant 64 : index
    %70 = vector.load %arg8[%c0_22, %c64] : memref<8x128xf32, #tpu.memory_space<vmem>>, vector<8x32xf32>
    tpu.vector_store %arg8[%c0_22, %c64], %69 {strides = array<i32>} : memref<8x128xf32, #tpu.memory_space<vmem>>, vector<8x32xf32>,
    %71 = vector.extract_strided_slice %2 {offsets = [0, 96], sizes = [8, 32], strides = [1, 1]} : vector<8x128xbf16> to vector<8x32xbf16>
    %72 = vector.extract_strided_slice %3 {offsets = [0, 96], sizes = [8, 32], strides = [1, 1]} : vector<8x128xbf16> to vector<8x32xbf16>
    %73 = vector.extract_strided_slice %4 {offsets = [0, 96], sizes = [8, 32], strides = [1, 1]} : vector<8x128xbf16> to vector<8x32xbf16>
    %cst_23 = arith.constant dense<0.000000e+00> : vector<8x8xf32>
    %74 = tpu.matmul %71, %72, %cst_23 {dimension_numbers = #tpu.dot_dimension_numbers<[1], [1], [0], [0], [0, 0, 1, 0], [], []>} : vector<8x32xbf16>, vector<8x32xbf16>, vector<8x8xf32> -> vector<8x8xf32>
    %cst_24 = arith.constant 0.176776692 : f32
    %75 = vector.broadcast %cst_24 : f32 to vector<8x8xf32>
    %76 = arith.mulf %74, %75 : vector<8x8xf32>
    %cst_25 = arith.constant -1.000000e+30 : f32
    %77 = vector.broadcast %cst_25 : f32 to vector<8x8xf32>
    %78 = arith.select %7, %77, %76 : vector<8x8xi1>, vector<8x8xf32>
    %cst_26 = arith.constant dense<0xFF800000> : vector<8xf32>
    %79 = vector.multi_reduction <maximumf>, %78, %cst_26 [1] : vector<8x8xf32> to vector<8xf32>
    %80 = vector.shape_cast %79 : vector<8xf32> to vector<8x1xf32>
    %81 = vector.broadcast %80 : vector<8x1xf32> to vector<8x8xf32>
    %82 = arith.subf %78, %81 : vector<8x8xf32>
    %83 = math.exp %82 : vector<8x8xf32>
    %cst_27 = arith.constant dense<0.000000e+00> : vector<8xf32>
    %84 = vector.multi_reduction <add>, %83, %cst_27 [1] : vector<8x8xf32> to vector<8xf32>
    %85 = vector.shape_cast %84 : vector<8xf32> to vector<8x1xf32>
    %86 = tpu.reciprocal %85 {approx = true} : vector<8x1xf32> -> vector<8x1xf32>
    %87 = vector.broadcast %86 : vector<8x1xf32> to vector<8x8xf32>
    %88 = arith.mulf %83, %87 : vector<8x8xf32>
    %89 = arith.truncf %88 : vector<8x8xf32> to vector<8x8xbf16>
    %cst_28 = arith.constant dense<0.000000e+00> : vector<8x32xf32>
    %90 = tpu.matmul %89, %73, %cst_28 {dimension_numbers = #tpu.dot_dimension_numbers<[1], [0], [0], [1], [0, 0, 1, 1], [], []>} : vector<8x8xbf16>, vector<8x32xbf16>, vector<8x32xf32> -> vector<8x32xf32>
    %c0_29 = arith.constant 0 : index
    %c96 = arith.constant 96 : index
    %91 = vector.load %arg8[%c0_29, %c96] : memref<8x128xf32, #tpu.memory_space<vmem>>, vector<8x32xf32>
    tpu.vector_store %arg8[%c0_29, %c96], %90 {strides = array<i32>} : memref<8x128xf32, #tpu.memory_space<vmem>>, vector<8x32xf32>,
    %c0_30 = arith.constant 0 : index
    %c0_31 = arith.constant 0 : index
    %c0_32 = arith.constant 0 : index
    %92 = vector.load %arg2[%c0_30, %c0_31, %c0_32] : memref<1x8x128xbf16, #tpu.memory_space<vmem>>, vector<1x8x128xbf16>
    %93 = vector.shape_cast %92 : vector<1x8x128xbf16> to vector<8x128xbf16>
    %c0_33 = arith.constant 0 : index
    %c0_34 = arith.constant 0 : index
    %94 = vector.load %arg8[%c0_33, %c0_34] : memref<8x128xf32, #tpu.memory_space<vmem>>, vector<8x128xf32>
    %95 = arith.truncf %94 : vector<8x128xf32> to vector<8x128xbf16>
    %c0_35 = arith.constant 0 : index
    %c0_36 = arith.constant 0 : index
    %96 = vector.load %arg3[%c0_35, %c0_36] : memref<128x128xbf16, #tpu.memory_space<vmem>>, vector<128x128xbf16>
    %cst_37 = arith.constant dense<0.000000e+00> : vector<8x128xf32>
    %97 = tpu.matmul %95, %96, %cst_37 {dimension_numbers = #tpu.dot_dimension_numbers<[1], [0], [0], [1], [0, 0, 1, 1], [], []>} : vector<8x128xbf16>, vector<128x128xbf16>, vector<8x128xf32> -> vector<8x128xf32>
    %c0_38 = arith.constant 0 : index
    %c0_39 = arith.constant 0 : index
    %98 = vector.load %arg4[%c0_38, %c0_39] : memref<1x128xf32, #tpu.memory_space<vmem>>, vector<1x128xf32>
    %99 = vector.broadcast %98 : vector<1x128xf32> to vector<8x128xf32>
    %100 = arith.addf %97, %99 : vector<8x128xf32>
    %101 = arith.extf %93 : vector<8x128xbf16> to vector<8x128xf32>
    %102 = arith.addf %100, %101 : vector<8x128xf32>
    %cst_40 = arith.constant dense<0.000000e+00> : vector<8xf32>
    %103 = vector.multi_reduction <add>, %102, %cst_40 [1] : vector<8x128xf32> to vector<8xf32>
    %104 = vector.shape_cast %103 : vector<8xf32> to vector<8x1xf32>
    %cst_41 = arith.constant 1.280000e+02 : f32
    %105 = vector.broadcast %cst_41 : f32 to vector<8x1xf32>
    %106 = arith.divf %104, %105 : vector<8x1xf32>
    %107 = vector.broadcast %106 : vector<8x1xf32> to vector<8x128xf32>
    %108 = arith.subf %102, %107 : vector<8x128xf32>
    %109 = arith.mulf %108, %108 : vector<8x128xf32>
    %cst_42 = arith.constant dense<0.000000e+00> : vector<8xf32>
    %110 = vector.multi_reduction <add>, %109, %cst_42 [1] : vector<8x128xf32> to vector<8xf32>
    %111 = vector.shape_cast %110 : vector<8xf32> to vector<8x1xf32>
    %cst_43 = arith.constant 1.280000e+02 : f32
    %112 = vector.broadcast %cst_43 : f32 to vector<8x1xf32>
    %113 = arith.divf %111, %112 : vector<8x1xf32>
    %cst_44 = arith.constant 9.99999974E-6 : f32
    %114 = vector.broadcast %cst_44 : f32 to vector<8x1xf32>
    %115 = arith.addf %113, %114 : vector<8x1xf32>
    %116 = math.rsqrt %115 : vector<8x1xf32>
    %117 = vector.broadcast %116 : vector<8x1xf32> to vector<8x128xf32>
    %118 = arith.mulf %108, %117 : vector<8x128xf32>
    %c0_45 = arith.constant 0 : index
    %c0_46 = arith.constant 0 : index
    %119 = vector.load %arg5[%c0_45, %c0_46] : memref<1x128xf32, #tpu.memory_space<vmem>>, vector<1x128xf32>
    %120 = vector.broadcast %119 : vector<1x128xf32> to vector<8x128xf32>
    %121 = arith.mulf %118, %120 : vector<8x128xf32>
    %c0_47 = arith.constant 0 : index
    %c0_48 = arith.constant 0 : index
    %122 = vector.load %arg6[%c0_47, %c0_48] : memref<1x128xf32, #tpu.memory_space<vmem>>, vector<1x128xf32>
    %123 = vector.broadcast %122 : vector<1x128xf32> to vector<8x128xf32>
    %124 = arith.addf %121, %123 : vector<8x128xf32>
    %125 = arith.truncf %124 : vector<8x128xf32> to vector<8x128xbf16>
    %c0_49 = arith.constant 0 : index
    %c0_50 = arith.constant 0 : index
    %c0_51 = arith.constant 0 : index
    %126 = vector.load %arg7[%c0_49, %c0_50, %c0_51] : memref<1x8x128xbf16, #tpu.memory_space<vmem>>, vector<1x8x128xbf16>
    %127 = vector.shape_cast %126 : vector<1x8x128xbf16> to vector<8x128xbf16>
    %128 = vector.shape_cast %125 : vector<8x128xbf16> to vector<1x8x128xbf16>
    tpu.vector_store %arg7[%c0_49, %c0_50, %c0_51], %128 {strides = array<i32>} : memref<1x8x128xbf16, #tpu.memory_space<vmem>>, vector<1x8x128xbf16>,
    return
  }
  func.func @transform_0(%arg0: i32) -> (i32, i32, i32) {
    %c0_i32 = arith.constant 0 : i32
    %c0_i32_0 = arith.constant 0 : i32
    %c0_i32_1 = arith.constant 0 : i32
    return %arg0, %c0_i32, %c0_i32_0 : i32, i32, i32
  }
  func.func @transform_1(%arg0: i32) -> (i32, i32, i32) {
    %c0_i32 = arith.constant 0 : i32
    %c0_i32_0 = arith.constant 0 : i32
    %c0_i32_1 = arith.constant 0 : i32
    return %arg0, %c0_i32, %c0_i32_0 : i32, i32, i32
  }
  func.func @transform_2(%arg0: i32) -> (i32, i32) {
    %c0_i32 = arith.constant 0 : i32
    %c0_i32_0 = arith.constant 0 : i32
    %c0_i32_1 = arith.constant 0 : i32
    return %c0_i32, %c0_i32_0 : i32, i32
  }
  func.func @transform_3(%arg0: i32) -> (i32, i32) {
    %c0_i32 = arith.constant 0 : i32
    %c0_i32_0 = arith.constant 0 : i32
    %c0_i32_1 = arith.constant 0 : i32
    return %c0_i32, %c0_i32_0 : i32, i32
  }
  func.func @transform_4(%arg0: i32) -> (i32, i32) {
    %c0_i32 = arith.constant 0 : i32
    %c0_i32_0 = arith.constant 0 : i32
    %c0_i32_1 = arith.constant 0 : i32
    return %c0_i32, %c0_i32_0 : i32, i32
  }
  func.func @transform_5(%arg0: i32) -> (i32, i32) {
    %c0_i32 = arith.constant 0 : i32
    %c0_i32_0 = arith.constant 0 : i32
    %c0_i32_1 = arith.constant 0 : i32
    return %c0_i32, %c0_i32_0 : i32, i32
  }
  func.func @transform_6(%arg0: i32) -> (i32, i32, i32) {
    %c0_i32 = arith.constant 0 : i32
    %c0_i32_0 = arith.constant 0 : i32
    %c0_i32_1 = arith.constant 0 : i32
    return %arg0, %c0_i32, %c0_i32_0 : i32, i32, i32
  }
}

module attributes {stable_mosaic.version = 11 : i64} {
  func.func @_linear_kernel(%arg0: i32, %arg1: memref<8x128xbf16, #tpu.memory_space<vmem>>, %arg2: memref<128x128xbf16, #tpu.memory_space<vmem>>, %arg3: memref<1x128xf32, #tpu.memory_space<vmem>>, %arg4: memref<8x128xbf16, #tpu.memory_space<vmem>>) attributes {dimension_semantics = [#tpu.dimension_semantics<parallel>], iteration_bounds = array<i64: 2>, scalar_prefetch = 0 : i64, scratch_operands = 0 : i64, tpu.core_type = #tpu.core_type<tc>, window_params = [{transform_indices = @transform_0, window_bounds = array<i64: 8, 128>}, {pipeline_mode = #tpu.pipeline_mode<synchronous>, transform_indices = @transform_1, window_bounds = array<i64: 128, 128>}, {pipeline_mode = #tpu.pipeline_mode<synchronous>, transform_indices = @transform_2, window_bounds = array<i64: 1, 128>}, {transform_indices = @transform_3, window_bounds = array<i64: 8, 128>}]} {
    %c0 = arith.constant 0 : index
    %c0_0 = arith.constant 0 : index
    %0 = vector.load %arg1[%c0, %c0_0] : memref<8x128xbf16, #tpu.memory_space<vmem>>, vector<8x128xbf16>
    %c0_1 = arith.constant 0 : index
    %c0_2 = arith.constant 0 : index
    %1 = vector.load %arg2[%c0_1, %c0_2] : memref<128x128xbf16, #tpu.memory_space<vmem>>, vector<128x128xbf16>
    %cst = arith.constant dense<0.000000e+00> : vector<8x128xf32>
    %2 = tpu.matmul %0, %1, %cst {dimension_numbers = #tpu.dot_dimension_numbers<[1], [0], [0], [1], [0, 0, 1, 1], [], []>} : vector<8x128xbf16>, vector<128x128xbf16>, vector<8x128xf32> -> vector<8x128xf32>
    %c0_3 = arith.constant 0 : index
    %c0_4 = arith.constant 0 : index
    %3 = vector.load %arg3[%c0_3, %c0_4] : memref<1x128xf32, #tpu.memory_space<vmem>>, vector<1x128xf32>
    %4 = vector.broadcast %3 : vector<1x128xf32> to vector<8x128xf32>
    %5 = arith.addf %2, %4 : vector<8x128xf32>
    %6 = arith.truncf %5 : vector<8x128xf32> to vector<8x128xbf16>
    %c0_5 = arith.constant 0 : index
    %c0_6 = arith.constant 0 : index
    %7 = vector.load %arg4[%c0_5, %c0_6] : memref<8x128xbf16, #tpu.memory_space<vmem>>, vector<8x128xbf16>
    tpu.vector_store %arg4[%c0_5, %c0_6], %6 {strides = array<i32>} : memref<8x128xbf16, #tpu.memory_space<vmem>>, vector<8x128xbf16>,
    return
  }
  func.func @transform_0(%arg0: i32) -> (i32, i32) {
    %c0_i32 = arith.constant 0 : i32
    %c0_i32_0 = arith.constant 0 : i32
    return %arg0, %c0_i32 : i32, i32
  }
  func.func @transform_1(%arg0: i32) -> (i32, i32) {
    %c0_i32 = arith.constant 0 : i32
    %c0_i32_0 = arith.constant 0 : i32
    %c0_i32_1 = arith.constant 0 : i32
    return %c0_i32, %c0_i32_0 : i32, i32
  }
  func.func @transform_2(%arg0: i32) -> (i32, i32) {
    %c0_i32 = arith.constant 0 : i32
    %c0_i32_0 = arith.constant 0 : i32
    %c0_i32_1 = arith.constant 0 : i32
    return %c0_i32, %c0_i32_0 : i32, i32
  }
  func.func @transform_3(%arg0: i32) -> (i32, i32) {
    %c0_i32 = arith.constant 0 : i32
    %c0_i32_0 = arith.constant 0 : i32
    return %arg0, %c0_i32 : i32, i32
  }
}

module attributes {stable_mosaic.version = 11 : i64} {
  func.func @_cross_attn_ln_kernel(%arg0: i32, %arg1: memref<1x8x128xbf16, #tpu.memory_space<vmem>>, %arg2: memref<1x8x256xbf16, #tpu.memory_space<vmem>>, %arg3: memref<1x8x128xbf16, #tpu.memory_space<vmem>>, %arg4: memref<128x128xbf16, #tpu.memory_space<vmem>>, %arg5: memref<1x128xf32, #tpu.memory_space<vmem>>, %arg6: memref<1x128xf32, #tpu.memory_space<vmem>>, %arg7: memref<1x128xf32, #tpu.memory_space<vmem>>, %arg8: memref<1x8x128xbf16, #tpu.memory_space<vmem>>, %arg9: memref<8x128xf32, #tpu.memory_space<vmem>>) attributes {dimension_semantics = [#tpu.dimension_semantics<parallel>], iteration_bounds = array<i64: 2>, scalar_prefetch = 0 : i64, scratch_operands = 1 : i64, tpu.core_type = #tpu.core_type<tc>, window_params = [{transform_indices = @transform_0, window_bounds = array<i64: 1, 8, 128>}, {transform_indices = @transform_1, window_bounds = array<i64: 1, 8, 256>}, {transform_indices = @transform_2, window_bounds = array<i64: 1, 8, 128>}, {pipeline_mode = #tpu.pipeline_mode<synchronous>, transform_indices = @transform_3, window_bounds = array<i64: 128, 128>}, {pipeline_mode = #tpu.pipeline_mode<synchronous>, transform_indices = @transform_4, window_bounds = array<i64: 1, 128>}, {pipeline_mode = #tpu.pipeline_mode<synchronous>, transform_indices = @transform_5, window_bounds = array<i64: 1, 128>}, {pipeline_mode = #tpu.pipeline_mode<synchronous>, transform_indices = @transform_6, window_bounds = array<i64: 1, 128>}, {transform_indices = @transform_7, window_bounds = array<i64: 1, 8, 128>}]} {
    %c0 = arith.constant 0 : index
    %c0_0 = arith.constant 0 : index
    %c0_1 = arith.constant 0 : index
    %0 = vector.load %arg1[%c0, %c0_0, %c0_1] : memref<1x8x128xbf16, #tpu.memory_space<vmem>>, vector<1x8x128xbf16>
    %1 = vector.shape_cast %0 : vector<1x8x128xbf16> to vector<8x128xbf16>
    %c0_2 = arith.constant 0 : index
    %c0_3 = arith.constant 0 : index
    %c0_4 = arith.constant 0 : index
    %2 = vector.load %arg2[%c0_2, %c0_3, %c0_4] : memref<1x8x256xbf16, #tpu.memory_space<vmem>>, vector<1x8x256xbf16>
    %3 = vector.shape_cast %2 : vector<1x8x256xbf16> to vector<8x256xbf16>
    %4 = vector.extract_strided_slice %3 {offsets = [0, 0], sizes = [8, 128], strides = [1, 1]} : vector<8x256xbf16> to vector<8x128xbf16>
    %5 = vector.extract_strided_slice %3 {offsets = [0, 128], sizes = [8, 128], strides = [1, 1]} : vector<8x256xbf16> to vector<8x128xbf16>
    %6 = vector.extract_strided_slice %1 {offsets = [0, 0], sizes = [8, 32], strides = [1, 1]} : vector<8x128xbf16> to vector<8x32xbf16>
    %7 = vector.extract_strided_slice %4 {offsets = [0, 0], sizes = [8, 32], strides = [1, 1]} : vector<8x128xbf16> to vector<8x32xbf16>
    %8 = vector.extract_strided_slice %5 {offsets = [0, 0], sizes = [8, 32], strides = [1, 1]} : vector<8x128xbf16> to vector<8x32xbf16>
    %cst = arith.constant dense<0.000000e+00> : vector<8x8xf32>
    %9 = tpu.matmul %6, %7, %cst {dimension_numbers = #tpu.dot_dimension_numbers<[1], [1], [0], [0], [0, 0, 1, 0], [], []>} : vector<8x32xbf16>, vector<8x32xbf16>, vector<8x8xf32> -> vector<8x8xf32>
    %cst_5 = arith.constant 0.176776692 : f32
    %10 = vector.broadcast %cst_5 : f32 to vector<8x8xf32>
    %11 = arith.mulf %9, %10 : vector<8x8xf32>
    %cst_6 = arith.constant dense<0xFF800000> : vector<8xf32>
    %12 = vector.multi_reduction <maximumf>, %11, %cst_6 [1] : vector<8x8xf32> to vector<8xf32>
    %13 = vector.shape_cast %12 : vector<8xf32> to vector<8x1xf32>
    %14 = vector.broadcast %13 : vector<8x1xf32> to vector<8x8xf32>
    %15 = arith.subf %11, %14 : vector<8x8xf32>
    %16 = math.exp %15 : vector<8x8xf32>
    %cst_7 = arith.constant dense<0.000000e+00> : vector<8xf32>
    %17 = vector.multi_reduction <add>, %16, %cst_7 [1] : vector<8x8xf32> to vector<8xf32>
    %18 = vector.shape_cast %17 : vector<8xf32> to vector<8x1xf32>
    %19 = tpu.reciprocal %18 {approx = true} : vector<8x1xf32> -> vector<8x1xf32>
    %20 = vector.broadcast %19 : vector<8x1xf32> to vector<8x8xf32>
    %21 = arith.mulf %16, %20 : vector<8x8xf32>
    %22 = arith.truncf %21 : vector<8x8xf32> to vector<8x8xbf16>
    %cst_8 = arith.constant dense<0.000000e+00> : vector<8x32xf32>
    %23 = tpu.matmul %22, %8, %cst_8 {dimension_numbers = #tpu.dot_dimension_numbers<[1], [0], [0], [1], [0, 0, 1, 1], [], []>} : vector<8x8xbf16>, vector<8x32xbf16>, vector<8x32xf32> -> vector<8x32xf32>
    %c0_9 = arith.constant 0 : index
    %c0_10 = arith.constant 0 : index
    %24 = vector.load %arg9[%c0_9, %c0_10] : memref<8x128xf32, #tpu.memory_space<vmem>>, vector<8x32xf32>
    tpu.vector_store %arg9[%c0_9, %c0_10], %23 {strides = array<i32>} : memref<8x128xf32, #tpu.memory_space<vmem>>, vector<8x32xf32>,
    %25 = vector.extract_strided_slice %1 {offsets = [0, 32], sizes = [8, 32], strides = [1, 1]} : vector<8x128xbf16> to vector<8x32xbf16>
    %26 = vector.extract_strided_slice %4 {offsets = [0, 32], sizes = [8, 32], strides = [1, 1]} : vector<8x128xbf16> to vector<8x32xbf16>
    %27 = vector.extract_strided_slice %5 {offsets = [0, 32], sizes = [8, 32], strides = [1, 1]} : vector<8x128xbf16> to vector<8x32xbf16>
    %cst_11 = arith.constant dense<0.000000e+00> : vector<8x8xf32>
    %28 = tpu.matmul %25, %26, %cst_11 {dimension_numbers = #tpu.dot_dimension_numbers<[1], [1], [0], [0], [0, 0, 1, 0], [], []>} : vector<8x32xbf16>, vector<8x32xbf16>, vector<8x8xf32> -> vector<8x8xf32>
    %cst_12 = arith.constant 0.176776692 : f32
    %29 = vector.broadcast %cst_12 : f32 to vector<8x8xf32>
    %30 = arith.mulf %28, %29 : vector<8x8xf32>
    %cst_13 = arith.constant dense<0xFF800000> : vector<8xf32>
    %31 = vector.multi_reduction <maximumf>, %30, %cst_13 [1] : vector<8x8xf32> to vector<8xf32>
    %32 = vector.shape_cast %31 : vector<8xf32> to vector<8x1xf32>
    %33 = vector.broadcast %32 : vector<8x1xf32> to vector<8x8xf32>
    %34 = arith.subf %30, %33 : vector<8x8xf32>
    %35 = math.exp %34 : vector<8x8xf32>
    %cst_14 = arith.constant dense<0.000000e+00> : vector<8xf32>
    %36 = vector.multi_reduction <add>, %35, %cst_14 [1] : vector<8x8xf32> to vector<8xf32>
    %37 = vector.shape_cast %36 : vector<8xf32> to vector<8x1xf32>
    %38 = tpu.reciprocal %37 {approx = true} : vector<8x1xf32> -> vector<8x1xf32>
    %39 = vector.broadcast %38 : vector<8x1xf32> to vector<8x8xf32>
    %40 = arith.mulf %35, %39 : vector<8x8xf32>
    %41 = arith.truncf %40 : vector<8x8xf32> to vector<8x8xbf16>
    %cst_15 = arith.constant dense<0.000000e+00> : vector<8x32xf32>
    %42 = tpu.matmul %41, %27, %cst_15 {dimension_numbers = #tpu.dot_dimension_numbers<[1], [0], [0], [1], [0, 0, 1, 1], [], []>} : vector<8x8xbf16>, vector<8x32xbf16>, vector<8x32xf32> -> vector<8x32xf32>
    %c0_16 = arith.constant 0 : index
    %c32 = arith.constant 32 : index
    %43 = vector.load %arg9[%c0_16, %c32] : memref<8x128xf32, #tpu.memory_space<vmem>>, vector<8x32xf32>
    tpu.vector_store %arg9[%c0_16, %c32], %42 {strides = array<i32>} : memref<8x128xf32, #tpu.memory_space<vmem>>, vector<8x32xf32>,
    %44 = vector.extract_strided_slice %1 {offsets = [0, 64], sizes = [8, 32], strides = [1, 1]} : vector<8x128xbf16> to vector<8x32xbf16>
    %45 = vector.extract_strided_slice %4 {offsets = [0, 64], sizes = [8, 32], strides = [1, 1]} : vector<8x128xbf16> to vector<8x32xbf16>
    %46 = vector.extract_strided_slice %5 {offsets = [0, 64], sizes = [8, 32], strides = [1, 1]} : vector<8x128xbf16> to vector<8x32xbf16>
    %cst_17 = arith.constant dense<0.000000e+00> : vector<8x8xf32>
    %47 = tpu.matmul %44, %45, %cst_17 {dimension_numbers = #tpu.dot_dimension_numbers<[1], [1], [0], [0], [0, 0, 1, 0], [], []>} : vector<8x32xbf16>, vector<8x32xbf16>, vector<8x8xf32> -> vector<8x8xf32>
    %cst_18 = arith.constant 0.176776692 : f32
    %48 = vector.broadcast %cst_18 : f32 to vector<8x8xf32>
    %49 = arith.mulf %47, %48 : vector<8x8xf32>
    %cst_19 = arith.constant dense<0xFF800000> : vector<8xf32>
    %50 = vector.multi_reduction <maximumf>, %49, %cst_19 [1] : vector<8x8xf32> to vector<8xf32>
    %51 = vector.shape_cast %50 : vector<8xf32> to vector<8x1xf32>
    %52 = vector.broadcast %51 : vector<8x1xf32> to vector<8x8xf32>
    %53 = arith.subf %49, %52 : vector<8x8xf32>
    %54 = math.exp %53 : vector<8x8xf32>
    %cst_20 = arith.constant dense<0.000000e+00> : vector<8xf32>
    %55 = vector.multi_reduction <add>, %54, %cst_20 [1] : vector<8x8xf32> to vector<8xf32>
    %56 = vector.shape_cast %55 : vector<8xf32> to vector<8x1xf32>
    %57 = tpu.reciprocal %56 {approx = true} : vector<8x1xf32> -> vector<8x1xf32>
    %58 = vector.broadcast %57 : vector<8x1xf32> to vector<8x8xf32>
    %59 = arith.mulf %54, %58 : vector<8x8xf32>
    %60 = arith.truncf %59 : vector<8x8xf32> to vector<8x8xbf16>
    %cst_21 = arith.constant dense<0.000000e+00> : vector<8x32xf32>
    %61 = tpu.matmul %60, %46, %cst_21 {dimension_numbers = #tpu.dot_dimension_numbers<[1], [0], [0], [1], [0, 0, 1, 1], [], []>} : vector<8x8xbf16>, vector<8x32xbf16>, vector<8x32xf32> -> vector<8x32xf32>
    %c0_22 = arith.constant 0 : index
    %c64 = arith.constant 64 : index
    %62 = vector.load %arg9[%c0_22, %c64] : memref<8x128xf32, #tpu.memory_space<vmem>>, vector<8x32xf32>
    tpu.vector_store %arg9[%c0_22, %c64], %61 {strides = array<i32>} : memref<8x128xf32, #tpu.memory_space<vmem>>, vector<8x32xf32>,
    %63 = vector.extract_strided_slice %1 {offsets = [0, 96], sizes = [8, 32], strides = [1, 1]} : vector<8x128xbf16> to vector<8x32xbf16>
    %64 = vector.extract_strided_slice %4 {offsets = [0, 96], sizes = [8, 32], strides = [1, 1]} : vector<8x128xbf16> to vector<8x32xbf16>
    %65 = vector.extract_strided_slice %5 {offsets = [0, 96], sizes = [8, 32], strides = [1, 1]} : vector<8x128xbf16> to vector<8x32xbf16>
    %cst_23 = arith.constant dense<0.000000e+00> : vector<8x8xf32>
    %66 = tpu.matmul %63, %64, %cst_23 {dimension_numbers = #tpu.dot_dimension_numbers<[1], [1], [0], [0], [0, 0, 1, 0], [], []>} : vector<8x32xbf16>, vector<8x32xbf16>, vector<8x8xf32> -> vector<8x8xf32>
    %cst_24 = arith.constant 0.176776692 : f32
    %67 = vector.broadcast %cst_24 : f32 to vector<8x8xf32>
    %68 = arith.mulf %66, %67 : vector<8x8xf32>
    %cst_25 = arith.constant dense<0xFF800000> : vector<8xf32>
    %69 = vector.multi_reduction <maximumf>, %68, %cst_25 [1] : vector<8x8xf32> to vector<8xf32>
    %70 = vector.shape_cast %69 : vector<8xf32> to vector<8x1xf32>
    %71 = vector.broadcast %70 : vector<8x1xf32> to vector<8x8xf32>
    %72 = arith.subf %68, %71 : vector<8x8xf32>
    %73 = math.exp %72 : vector<8x8xf32>
    %cst_26 = arith.constant dense<0.000000e+00> : vector<8xf32>
    %74 = vector.multi_reduction <add>, %73, %cst_26 [1] : vector<8x8xf32> to vector<8xf32>
    %75 = vector.shape_cast %74 : vector<8xf32> to vector<8x1xf32>
    %76 = tpu.reciprocal %75 {approx = true} : vector<8x1xf32> -> vector<8x1xf32>
    %77 = vector.broadcast %76 : vector<8x1xf32> to vector<8x8xf32>
    %78 = arith.mulf %73, %77 : vector<8x8xf32>
    %79 = arith.truncf %78 : vector<8x8xf32> to vector<8x8xbf16>
    %cst_27 = arith.constant dense<0.000000e+00> : vector<8x32xf32>
    %80 = tpu.matmul %79, %65, %cst_27 {dimension_numbers = #tpu.dot_dimension_numbers<[1], [0], [0], [1], [0, 0, 1, 1], [], []>} : vector<8x8xbf16>, vector<8x32xbf16>, vector<8x32xf32> -> vector<8x32xf32>
    %c0_28 = arith.constant 0 : index
    %c96 = arith.constant 96 : index
    %81 = vector.load %arg9[%c0_28, %c96] : memref<8x128xf32, #tpu.memory_space<vmem>>, vector<8x32xf32>
    tpu.vector_store %arg9[%c0_28, %c96], %80 {strides = array<i32>} : memref<8x128xf32, #tpu.memory_space<vmem>>, vector<8x32xf32>,
    %c0_29 = arith.constant 0 : index
    %c0_30 = arith.constant 0 : index
    %c0_31 = arith.constant 0 : index
    %82 = vector.load %arg3[%c0_29, %c0_30, %c0_31] : memref<1x8x128xbf16, #tpu.memory_space<vmem>>, vector<1x8x128xbf16>
    %83 = vector.shape_cast %82 : vector<1x8x128xbf16> to vector<8x128xbf16>
    %c0_32 = arith.constant 0 : index
    %c0_33 = arith.constant 0 : index
    %84 = vector.load %arg9[%c0_32, %c0_33] : memref<8x128xf32, #tpu.memory_space<vmem>>, vector<8x128xf32>
    %85 = arith.truncf %84 : vector<8x128xf32> to vector<8x128xbf16>
    %c0_34 = arith.constant 0 : index
    %c0_35 = arith.constant 0 : index
    %86 = vector.load %arg4[%c0_34, %c0_35] : memref<128x128xbf16, #tpu.memory_space<vmem>>, vector<128x128xbf16>
    %cst_36 = arith.constant dense<0.000000e+00> : vector<8x128xf32>
    %87 = tpu.matmul %85, %86, %cst_36 {dimension_numbers = #tpu.dot_dimension_numbers<[1], [0], [0], [1], [0, 0, 1, 1], [], []>} : vector<8x128xbf16>, vector<128x128xbf16>, vector<8x128xf32> -> vector<8x128xf32>
    %c0_37 = arith.constant 0 : index
    %c0_38 = arith.constant 0 : index
    %88 = vector.load %arg5[%c0_37, %c0_38] : memref<1x128xf32, #tpu.memory_space<vmem>>, vector<1x128xf32>
    %89 = vector.broadcast %88 : vector<1x128xf32> to vector<8x128xf32>
    %90 = arith.addf %87, %89 : vector<8x128xf32>
    %91 = arith.extf %83 : vector<8x128xbf16> to vector<8x128xf32>
    %92 = arith.addf %90, %91 : vector<8x128xf32>
    %cst_39 = arith.constant dense<0.000000e+00> : vector<8xf32>
    %93 = vector.multi_reduction <add>, %92, %cst_39 [1] : vector<8x128xf32> to vector<8xf32>
    %94 = vector.shape_cast %93 : vector<8xf32> to vector<8x1xf32>
    %cst_40 = arith.constant 1.280000e+02 : f32
    %95 = vector.broadcast %cst_40 : f32 to vector<8x1xf32>
    %96 = arith.divf %94, %95 : vector<8x1xf32>
    %97 = vector.broadcast %96 : vector<8x1xf32> to vector<8x128xf32>
    %98 = arith.subf %92, %97 : vector<8x128xf32>
    %99 = arith.mulf %98, %98 : vector<8x128xf32>
    %cst_41 = arith.constant dense<0.000000e+00> : vector<8xf32>
    %100 = vector.multi_reduction <add>, %99, %cst_41 [1] : vector<8x128xf32> to vector<8xf32>
    %101 = vector.shape_cast %100 : vector<8xf32> to vector<8x1xf32>
    %cst_42 = arith.constant 1.280000e+02 : f32
    %102 = vector.broadcast %cst_42 : f32 to vector<8x1xf32>
    %103 = arith.divf %101, %102 : vector<8x1xf32>
    %cst_43 = arith.constant 9.99999974E-6 : f32
    %104 = vector.broadcast %cst_43 : f32 to vector<8x1xf32>
    %105 = arith.addf %103, %104 : vector<8x1xf32>
    %106 = math.rsqrt %105 : vector<8x1xf32>
    %107 = vector.broadcast %106 : vector<8x1xf32> to vector<8x128xf32>
    %108 = arith.mulf %98, %107 : vector<8x128xf32>
    %c0_44 = arith.constant 0 : index
    %c0_45 = arith.constant 0 : index
    %109 = vector.load %arg6[%c0_44, %c0_45] : memref<1x128xf32, #tpu.memory_space<vmem>>, vector<1x128xf32>
    %110 = vector.broadcast %109 : vector<1x128xf32> to vector<8x128xf32>
    %111 = arith.mulf %108, %110 : vector<8x128xf32>
    %c0_46 = arith.constant 0 : index
    %c0_47 = arith.constant 0 : index
    %112 = vector.load %arg7[%c0_46, %c0_47] : memref<1x128xf32, #tpu.memory_space<vmem>>, vector<1x128xf32>
    %113 = vector.broadcast %112 : vector<1x128xf32> to vector<8x128xf32>
    %114 = arith.addf %111, %113 : vector<8x128xf32>
    %115 = arith.truncf %114 : vector<8x128xf32> to vector<8x128xbf16>
    %c0_48 = arith.constant 0 : index
    %c0_49 = arith.constant 0 : index
    %c0_50 = arith.constant 0 : index
    %116 = vector.load %arg8[%c0_48, %c0_49, %c0_50] : memref<1x8x128xbf16, #tpu.memory_space<vmem>>, vector<1x8x128xbf16>
    %117 = vector.shape_cast %116 : vector<1x8x128xbf16> to vector<8x128xbf16>
    %118 = vector.shape_cast %115 : vector<8x128xbf16> to vector<1x8x128xbf16>
    tpu.vector_store %arg8[%c0_48, %c0_49, %c0_50], %118 {strides = array<i32>} : memref<1x8x128xbf16, #tpu.memory_space<vmem>>, vector<1x8x128xbf16>,
    return
  }
  func.func @transform_0(%arg0: i32) -> (i32, i32, i32) {
    %c0_i32 = arith.constant 0 : i32
    %c0_i32_0 = arith.constant 0 : i32
    %c0_i32_1 = arith.constant 0 : i32
    return %arg0, %c0_i32, %c0_i32_0 : i32, i32, i32
  }
  func.func @transform_1(%arg0: i32) -> (i32, i32, i32) {
    %c0_i32 = arith.constant 0 : i32
    %c0_i32_0 = arith.constant 0 : i32
    %c0_i32_1 = arith.constant 0 : i32
    return %arg0, %c0_i32, %c0_i32_0 : i32, i32, i32
  }
  func.func @transform_2(%arg0: i32) -> (i32, i32, i32) {
    %c0_i32 = arith.constant 0 : i32
    %c0_i32_0 = arith.constant 0 : i32
    %c0_i32_1 = arith.constant 0 : i32
    return %arg0, %c0_i32, %c0_i32_0 : i32, i32, i32
  }
  func.func @transform_3(%arg0: i32) -> (i32, i32) {
    %c0_i32 = arith.constant 0 : i32
    %c0_i32_0 = arith.constant 0 : i32
    %c0_i32_1 = arith.constant 0 : i32
    return %c0_i32, %c0_i32_0 : i32, i32
  }
  func.func @transform_4(%arg0: i32) -> (i32, i32) {
    %c0_i32 = arith.constant 0 : i32
    %c0_i32_0 = arith.constant 0 : i32
    %c0_i32_1 = arith.constant 0 : i32
    return %c0_i32, %c0_i32_0 : i32, i32
  }
  func.func @transform_5(%arg0: i32) -> (i32, i32) {
    %c0_i32 = arith.constant 0 : i32
    %c0_i32_0 = arith.constant 0 : i32
    %c0_i32_1 = arith.constant 0 : i32
    return %c0_i32, %c0_i32_0 : i32, i32
  }
  func.func @transform_6(%arg0: i32) -> (i32, i32) {
    %c0_i32 = arith.constant 0 : i32
    %c0_i32_0 = arith.constant 0 : i32
    %c0_i32_1 = arith.constant 0 : i32
    return %c0_i32, %c0_i32_0 : i32, i32
  }
  func.func @transform_7(%arg0: i32) -> (i32, i32, i32) {
    %c0_i32 = arith.constant 0 : i32
    %c0_i32_0 = arith.constant 0 : i32
    %c0_i32_1 = arith.constant 0 : i32
    return %arg0, %c0_i32, %c0_i32_0 : i32, i32, i32
  }
}

module attributes {stable_mosaic.version = 11 : i64} {
  func.func @_ln_head_kernel(%arg0: i32, %arg1: memref<8x128xbf16, #tpu.memory_space<vmem>>, %arg2: memref<1x128xf32, #tpu.memory_space<vmem>>, %arg3: memref<1x128xf32, #tpu.memory_space<vmem>>, %arg4: memref<128x4xbf16, #tpu.memory_space<vmem>>, %arg5: memref<1x4xf32, #tpu.memory_space<vmem>>, %arg6: memref<8x4xf32, #tpu.memory_space<vmem>>) attributes {dimension_semantics = [#tpu.dimension_semantics<parallel>], iteration_bounds = array<i64: 2>, scalar_prefetch = 0 : i64, scratch_operands = 0 : i64, tpu.core_type = #tpu.core_type<tc>, window_params = [{transform_indices = @transform_0, window_bounds = array<i64: 8, 128>}, {pipeline_mode = #tpu.pipeline_mode<synchronous>, transform_indices = @transform_1, window_bounds = array<i64: 1, 128>}, {pipeline_mode = #tpu.pipeline_mode<synchronous>, transform_indices = @transform_2, window_bounds = array<i64: 1, 128>}, {pipeline_mode = #tpu.pipeline_mode<synchronous>, transform_indices = @transform_3, window_bounds = array<i64: 128, 4>}, {pipeline_mode = #tpu.pipeline_mode<synchronous>, transform_indices = @transform_4, window_bounds = array<i64: 1, 4>}, {transform_indices = @transform_5, window_bounds = array<i64: 8, 4>}]} {
    %c0 = arith.constant 0 : index
    %c0_0 = arith.constant 0 : index
    %0 = vector.load %arg1[%c0, %c0_0] : memref<8x128xbf16, #tpu.memory_space<vmem>>, vector<8x128xbf16>
    %1 = arith.extf %0 : vector<8x128xbf16> to vector<8x128xf32>
    %cst = arith.constant dense<0.000000e+00> : vector<8xf32>
    %2 = vector.multi_reduction <add>, %1, %cst [1] : vector<8x128xf32> to vector<8xf32>
    %3 = vector.shape_cast %2 : vector<8xf32> to vector<8x1xf32>
    %cst_1 = arith.constant 1.280000e+02 : f32
    %4 = vector.broadcast %cst_1 : f32 to vector<8x1xf32>
    %5 = arith.divf %3, %4 : vector<8x1xf32>
    %6 = vector.broadcast %5 : vector<8x1xf32> to vector<8x128xf32>
    %7 = arith.subf %1, %6 : vector<8x128xf32>
    %8 = arith.mulf %7, %7 : vector<8x128xf32>
    %cst_2 = arith.constant dense<0.000000e+00> : vector<8xf32>
    %9 = vector.multi_reduction <add>, %8, %cst_2 [1] : vector<8x128xf32> to vector<8xf32>
    %10 = vector.shape_cast %9 : vector<8xf32> to vector<8x1xf32>
    %cst_3 = arith.constant 1.280000e+02 : f32
    %11 = vector.broadcast %cst_3 : f32 to vector<8x1xf32>
    %12 = arith.divf %10, %11 : vector<8x1xf32>
    %cst_4 = arith.constant 9.99999974E-6 : f32
    %13 = vector.broadcast %cst_4 : f32 to vector<8x1xf32>
    %14 = arith.addf %12, %13 : vector<8x1xf32>
    %15 = math.rsqrt %14 : vector<8x1xf32>
    %16 = vector.broadcast %15 : vector<8x1xf32> to vector<8x128xf32>
    %17 = arith.mulf %7, %16 : vector<8x128xf32>
    %c0_5 = arith.constant 0 : index
    %c0_6 = arith.constant 0 : index
    %18 = vector.load %arg2[%c0_5, %c0_6] : memref<1x128xf32, #tpu.memory_space<vmem>>, vector<1x128xf32>
    %19 = vector.broadcast %18 : vector<1x128xf32> to vector<8x128xf32>
    %20 = arith.mulf %17, %19 : vector<8x128xf32>
    %c0_7 = arith.constant 0 : index
    %c0_8 = arith.constant 0 : index
    %21 = vector.load %arg3[%c0_7, %c0_8] : memref<1x128xf32, #tpu.memory_space<vmem>>, vector<1x128xf32>
    %22 = vector.broadcast %21 : vector<1x128xf32> to vector<8x128xf32>
    %23 = arith.addf %20, %22 : vector<8x128xf32>
    %24 = arith.truncf %23 : vector<8x128xf32> to vector<8x128xbf16>
    %c0_9 = arith.constant 0 : index
    %c0_10 = arith.constant 0 : index
    %25 = vector.load %arg4[%c0_9, %c0_10] : memref<128x4xbf16, #tpu.memory_space<vmem>>, vector<128x4xbf16>
    %cst_11 = arith.constant dense<0.000000e+00> : vector<8x4xf32>
    %26 = tpu.matmul %24, %25, %cst_11 {dimension_numbers = #tpu.dot_dimension_numbers<[1], [0], [0], [1], [0, 0, 1, 1], [], []>} : vector<8x128xbf16>, vector<128x4xbf16>, vector<8x4xf32> -> vector<8x4xf32>
    %c0_12 = arith.constant 0 : index
    %c0_13 = arith.constant 0 : index
    %27 = vector.load %arg5[%c0_12, %c0_13] : memref<1x4xf32, #tpu.memory_space<vmem>>, vector<1x4xf32>
    %28 = vector.broadcast %27 : vector<1x4xf32> to vector<8x4xf32>
    %29 = arith.addf %26, %28 : vector<8x4xf32>
    %c0_14 = arith.constant 0 : index
    %c0_15 = arith.constant 0 : index
    %30 = vector.load %arg6[%c0_14, %c0_15] : memref<8x4xf32, #tpu.memory_space<vmem>>, vector<8x4xf32>
    tpu.vector_store %arg6[%c0_14, %c0_15], %29 {strides = array<i32>} : memref<8x4xf32, #tpu.memory_space<vmem>>, vector<8x4xf32>,
    return
  }
  func.func @transform_0(%arg0: i32) -> (i32, i32) {
    %c0_i32 = arith.constant 0 : i32
    %c0_i32_0 = arith.constant 0 : i32
    return %arg0, %c0_i32 : i32, i32
  }
  func.func @transform_1(%arg0: i32) -> (i32, i32) {
    %c0_i32 = arith.constant 0 : i32
    %c0_i32_0 = arith.constant 0 : i32
    %c0_i32_1 = arith.constant 0 : i32
    return %c0_i32, %c0_i32_0 : i32, i32
  }
  func.func @transform_2(%arg0: i32) -> (i32, i32) {
    %c0_i32 = arith.constant 0 : i32
    %c0_i32_0 = arith.constant 0 : i32
    %c0_i32_1 = arith.constant 0 : i32
    return %c0_i32, %c0_i32_0 : i32, i32
  }
  func.func @transform_3(%arg0: i32) -> (i32, i32) {
    %c0_i32 = arith.constant 0 : i32
    %c0_i32_0 = arith.constant 0 : i32
    %c0_i32_1 = arith.constant 0 : i32
    return %c0_i32, %c0_i32_0 : i32, i32
  }
  func.func @transform_4(%arg0: i32) -> (i32, i32) {
    %c0_i32 = arith.constant 0 : i32
    %c0_i32_0 = arith.constant 0 : i32
    %c0_i32_1 = arith.constant 0 : i32
    return %c0_i32, %c0_i32_0 : i32, i32
  }
  func.func @transform_5(%arg0: i32) -> (i32, i32) {
    %c0_i32 = arith.constant 0 : i32
    %c0_i32_0 = arith.constant 0 : i32
    return %arg0, %c0_i32 : i32, i32
  }
}

</mosaic_0001>

<bundles_post_ra>
// kernel: seq2seq_transformer_forward.24
= control target key start
LH: loop header
LB: loop body
LE: loop exit
PB: predicated region body
PF: predicated region fallthrough
CT: control target
= control target key end

     0   :  { %s639_s12 = smov 0   ;;  %s739_s0 = inlined_call_operand.vmem [shape: bf16[16,128], index: 0, kind: input, shape index: {}]   ;;  %s740_s1 = inlined_call_operand.vmem [shape: bf16[128,384], index: 1, kind: input, shape index: {}]   ;;  %s741_s2 = inlined_call_operand.vmem [shape: f32[1,384], index: 2, kind: input, shape index: {}]   ;;  %s742_s3 = inlined_call_operand.vmem [shape: bf16[16,384], index: 3, kind: output, shape index: {}]  }
   0x1 LB: > { %s498_s13 = sadd.s32 4294967295, %s614_s12   ;;  %p502_p0 = scmp.ge.s32.totalorder %s614_s12, 1  ;;  %s614_s12 = sphi %s639_s12, %s13_s12  }
   0x2   : > { %p136_p1 = scmp.lt.s32.totalorder %s614_s12, 3 }
   0x4   : > { %p137_p2 = pnand %p502_p0, %p136_p1 }
   0x5   : > { %v576_v0 = vld [vmem:[%s740_s1 + $0x4] ss:$12 sps:$4 sm:$0xff] (!%p137_p2)   ;;  %v616_v1 = vmov (!%p137_p2), 0.0   ;;  %v578_v2 = vld [vmem:[%s740_s1 + $0x8] ss:$12 sps:$4 sm:$0xff] (!%p137_p2)   ;;  %vm617_vm0 = vmmov (!%p137_p2), 0   ;;  %v204_v27 = vlaneseq (!%p137_p2) }
   0x6   : > { %140 = sbr.rel (%p137_p2) target bundleno = 257 (0x101), region = 32  ;;  %544 = vmatprep.subr.bf16.mxu1 (!%p137_p2), %v616_v1  ;;  %560 = vmatprep.mubr.msk.bf16.mxu1 (!%p137_p2), %vm617_vm0, %v616_v1  ;;  %v579_v3 = vld [vmem:[%s740_s1] ss:$12 sps:$4 sm:$0xff] (!%p137_p2)   ;;  %v580_v4 = vld [vmem:[%s740_s1 + $0x1c] ss:$12 sps:$4 sm:$0xff] (!%p137_p2)   ;;  %v618_v5 = vmov (!%p137_p2), 0  }
   0x7   : > { %347 = vmatprep.subr.bf16.mxu0 (!%p137_p2), %v576_v0  ;;  %545 = vmatpush3.bf16.msra.mxu1 (!%p137_p2), %v578_v2  ;;  %v582_v6 = vld [vmem:[%s740_s1 + $0x20] ss:$12 sps:$4 sm:$0xff] (!%p137_p2)   ;;  %v583_v7 = vld [vmem:[%s740_s1 + $0x18] ss:$12 sps:$4 sm:$0xff] (!%p137_p2)   ;;  %v587_v10 = vld [vmem:[%s740_s1 + $0x30] ss:$12 sps:$4 sm:$0xff] (!%p137_p2)  }
   0x8   : > { %379 = vmatprep.mubr.bf16.mxu0 (!%p137_p2), %v618_v5  ;;  %348 = vmatpush1.bf16.msra.mxu0 (!%p137_p2), %v579_v3  ;;  %v584_v8 = vld [vmem:[%s740_s1 + $0x34] ss:$12 sps:$4 sm:$0xff] (!%p137_p2)   ;;  %v586_v9 = vld [vmem:[%s740_s1 + $0x38] ss:$12 sps:$4 sm:$0xff] (!%p137_p2)   ;;  %v590_v12 = vld [vmem:[%s740_s1 + $0x50] ss:$12 sps:$4 sm:$0xff] (!%p137_p2)  }
   0x9   : > { %546 = vmatprep.subr.bf16.mxu1 (!%p137_p2), %v616_v1  ;;  %349 = vmatprep.subr.bf16.mxu0 (!%p137_p2), %v580_v4  ;;  %v588_v11 = vld [vmem:[%s740_s1 + $0x4c] ss:$12 sps:$4 sm:$0xff] (!%p137_p2)   ;;  %v591_v13 = vld [vmem:[%s740_s1 + $0x48] ss:$12 sps:$4 sm:$0xff] (!%p137_p2)   ;;  %v592_v14 = vld [vmem:[%s740_s1 + $0x64] ss:$12 sps:$4 sm:$0xff] (!%p137_p2)  }
   0xa   : > { %v594_v15 = vld [vmem:[%s740_s1 + $0x68] ss:$12 sps:$4 sm:$0xff] (!%p137_p2)   ;;  %v595_v16 = vld [vmem:[%s740_s1 + $0x60] ss:$12 sps:$4 sm:$0xff] (!%p137_p2)   ;;  %p159_p3 = scmp.lt.s32.totalorder (!%p137_p2), %s498_s13, 1  ;;  %v205_v28 = vshrl.u32 (!%p137_p2), %v204_v27, 7 }
   0xb   : > { %547 = vmatpush3.bf16.msra.mxu1 (!%p137_p2), %v582_v6  ;;  %v596_v17 = vld [vmem:[%s740_s1 + $0x7c] ss:$12 sps:$4 sm:$0xff] (!%p137_p2)   ;;  %v598_v18 = vld [vmem:[%s740_s1 + $0x80] ss:$12 sps:$4 sm:$0xff] (!%p137_p2)   ;;  %v599_v19 = vld [vmem:[%s740_s1 + $0x78] ss:$12 sps:$4 sm:$0xff] (!%p137_p2)  }
   0xc   : > { %350 = vmatpush1.bf16.msra.mxu0 (!%p137_p2), %v583_v7  ;;  %548 = vmatprep.subr.bf16.mxu1 (!%p137_p2), %v616_v1  ;;  %v600_v20 = vld [vmem:[%s740_s1 + $0x94] ss:$12 sps:$4 sm:$0xff] (!%p137_p2)   ;;  %v602_v21 = vld [vmem:[%s740_s1 + $0x98] ss:$12 sps:$4 sm:$0xff] (!%p137_p2)   ;;  %v603_v22 = vld [vmem:[%s740_s1 + $0x90] ss:$12 sps:$4 sm:$0xff] (!%p137_p2)  }
   0xd   : > { %351 = vmatprep.subr.bf16.mxu0 %v584_v8  ;;  %s744_s13 = smov (!%p159_p3, %s498_s13), 1  ;;  %v604_v23 = vld [vmem:[%s740_s1 + $0xac] ss:$12 sps:$4 sm:$0xff]   ;;  %v606_v24 = vld [vmem:[%s740_s1 + $0xb0] ss:$12 sps:$4 sm:$0xff]   ;;  %v214_v29 = vsub.s32 2, %v205_v28 }
   0xe   : > { %s503_s6 = sshll.u32 %s744_s13, 2  ;;  %v607_v25 = vld [vmem:[%s740_s1 + $0xa8] ss:$12 sps:$4 sm:$0xff]   ;;  %v202_v30 = vld [vmem:[%s741_s2] sm:$0x7]  ;;  %v206_v31 = vsub.s32 0, %v205_v28 }
   0xf   : > { %549 = vmatpush3.bf16.msra.mxu1 %v586_v9  ;;  %s162_s15 = scalar_lea.vmem %s739_s0, %s503_s6  ;;  %v210_v32 = vsub.s32 1, %v205_v28  ;;  %v215_v33 = vrot.slane %v202_v30, %v214_v29  ;;  %s564_s18 = smul.u32 12, %s744_s13 }
  0x10   : > { %352 = vmatpush1.bf16.msra.mxu0 %v587_v10  ;;  %550 = vmatprep.subr.bf16.mxu1 %v616_v1  ;;  %v169_v26 = vld [vmem:[%s162_s15] sm:$0xf]  ;;  %v207_v34 = vrot.slane %v202_v30, %v206_v31 }
  0x11   : > { %353 = vmatprep.subr.bf16.mxu0 %v588_v11  ;;  %v211_v35 = vrot.slane %v202_v30, %v210_v32  ;;  %s167_s21 = scalar_lea.vmem %s742_s3, %s564_s18 }
  0x13   : > { %551 = vmatpush3.bf16.msra.mxu1 %v590_v12 }
  0x14   : > { %354 = vmatpush1.bf16.msra.mxu0 %v591_v13  ;;  %552 = vmatprep.subr.bf16.mxu1 %v616_v1 }
  0x15   : > { %355 = vmatprep.subr.bf16.mxu0 %v592_v14 }
  0x17   : > { %553 = vmatpush3.bf16.msra.mxu1 %v594_v15 }
  0x18   : > { %356 = vmatpush1.bf16.msra.mxu0 %v595_v16  ;;  %554 = vmatprep.subr.bf16.mxu1 %v616_v1 }
  0x19   : > { %357 = vmatprep.subr.bf16.mxu0 %v596_v17 }
  0x1b   : > { %555 = vmatpush3.bf16.msra.mxu1 %v598_v18 }
  0x1c   : > { %358 = vmatpush1.bf16.msra.mxu0 %v599_v19  ;;  %556 = vmatprep.subr.bf16.mxu1 %v616_v1 }
  0x1d   : > { %359 = vmatprep.subr.bf16.mxu0 %v600_v20 }
  0x1f   : > { %557 = vmatpush3.bf16.msra.mxu1 %v602_v21 }
  0x20   : > { %360 = vmatpush1.bf16.msra.mxu0 %v603_v22  ;;  %558 = vmatprep.subr.bf16.mxu1 %v616_v1 }
  0x21   : > { %361 = vmatprep.subr.bf16.mxu0 %v604_v23 }
  0x23   : > { %559 = vmatpush3.bf16.msra.mxu1 %v606_v24 }
  0x24   : > { %362 = vmatpush1.bf16.msra.mxu0 %v607_v25 }
  0x26   : > { %561 = vmatmul.mubr.bf16.vlgmr.msra.gmra.mrb[0].mxu1 %v169_v26 }
  0x27   : > { %380 = vmatmul.mubr.bf16.vlgmr.msra.gmra.mrb[0].mxu0 %v169_v26 }
  0xf9   : > { %v422_v36 = vpop.f32.mrb[0].mxu1 }
  0xfa   : > { %v423_v37 = vadd.f32 %v422_v36, %v215_v33  ;;  %v381_v38 = vpop.f32.mrb[0].mxu0  ;;  %v562_v39 = vpop.f32.mrb[1].mxu1 }
  0xfb   : > { %v382_v40 = vadd.f32 %v381_v38, %v207_v34  ;;  %v383_v41 = vpop.f32.mrb[1].mxu0  ;;  %v425_v42 = vpop.f32.mrb[2].mxu1 }
  0xfc   : > { %v534_v43 = vpack.c.bf16 %v423_v37, %v423_v37  ;;  %v384_v44 = vadd.f32 %v383_v41, %v211_v35  ;;  %v385_v45 = vpop.f32.mrb[2].mxu0  ;;  %v563_v46 = vpop.f32.mrb[3].mxu1 }
  0xfd   : > { %v386_v47 = vpop.f32.mrb[3].mxu0 }
  0xfe   : > { %442 = vst [vmem:[%s167_s21 + $0x8] sm:$0xf] %v534_v43  ;;  %v533_v48 = vpack.c.bf16 %v384_v44, %v382_v40 }
 0x100   : > { %441 = vst [vmem:[%s167_s21] sm:$0xff] %v533_v48 }
 0x101 PF: > { %s13_s12 = sadd.s32 1, %s614_s12  }
 0x102   : > { %p10_p4 = scmp.ge.s32.totalorder %s13_s12, 4  }
 0x104   :  { %12 = sbr.rel (!%p10_p4) target bundleno = 1 (0x1), region = 62 }

// kernel: seq2seq_transformer_forward.22
= control target key start
LH: loop header
LB: loop body
LE: loop exit
PB: predicated region body
PF: predicated region fallthrough
CT: control target
= control target key end

     0   :  { %s457_s12 = smov 0   ;;  %s459_s13 = smov 0   ;;  %s496_s0 = inlined_call_operand.vmem [shape: bf16[2,8,12], index: 0, kind: input, shape index: {}]   ;;  %s497_s1 = inlined_call_operand.vmem [shape: bf16[12,128], index: 1, kind: input, shape index: {}]   ;;  %s498_s2 = inlined_call_operand.vmem [shape: f32[8,128], index: 2, kind: input, shape index: {}]   ;;  %s499_s3 = inlined_call_operand.vmem [shape: bf16[2,8,128], index: 3, kind: output, shape index: {}]  }
   0x1   :  { %s461_s14 = smov 0  }
   0x2 LB: > { %s25_s15 = sadd.s32 1, %s429_s13  ;;  %p369_p0 = scmp.ge.s32.totalorder %s433_s14, 1  ;;  %s433_s14 = sphi %s461_s14, %s13_s14   ;;  %s429_s13 = sphi %s459_s13, %s501_s13   ;;  %s425_s12 = sphi %s457_s12, %s500_s12  }
   0x3   : > { %p27_p1 = scmp.ge.s32.totalorder %s25_s15, 2  ;;  %p164_p2 = scmp.lt.s32.totalorder %s433_s14, 3 }
   0x5   : > { %s503_s15 = smov (%p27_p1, %s25_s15), 0  ;;  %p165_p3 = pnand %p369_p0, %p164_p2 }
   0x6   : > { %vm228_vm0 = vcmask (!%p165_p3), 1045504   ;;  %v435_v0 = vmov (!%p165_p3), 0.0   ;;  %v410_v1 = vld [vmem:[%s497_s1] sm:$0x3f] (!%p165_p3)   ;;  %p196_p4 = scmp.lt.s32.totalorder (!%p165_p3), %s425_s12, 1  ;;  %vm436_vm1 = vmmov (!%p165_p3), 0  }
   0x7   : > { %168 = sbr.rel (%p165_p3) target bundleno = 235 (0xeb), region = 32  ;;  %378 = vmatprep.subr.bf16.mxu0 (!%p165_p3), %v435_v0  ;;  %380 = vmatprep.mubr.msk.bf16.mxu0 (!%p165_p3), %vm436_vm1, %v435_v0  ;;  %v230_v2 = vsel (!%p165_p3), %vm228_vm0, %v410_v1, 0  ;;  %vm224_vm2 = vcmask (!%p165_p3), 97280   ;;  %v218_v4 = vld [vmem:[%s498_s2] sm:$0xff] (!%p165_p3) }
   0x8   : > { %379 = vmatpush3.bf16.msra.mxu0 (!%p165_p3), %v230_v2 }
   0xe   : > { %s505_s12 = smov (!%p196_p4, %s425_s12), 1 }
   0xf   : > { %s370_s18 = sshll.u32 %s505_s12, 2 }
  0x10   : > { %s202_s21 = scalar_lea.vmem %s496_s0, %s370_s18  ;;  %s213_s26 = scalar_lea.vmem %s499_s3, %s370_s18 }
  0x11   : > { %v215_v3 = vld [vmem:[%s202_s21] sm:$0xf] }
  0x12   : > { %381 = vmatmul.mubr.msk.bf16.vlgmr.msra.gmra.mrb[0].mxu0 %vm224_vm2, %v215_v3 }
  0xe5   : > { %v266_v5 = vpop.f32.mrb[0].mxu0 }
  0xe6   : > { %v267_v6 = vadd.f32 %v266_v5, %v218_v4  ;;  %v382_v7 = vpop.f32.mrb[1].mxu0 }
  0xe7   : > { %v269_v8 = vpop.f32.mrb[2].mxu0 }
  0xe8   : > { %v272_v9 = vpack.c.bf16 %v267_v6, %v267_v6  ;;  %v383_v10 = vpop.f32.mrb[3].mxu0 }
  0xea   : > { %273 = vst [vmem:[%s213_s26] sm:$0xf] %v272_v9 }
  0xeb PF: > { %s13_s14 = sadd.s32 1, %s433_s14   ;;  %s500_s12 = smov %s429_s13 }
  0xec   : > { %p10_p5 = scmp.ge.s32.totalorder %s13_s14, 4   ;;  %s501_s13 = smov %s503_s15 }
  0xee   :  { %12 = sbr.rel (!%p10_p5) target bundleno = 2 (0x2), region = 65 }

// kernel: seq2seq_transformer_forward.26
= control target key start
LH: loop header
LB: loop body
LE: loop exit
PB: predicated region body
PF: predicated region fallthrough
CT: control target
= control target key end

     0   :  { %s855_s24 = smov 0   ;;  %s991_s0 = inlined_call_operand.vmem [shape: bf16[16,128], index: 0, kind: input, shape index: {}]   ;;  %s992_s1 = inlined_call_operand.vmem [shape: bf16[128,256], index: 1, kind: input, shape index: {}]   ;;  %s993_s2 = inlined_call_operand.vmem [shape: f32[1,256], index: 2, kind: input, shape index: {}]   ;;  %s994_s3 = inlined_call_operand.vmem [shape: bf16[256,128], index: 3, kind: input, shape index: {}]   ;;  %s995_s4 = inlined_call_operand.vmem [shape: f32[1,128], index: 4, kind: input, shape index: {}]   ;;  %s996_s5 = inlined_call_operand.vmem [shape: f32[1,128], index: 5, kind: input, shape index: {}]   ;;  %s997_s6 = inlined_call_operand.vmem [shape: f32[1,128], index: 6, kind: input, shape index: {}]   ;;  %s998_s7 = inlined_call_operand.vmem [shape: bf16[16,128], index: 7, kind: output, shape index: {}]  }
   0x1 LB: > { %s689_s25 = sadd.s32 4294967295, %s812_s24   ;;  %p693_p0 = scmp.ge.s32.totalorder %s812_s24, 1  ;;  %s812_s24 = sphi %s855_s24, %s17_s24  }
   0x2   : > { %p236_p1 = scmp.lt.s32.totalorder %s812_s24, 3 }
   0x4   : > { %p237_p2 = pnand %p693_p0, %p236_p1 }
   0x5   : > { %v764_v0 = vld [vmem:[%s992_s1 + $0x4] ss:$8 sps:$4 sm:$0xff] (!%p237_p2)   ;;  %v766_v1 = vld [vmem:[%s992_s1] ss:$8 sps:$4 sm:$0xff] (!%p237_p2)   ;;  %v814_v2 = vmov (!%p237_p2), 0   ;;  %p266_p3 = scmp.lt.s32.totalorder (!%p237_p2), %s689_s25, 1  ;;  %v294_v34 = vlaneseq (!%p237_p2) }
   0x6   : > { %240 = sbr.rel (%p237_p2) target bundleno = 791 (0x317), region = 48  ;;  %416 = vmatprep.mubr.bf16.mxu0 (!%p237_p2), %v814_v2  ;;  %384 = vmatprep.subr.bf16.mxu0 (!%p237_p2), %v764_v0  ;;  %v767_v3 = vld [vmem:[%s992_s1 + $0x14] ss:$8 sps:$4 sm:$0xff] (!%p237_p2)   ;;  %v769_v4 = vld [vmem:[%s992_s1 + $0x10] ss:$8 sps:$4 sm:$0xff] (!%p237_p2)   ;;  %v788_v10 = vld [vmem:[%s994_s3 + $0x40] sm:$0xff] (!%p237_p2)  }
   0x7   : > { %385 = vmatpush1.bf16.msra.mxu0 (!%p237_p2), %v766_v1  ;;  %v770_v5 = vld [vmem:[%s992_s1 + $0x24] ss:$8 sps:$4 sm:$0xff] (!%p237_p2)   ;;  %v772_v6 = vld [vmem:[%s992_s1 + $0x20] ss:$8 sps:$4 sm:$0xff] (!%p237_p2)   ;;  %v773_v7 = vld [vmem:[%s992_s1 + $0x34] ss:$8 sps:$4 sm:$0xff] (!%p237_p2)   ;;  %733 = vmatprep.subr.bf16.mxu1 (!%p237_p2), %v788_v10 }
   0x8   : > { %386 = vmatprep.subr.bf16.mxu0 (!%p237_p2), %v767_v3  ;;  %v775_v8 = vld [vmem:[%s992_s1 + $0x30] ss:$8 sps:$4 sm:$0xff] (!%p237_p2)   ;;  %v776_v9 = vld [vmem:[%s992_s1 + $0x44] ss:$8 sps:$4 sm:$0xff] (!%p237_p2)   ;;  %v778_v12 = vld [vmem:[%s992_s1 + $0x40] ss:$8 sps:$4 sm:$0xff] (!%p237_p2)  }
   0x9   : > { %v789_v11 = vld [vmem:[%s994_s3] sm:$0xff] (!%p237_p2)   ;;  %v790_v13 = vld [vmem:[%s994_s3 + $0x48] sm:$0xff] (!%p237_p2)   ;;  %v792_v15 = vld [vmem:[%s994_s3 + $0x50] sm:$0xff] (!%p237_p2)   ;;  %v295_v35 = vshrl.u32 (!%p237_p2), %v294_v34, 7 }
   0xa   : > { %734 = vmatpush3.bf16.msra.mxu1 (!%p237_p2), %v789_v11  ;;  %v791_v14 = vld [vmem:[%s994_s3 + $0x8] sm:$0xff] (!%p237_p2)   ;;  %v779_v16 = vld [vmem:[%s992_s1 + $0x54] ss:$8 sps:$4 sm:$0xff] (!%p237_p2)   ;;  %v781_v17 = vld [vmem:[%s992_s1 + $0x50] ss:$8 sps:$4 sm:$0xff] (!%p237_p2)  }
   0xb   : > { %387 = vmatpush1.bf16.msra.mxu0 (!%p237_p2), %v769_v4  ;;  %735 = vmatprep.subr.bf16.mxu1 (!%p237_p2), %v790_v13  ;;  %v793_v18 = vld [vmem:[%s994_s3 + $0x10] sm:$0xff] (!%p237_p2)   ;;  %v794_v19 = vld [vmem:[%s994_s3 + $0x58] sm:$0xff] (!%p237_p2)   ;;  %v782_v20 = vld [vmem:[%s992_s1 + $0x64] ss:$8 sps:$4 sm:$0xff] (!%p237_p2)   ;;  %v296_v36 = vsub.s32 (!%p237_p2), 0, %v295_v35  ;;  %v300_v38 = vsub.s32 (!%p237_p2), 1, %v295_v35 }
   0xc   : > { %388 = vmatprep.subr.bf16.mxu0 (!%p237_p2), %v770_v5  ;;  %v784_v21 = vld [vmem:[%s992_s1 + $0x60] ss:$8 sps:$4 sm:$0xff] (!%p237_p2)   ;;  %v785_v22 = vld [vmem:[%s992_s1 + $0x74] ss:$8 sps:$4 sm:$0xff] (!%p237_p2)   ;;  %v787_v26 = vld [vmem:[%s992_s1 + $0x70] ss:$8 sps:$4 sm:$0xff] (!%p237_p2)  }
   0xd   : > { %s1000_s25 = smov (!%p266_p3, %s689_s25), 1  ;;  %v795_v23 = vld [vmem:[%s994_s3 + $0x18] sm:$0xff]   ;;  %v796_v24 = vld [vmem:[%s994_s3 + $0x60] sm:$0xff]   ;;  %v798_v27 = vld [vmem:[%s994_s3 + $0x68] sm:$0xff]  }
   0xe   : > { %736 = vmatpush3.bf16.msra.mxu1 %v791_v14  ;;  %s694_s30 = sshll.u32 %s1000_s25, 2  ;;  %v797_v25 = vld [vmem:[%s994_s3 + $0x20] sm:$0xff]   ;;  %v799_v28 = vld [vmem:[%s994_s3 + $0x28] sm:$0xff]   ;;  %v800_v30 = vld [vmem:[%s994_s3 + $0x70] sm:$0xff]  }
   0xf   : > { %389 = vmatpush1.bf16.msra.mxu0 %v772_v6  ;;  %737 = vmatprep.subr.bf16.mxu1 %v792_v15  ;;  %s269_s18 = scalar_lea.vmem %s991_s0, %s694_s30  ;;  %v801_v31 = vld [vmem:[%s994_s3 + $0x30] sm:$0xff]   ;;  %v802_v32 = vld [vmem:[%s994_s3 + $0x78] sm:$0xff]   ;;  %v292_v37 = vld [vmem:[%s993_s2] sm:$0x3]  ;;  %s273_s19 = scalar_lea.vmem %s998_s7, %s694_s30 }
  0x10   : > { %390 = vmatprep.subr.bf16.mxu0 %v773_v7  ;;  %v275_v29 = vld [vmem:[%s269_s18] sm:$0xf]  ;;  %v803_v33 = vld [vmem:[%s994_s3 + $0x38] sm:$0xff]   ;;  %v297_v39 = vrot.slane %v292_v37, %v296_v36  ;;  %v301_v40 = vrot.slane %v292_v37, %v300_v38 }
  0x11   : > { %v712_v52 = vld [vmem:[%s995_s4] ss:$0 sm:$0xff]  ;;  %v604_v54 = vunpack.c.l.bf16 %v275_v29 }
  0x12   : > { %738 = vmatpush3.bf16.msra.mxu1 %v793_v18  ;;  %v729_v4 = vld [vmem:[%s996_s5] ss:$0 sm:$0xff] }
  0x13   : > { %391 = vmatpush1.bf16.msra.mxu0 %v775_v8  ;;  %739 = vmatprep.subr.bf16.mxu1 %v794_v19  ;;  %v730_v6 = vld [vmem:[%s997_s6] ss:$0 sm:$0xff] }
  0x14   : > { %392 = vmatprep.subr.bf16.mxu0 %v776_v9 }
  0x16   : > { %740 = vmatpush3.bf16.msra.mxu1 %v795_v23 }
  0x17   : > { %393 = vmatpush1.bf16.msra.mxu0 %v778_v12  ;;  %741 = vmatprep.subr.bf16.mxu1 %v796_v24 }
  0x18   : > { %394 = vmatprep.subr.bf16.mxu0 %v779_v16 }
  0x1a   : > { %742 = vmatpush3.bf16.msra.mxu1 %v797_v25 }
  0x1b   : > { %395 = vmatpush1.bf16.msra.mxu0 %v781_v17  ;;  %743 = vmatprep.subr.bf16.mxu1 %v798_v27 }
  0x1c   : > { %396 = vmatprep.subr.bf16.mxu0 %v782_v20 }
  0x1e   : > { %744 = vmatpush3.bf16.msra.mxu1 %v799_v28 }
  0x1f   : > { %397 = vmatpush1.bf16.msra.mxu0 %v784_v21  ;;  %745 = vmatprep.subr.bf16.mxu1 %v800_v30 }
  0x20   : > { %398 = vmatprep.subr.bf16.mxu0 %v785_v22 }
  0x22   : > { %746 = vmatpush3.bf16.msra.mxu1 %v801_v31 }
  0x23   : > { %399 = vmatpush1.bf16.msra.mxu0 %v787_v26  ;;  %747 = vmatprep.subr.bf16.mxu1 %v802_v32 }
  0x26   : > { %417 = vmatmul.mubr.bf16.vlgmr.msra.gmra.mrb[0].mxu0 %v275_v29  ;;  %748 = vmatpush3.bf16.msra.mxu1 %v803_v33 }
  0xf9   : > { %v418_v41 = vpop.f32.mrb[0].mxu0 }
  0xfa   : > { %v419_v42 = vadd.f32 %v418_v41, %v297_v39  ;;  %v420_v43 = vpop.f32.mrb[1].mxu0 }
  0xfb   : > { %v421_v44 = vadd.f32 %v420_v43, %v301_v40  ;;  %v422_v45 = vpop.f32.mrb[2].mxu0 }
  0xfc   : > { %v425_v46 = vmax.f32 %v419_v42, 0.0  ;;  %v423_v47 = vpop.f32.mrb[3].mxu0 }
  0xfd   : > { %v426_v48 = vmax.f32 %v421_v44, 0.0 }
  0xfe   : > { %v427_v50 = vpack.c.bf16 %v425_v46, %v425_v46 }
  0xff   : > { %v428_v49 = vpack.c.bf16 %v426_v48, %v426_v48 }
 0x101   : > { %596 = vmatprep.mubr.bf16.mxu1 %v428_v49 }
 0x102   : > { %597 = vmatmul.mubr.bf16.vlgmr.msra.gmra.mrb[0].mxu1 %v427_v50 }
 0x1d5   : > { %v749_v51 = vpop.f32.mrb[0].mxu1 }
 0x1d6   : > { %v750_v53 = vpop.f32.mrb[1].mxu1 }
 0x1d7   : > { %v751_v55 = vadd.f32 %v750_v53, %v749_v51  ;;  %v752_v56 = vpop.f32.mrb[2].mxu1 }
 0x1d8   : > { %v753_v57 = vpop.f32.mrb[3].mxu1 }
 0x1d9   : > { %v599_v58 = vadd.f32 %v751_v55, %v712_v52 }
 0x1db   : > { %v605_v59 = vadd.f32 %v604_v54, %v599_v58 }
 0x1dd   : > { %606 = vadd.xlane.f32.xlu0 %v605_v59 }
 0x26a   : > { %v607_v60 = vpop.xlane.xlu0 %606 }
 0x26b   : > { %v609_v61 = vmul.f32 0.0078125, %v607_v60 }
 0x26d   : > { %v610_v62 = vsub.f32 %v605_v59, %v609_v61 }
 0x26f   : > { %v611_v63 = vmul.f32 %v610_v62, %v610_v62 }
 0x271   : > { %612 = vadd.xlane.f32.xlu0 %v611_v63 }
 0x2fe   : > { %v613_v0 = vpop.xlane.xlu0 %612 }
 0x2ff   : > { %v614_v1 = vmul.f32 0.0078125, %v613_v0 }
 0x301   : > { %v615_v2 = vadd.f32 1e-05, %v614_v1 }
 0x303   : > { %804 = vrsqrt.f32 %v615_v2 }
 0x30d   : > { %v805_v3 = vpop.eup %804 }
 0x30e   : > { %v617_v5 = vmul.f32 %v805_v3, %v610_v62 }
 0x310   : > { %v625_v7 = vmul.f32 %v729_v4, %v617_v5 }
 0x312   : > { %v633_v8 = vadd.f32 %v730_v6, %v625_v7 }
 0x314   : > { %v634_v9 = vpack.c.bf16 %v633_v8, %v633_v8 }
 0x316   : > { %635 = vst [vmem:[%s273_s19] sm:$0xf] %v634_v9 }
 0x317 PF: > { %s17_s24 = sadd.s32 1, %s812_s24  }
 0x318   : > { %p14_p4 = scmp.ge.s32.totalorder %s17_s24, 4  }
 0x31a   :  { %16 = sbr.rel (!%p14_p4) target bundleno = 1 (0x1), region = 78 }

// kernel: seq2seq_transformer_forward.25
= control target key start
LH: loop header
LB: loop body
LE: loop exit
PB: predicated region body
PF: predicated region fallthrough
CT: control target
= control target key end

     0   :  { %s1164_s21 = smov 0   ;;  %s1301_s0 = inlined_call_operand.vmem [shape: bf16[2,8,384], index: 0, kind: input, shape index: {}]   ;;  %s1302_s1 = inlined_call_operand.vmem [shape: bf16[2,8,128], index: 1, kind: input, shape index: {}]   ;;  %s1303_s2 = inlined_call_operand.vmem [shape: bf16[128,128], index: 2, kind: input, shape index: {}]   ;;  %s1304_s3 = inlined_call_operand.vmem [shape: f32[1,128], index: 3, kind: input, shape index: {}]   ;;  %s1305_s4 = inlined_call_operand.vmem [shape: f32[1,128], index: 4, kind: input, shape index: {}]   ;;  %s1306_s5 = inlined_call_operand.vmem [shape: f32[1,128], index: 5, kind: input, shape index: {}]   ;;  %s1307_s6 = inlined_call_operand.vmem [shape: bf16[2,8,128], index: 6, kind: output, shape index: {}]  }
   0x1 LB: > { %s949_s22 = sadd.s32 4294967295, %s1122_s21   ;;  %p953_p0 = scmp.ge.s32.totalorder %s1122_s21, 1  ;;  %s1122_s21 = sphi %s1164_s21, %s16_s21  }
   0x2   : > { %p221_p1 = scmp.lt.s32.totalorder %s1122_s21, 3 }
   0x4   : > { %p222_p2 = pnand %p953_p0, %p221_p1 }
   0x5   : > { %p254_p3 = scmp.lt.s32.totalorder (!%p222_p2), %s949_s22, 1  ;;  %v1124_v0 = vmov (!%p222_p2), 0.0   ;;  %vm1125_vm0 = vmmov (!%p222_p2), 0   ;;  %vm273_vm1 = vcmask (!%p222_p2), 261120   ;;  %vm321_vm2 = vcmask (!%p222_p2), 64512   ;;  %s1126_s27 = smov (!%p222_p2), 96  }
   0x6   : > { %225 = sbr.rel (%p222_p2) target bundleno = 1987 (0x7c3), region = 44  ;;  %1006 = vmatprep.subr.bf16.mxu0 (!%p222_p2), %v1124_v0  ;;  %1008 = vmatprep.mubr.msk.bf16.mxu0 (!%p222_p2), %vm1125_vm0, %v1124_v0  ;;  %s1127_s28 = smov (!%p222_p2), 64   ;;  %vm337_vm3 = vcmask (!%p222_p2), 1043456   ;;  %vm502_vm4 = vcmask (!%p222_p2), 523520   ;;  %vm619_vm5 = vcmask (!%p222_p2), 785920   ;;  %vm736_vm6 = vcmask (!%p222_p2), 1048320  }
   0x7   : > { %1030 = vmatprep.subr.bf16.mxu1 (!%p222_p2), %v1124_v0  ;;  %1032 = vmatprep.mubr.msk.bf16.mxu1 (!%p222_p2), %vm1125_vm0, %v1124_v0  ;;  %s1128_s29 = smov (!%p222_p2), 32  }
   0xd   : > { %s1309_s22 = smov (!%p254_p3, %s949_s22), 1 }
   0xe   : > { %s1074_s23 = smul.u32 12, %s1309_s22  ;;  %s955_s24 = sshll.u32 %s1309_s22, 2 }
   0xf   : > { %s266_s11 = scalar_lea.vmem %s1307_s6, %s955_s24 }
  0x10   : > { %s1184_s26 = scalar_lea.vmem %s1301_s0, %s1074_s23 }
  0x11   : > { %v268_v1 = vld [vmem:[%s1184_s26] sm:$0xff]  ;;  %v1200_v16 = vld [vmem:[%s1184_s26 + $0x8] sm:$0xf] }
  0x12   : > { %v957_v2 = vcombine.high %v268_v1, %v268_v1  ;;  %v960_v10 = vcombine.low %v268_v1, %v268_v1  ;;  %v339_v17 = vsel %vm337_vm3, %v1200_v16, 0 }
  0x14   : > { %v278_v3 = vsel %vm273_vm1, %v957_v2, 0  ;;  %386 = vrot.lane.b32.xlu1 %v957_v2, %s1126_s27 }
  0x15   : > { %1007 = vmatpush3.bf16.xpose.msra.mxu0 %v278_v3 }
  0x16   : > { %1012 = vmatprep.subr.bf16.mxu0 %v1124_v0 }
  0x18   : > { %384 = vrot.lane.b32.xlu1 %v960_v10, %s1126_s27 }
  0x1c   : > { %1009 = vmatmul.mubr.msk.bf16.vlgmr.msra.gmra.mrb[0].mxu0 %vm273_vm1, %v268_v1  ;;  %504 = vrot.lane.b32.xlu1 %v960_v10, %s1127_s28 }
  0x1d   : > { %1014 = vmatprep.mubr.msk.bf16.mxu0 %vm1125_vm0, %v1124_v0  ;;  %1013 = vmatpush3.bf16.msra.mxu0 %v339_v17 }
  0x1e   : > { %1018 = vmatprep.subr.bf16.mxu0 %v1124_v0 }
  0x20   : > { %623 = vrot.lane.b32.xlu1 %v957_v2, %s1128_s29 }
  0x24   : > { %621 = vrot.lane.b32.xlu1 %v960_v10, %s1128_s29 }
  0x86   : > { %v387_v18 = vpop.permute.xlu1 %386 }
  0x87   : > { %v392_v29 = vsel %vm273_vm1, %v387_v18, 0 }
  0x8a   : > { %v385_v19 = vpop.permute.xlu1 %384 }
  0x8e   : > { %v505_v21 = vpop.permute.xlu1 %504 }
  0x92   : > { %v624_v24 = vpop.permute.xlu1 %623 }
  0x93   : > { %v629_v26 = vsel %vm273_vm1, %v624_v24, 0  ;;  %v1090_v24 = vld [vmem:[%s1303_s2] sm:$0xff]  }
  0x96   : > { %v622_v30 = vpop.permute.xlu1 %621 }
  0xef   : > { %v314_v4 = vpop.f32.mrb[0].mxu0 }
  0xf0   : > { %v320_v5 = vmul.f32 0.17677669, %v314_v4  ;;  %v1010_v6 = vpop.f32.mrb[1].mxu0 }
  0xf1   : > { %v317_v7 = vpop.f32.mrb[2].mxu0 }
  0xf2   : > { %v1011_v8 = vpop.f32.mrb[3].mxu0  ;;  %v322_v9 = vsel %vm321_vm2, %v320_v5, -inf }
  0xf3   : > { %323 = vmax.xlane.f32.xlu0 %v322_v9 }
 0x180   : > { %v324_v11 = vpop.xlane.xlu0 %323 }
 0x181   : > { %v325_v12 = vsub.f32 %v320_v5, %v324_v11  ;;  %v962_v5 = vcombine.low %v1200_v16, %v1200_v16 }
 0x183   : > { %v326_v13 = vmul.f32 1.442695, %v325_v12 }
 0x185   : > { %1098 = vpow2.f32 %v326_v13 }
 0x18f   : > { %v1099_v14 = vpop.eup %1098 }
 0x190   : > { %v328_v15 = vsel %vm321_vm2, %v1099_v14, 0.0 }
 0x191   : > { %329 = vadd.xlane.f32.xlu0 %v328_v15 }
 0x1a7   : > { %506 = vrot.lane.b32.xlu0 %v957_v2, %s1127_s28 }
 0x21e   : > { %v330_v20 = vpop.xlane.xlu0 %329 }
 0x21f   : > { %1100 = vrcp.f32 %v330_v20 }
 0x222   : > { %v507_v22 = vpop.permute.xlu0 %506 }
 0x223   : > { %v512_v23 = vsel %vm273_vm1, %v507_v22, 0 }
 0x224   : > { %1031 = vmatpush3.bf16.xpose.msra.mxu1 %v512_v23 }
 0x225   : > { %1042 = vmatprep.subr.bf16.mxu1 %v1124_v0 }
 0x229   : > { %v1101_v25 = vpop.eup %1100 }
 0x22a   : > { %v332_v27 = vmul.f32 %v1101_v25, %v1099_v14  ;;  %v1091_v25 = vld [vmem:[%s1303_s2 + $0x8] sm:$0xff]  }
 0x22b   : > { %1033 = vmatmul.mubr.msk.bf16.vlgmr.msra.gmra.mrb[0].mxu1 %vm273_vm1, %v505_v21 }
 0x22c   : > { %v333_v28 = vpack.c.bf16 %v332_v27, %v332_v27  ;;  %1043 = vmatpush3.bf16.xpose.msra.mxu1 %v629_v26  ;;  %1044 = vmatprep.mubr.msk.bf16.mxu1 %vm1125_vm0, %v1124_v0  ;;  %v1092_v26 = vld [vmem:[%s1303_s2 + $0x10] sm:$0xff]   ;;  %v1093_v27 = vld [vmem:[%s1303_s2 + $0x18] sm:$0xff]  }
 0x22d   : > { %1054 = vmatprep.subr.bf16.mxu1 %v1124_v0 }
 0x22e   : > { %1015 = vmatmul.mubr.msk.bf16.vlgmr.msra.gmra.mrb[4].mxu0 %vm321_vm2, %v333_v28  ;;  %v1094_v28 = vld [vmem:[%s1303_s2 + $0x20] sm:$0xff]  }
 0x22f   : > { %1019 = vmatpush3.bf16.xpose.msra.mxu0 %v392_v29  ;;  %1020 = vmatprep.mubr.msk.bf16.mxu0 %vm1125_vm0, %v1124_v0  ;;  %v1095_v29 = vld [vmem:[%s1303_s2 + $0x28] sm:$0xff]  }
 0x230   : > { %1024 = vmatprep.subr.bf16.mxu0 %v1124_v0 }
 0x233   : > { %1045 = vmatmul.mubr.msk.bf16.vlgmr.msra.gmra.mrb[4].mxu1 %vm273_vm1, %v622_v30 }
 0x234   : > { %1070 = vmatprep.mubr.msk.bf16.mxu1 %vm1125_vm0, %v1124_v0  ;;  %1055 = vmatpush3.bf16.msra.mxu1 %v1090_v24 }
 0x235   : > { %1056 = vmatprep.subr.bf16.mxu1 %v1124_v0 }
 0x236   : > { %1021 = vmatmul.mubr.msk.bf16.vlgmr.msra.gmra.mrb[8].mxu0 %vm273_vm1, %v385_v19 }
 0x237   : > { %1026 = vmatprep.mubr.msk.bf16.mxu0 %vm1125_vm0, %v1124_v0 }
 0x238   : > { %1057 = vmatpush3.bf16.msra.mxu1 %v1091_v25 }
 0x239   : > { %1058 = vmatprep.subr.bf16.mxu1 %v1124_v0 }
 0x23c   : > { %1059 = vmatpush3.bf16.msra.mxu1 %v1092_v26 }
 0x23d   : > { %1060 = vmatprep.subr.bf16.mxu1 %v1124_v0 }
 0x240   : > { %1061 = vmatpush3.bf16.msra.mxu1 %v1093_v27 }
 0x241   : > { %1062 = vmatprep.subr.bf16.mxu1 %v1124_v0 }
 0x244   : > { %1063 = vmatpush3.bf16.msra.mxu1 %v1094_v28 }
 0x245   : > { %1064 = vmatprep.subr.bf16.mxu1 %v1124_v0 }
 0x248   : > { %1065 = vmatpush3.bf16.msra.mxu1 %v1095_v29 }
 0x249   : > { %1066 = vmatprep.subr.bf16.mxu1 %v1124_v0 }
 0x2fe   : > { %v548_v31 = vpop.f32.mrb[0].mxu1 }
 0x2ff   : > { %v554_v32 = vmul.f32 0.17677669, %v548_v31  ;;  %v1034_v33 = vpop.f32.mrb[1].mxu1 }
 0x300   : > { %v551_v34 = vpop.f32.mrb[2].mxu1 }
 0x301   : > { %v375_v35 = vpop.f32.mrb[4].mxu0  ;;  %v1035_v36 = vpop.f32.mrb[3].mxu1  ;;  %v555_v37 = vsel %vm321_vm2, %v554_v32, -inf  ;;  %v1096_v34 = vld [vmem:[%s1303_s2 + $0x30] sm:$0xff]  }
 0x302   : > { %381 = vst.msk [vmem:[#allocation2] sm:$0xff] %vm273_vm1, %v375_v35  ;;  %556 = vmax.xlane.f32.xlu0 %v555_v37  ;;  %v1016_v38 = vpop.f32.mrb[5].mxu0  ;;  %1067 = vmatpush3.bf16.msra.mxu1 %v1096_v34  ;;  %v1097_v35 = vld [vmem:[%s1303_s2 + $0x38] sm:$0xff]  }
 0x303   : > { %v378_v39 = vpop.f32.mrb[6].mxu0  ;;  %1068 = vmatprep.subr.bf16.mxu1 %v1124_v0 }
 0x304   : > { %v1017_v40 = vpop.f32.mrb[7].mxu0 }
 0x306   : > { %v665_v41 = vpop.f32.mrb[4].mxu1  ;;  %1069 = vmatpush3.bf16.msra.mxu1 %v1097_v35 }
 0x307   : > { %v1046_v42 = vpop.f32.mrb[5].mxu1  ;;  %v671_v48 = vmul.f32 0.17677669, %v665_v41 }
 0x308   : > { %v668_v43 = vpop.f32.mrb[6].mxu1 }
 0x309   : > { %v428_v44 = vpop.f32.mrb[8].mxu0  ;;  %v1047_v45 = vpop.f32.mrb[7].mxu1  ;;  %v672_v52 = vsel %vm321_vm2, %v671_v48, -inf }
 0x30a   : > { %v434_v46 = vmul.f32 0.17677669, %v428_v44  ;;  %v1022_v47 = vpop.f32.mrb[9].mxu0 }
 0x30b   : > { %v431_v49 = vpop.f32.mrb[10].mxu0 }
 0x30c   : > { %v1023_v50 = vpop.f32.mrb[11].mxu0  ;;  %v435_v51 = vsel %vm321_vm2, %v434_v46, -inf  ;;  %v968_v49 = vld [vmem:[%s1304_s3] ss:$0 sm:$0xff] }
 0x30d   : > { %436 = vmax.xlane.f32.xlu1 %v435_v51 }
 0x311   : > { %673 = vmax.xlane.f32.xlu1 %v672_v52 }
 0x38f   : > { %v557_v53 = vpop.xlane.xlu0 %556 }
 0x390   : > { %v558_v54 = vsub.f32 %v554_v32, %v557_v53 }
 0x392   : > { %v559_v55 = vmul.f32 1.442695, %v558_v54 }
 0x394   : > { %1102 = vpow2.f32 %v559_v55 }
 0x39a   : > { %v437_v56 = vpop.xlane.xlu1 %436 }
 0x39b   : > { %v438_v57 = vsub.f32 %v434_v46, %v437_v56 }
 0x39d   : > { %v439_v62 = vmul.f32 1.442695, %v438_v57 }
 0x39e   : > { %v1103_v58 = vpop.eup %1102  ;;  %v674_v59 = vpop.xlane.xlu1 %673 }
 0x39f   : > { %v675_v60 = vsub.f32 %v671_v48, %v674_v59  ;;  %v561_v61 = vsel %vm321_vm2, %v1103_v58, 0.0 }
 0x3a0   : > { %562 = vadd.xlane.f32.xlu0 %v561_v61 }
 0x3a1   : > { %v676_v63 = vmul.f32 1.442695, %v675_v60 }
 0x3a3   : > { %1104 = vpow2.f32 %v676_v63 }
 0x3a4   : > { %1106 = vpow2.f32 %v439_v62 }
 0x3ad   : > { %v1105_v1 = vpop.eup %1104 }
 0x3ae   : > { %v678_v2 = vsel %vm321_vm2, %v1105_v1, 0.0  ;;  %v1107_v3 = vpop.eup %1106 }
 0x3af   : > { %679 = vadd.xlane.f32.xlu1 %v678_v2  ;;  %v441_v4 = vsel %vm321_vm2, %v1107_v3, 0.0  ;;  %v977_v2 = vld [vmem:[%s1305_s4] ss:$0 sm:$0xff] }
 0x3b3   : > { %442 = vadd.xlane.f32.xlu1 %v441_v4  ;;  %v978_v4 = vld [vmem:[%s1306_s5] ss:$0 sm:$0xff] }
 0x3b6   : > { %450 = vrot.lane.b32.xlu0 %v962_v5, %s1126_s27 }
 0x3c4   : > { %567 = vrot.lane.b32.xlu1 %v962_v5, %s1127_s28 }
 0x3c8   : > { %684 = vrot.lane.b32.xlu1 %v962_v5, %s1128_s29 }
 0x42d   : > { %v563_v6 = vpop.xlane.xlu0 %562 }
 0x431   : > { %v451_v7 = vpop.permute.xlu0 %450 }
 0x432   : > { %v456_v8 = vsel %vm337_vm3, %v451_v7, 0 }
 0x433   : > { %1025 = vmatpush3.bf16.msra.mxu0 %v456_v8 }
 0x434   : > { %1036 = vmatprep.subr.bf16.mxu0 %v1124_v0 }
 0x43c   : > { %v680_v9 = vpop.xlane.xlu1 %679 }
 0x440   : > { %v443_v10 = vpop.xlane.xlu1 %442 }
 0x441   : > { %1108 = vrcp.f32 %v443_v10 }
 0x442   : > { %1110 = vrcp.f32 %v563_v6 }
 0x443   : > { %1112 = vrcp.f32 %v680_v9 }
 0x444   : > { %v568_v12 = vpop.permute.xlu1 %567 }
 0x445   : > { %v573_v14 = vsel %vm337_vm3, %v568_v12, 0 }
 0x448   : > { %v685_v18 = vpop.permute.xlu1 %684 }
 0x449   : > { %v690_v19 = vsel %vm337_vm3, %v685_v18, 0 }
 0x44b   : > { %v1109_v11 = vpop.eup %1108 }
 0x44c   : > { %v445_v13 = vmul.f32 %v1109_v11, %v1107_v3  ;;  %v1111_v16 = vpop.eup %1110 }
 0x44d   : > { %v565_v17 = vmul.f32 %v1111_v16, %v1103_v58  ;;  %v1113_v21 = vpop.eup %1112 }
 0x44e   : > { %v446_v15 = vpack.c.bf16 %v445_v13, %v445_v13  ;;  %v682_v22 = vmul.f32 %v1113_v21, %v1105_v1 }
 0x44f   : > { %v566_v20 = vpack.c.bf16 %v565_v17, %v565_v17 }
 0x450   : > { %1027 = vmatmul.mubr.msk.bf16.vlgmr.msra.gmra.mrb[12].mxu0 %vm321_vm2, %v446_v15  ;;  %v683_v23 = vpack.c.bf16 %v682_v22, %v682_v22 }
 0x451   : > { %1037 = vmatpush3.bf16.msra.mxu0 %v573_v14  ;;  %1038 = vmatprep.mubr.msk.bf16.mxu0 %vm1125_vm0, %v1124_v0 }
 0x452   : > { %1048 = vmatprep.subr.bf16.mxu0 %v1124_v0 }
 0x458   : > { %1039 = vmatmul.mubr.msk.bf16.vlgmr.msra.gmra.mrb[16].mxu0 %vm321_vm2, %v566_v20 }
 0x459   : > { %1049 = vmatpush3.bf16.msra.mxu0 %v690_v19  ;;  %1050 = vmatprep.mubr.msk.bf16.mxu0 %vm1125_vm0, %v1124_v0 }
 0x460   : > { %1051 = vmatmul.mubr.msk.bf16.vlgmr.msra.gmra.mrb[20].mxu0 %vm321_vm2, %v683_v23 }
 0x523   : > { %v492_v30 = vpop.f32.mrb[12].mxu0 }
 0x524   : > { %499 = vrot.lane.b32.xlu0 %v492_v30, %s1128_s29  ;;  %v1028_v31 = vpop.f32.mrb[13].mxu0 }
 0x525   : > { %v495_v32 = vpop.f32.mrb[14].mxu0 }
 0x526   : > { %v1029_v33 = vpop.f32.mrb[15].mxu0 }
 0x52b   : > { %v609_v36 = vpop.f32.mrb[16].mxu0 }
 0x52c   : > { %616 = vrot.lane.b32.xlu1 %v609_v36, %s1127_s28  ;;  %v1040_v37 = vpop.f32.mrb[17].mxu0 }
 0x52d   : > { %v612_v38 = vpop.f32.mrb[18].mxu0 }
 0x52e   : > { %v1041_v39 = vpop.f32.mrb[19].mxu0 }
 0x533   : > { %v726_v40 = vpop.f32.mrb[20].mxu0 }
 0x534   : > { %733 = vrot.lane.b32.xlu0 %v726_v40, %s1126_s27  ;;  %v1052_v41 = vpop.f32.mrb[21].mxu0  ;;  %s262_s27 = scalar_lea.vmem %s1302_s1, %s955_s24 }
 0x535   : > { %v729_v42 = vpop.f32.mrb[22].mxu0  ;;  %v738_v48 = vld [vmem:[%s262_s27] sm:$0xf] }
 0x536   : > { %v1053_v43 = vpop.f32.mrb[23].mxu0  ;;  %v852_v50 = vunpack.c.l.bf16 %v738_v48 }
 0x596   : > { %v500_v44 = vpop.permute.xlu0 %499 }
 0x597   : > { %503 = vst.msk [vmem:[#allocation2] sm:$0xff] %vm502_vm4, %v500_v44 }
 0x59e   : > { %v617_v45 = vpop.permute.xlu1 %616 }
 0x59f   : > { %620 = vst.msk [vmem:[#allocation2] sm:$0xff] %vm619_vm5, %v617_v45 }
 0x5a6   : > { %v734_v0 = vpop.permute.xlu0 %733 }
 0x5a7   : > { %737 = vst.msk [vmem:[#allocation2] sm:$0xff] %vm736_vm6, %v734_v0 }
 0x5ae   : > { %v739_v46 = vld [vmem:[#allocation2] sm:$0xff] }
 0x5af   : > { %v740_v47 = vpack.c.bf16 %v739_v46, %v739_v46 }
 0x5b1   : > { %1071 = vmatmul.mubr.bf16.vlgmr.msra.gmra.mrb[8].mxu1 %v740_v47 }
 0x684   : > { %v846_v51 = vpop.f32.mrb[8].mxu1 }
 0x685   : > { %v847_v52 = vadd.f32 %v968_v49, %v846_v51  ;;  %v1072_v53 = vpop.f32.mrb[9].mxu1 }
 0x686   : > { %v849_v54 = vpop.f32.mrb[10].mxu1 }
 0x687   : > { %v1073_v55 = vpop.f32.mrb[11].mxu1  ;;  %v853_v56 = vadd.f32 %v852_v50, %v847_v52 }
 0x689   : > { %854 = vadd.xlane.f32.xlu1 %v853_v56 }
 0x716   : > { %v855_v57 = vpop.xlane.xlu1 %854 }
 0x717   : > { %v857_v58 = vmul.f32 0.0078125, %v855_v57 }
 0x719   : > { %v858_v59 = vsub.f32 %v853_v56, %v857_v58 }
 0x71b   : > { %v859_v60 = vmul.f32 %v858_v59, %v858_v59 }
 0x71d   : > { %860 = vadd.xlane.f32.xlu0 %v859_v60 }
 0x7aa   : > { %v861_v61 = vpop.xlane.xlu0 %860 }
 0x7ab   : > { %v862_v62 = vmul.f32 0.0078125, %v861_v61 }
 0x7ad   : > { %v863_v63 = vadd.f32 1e-05, %v862_v62 }
 0x7af   : > { %1114 = vrsqrt.f32 %v863_v63 }
 0x7b9   : > { %v1115_v1 = vpop.eup %1114 }
 0x7ba   : > { %v865_v3 = vmul.f32 %v1115_v1, %v858_v59 }
 0x7bc   : > { %v873_v5 = vmul.f32 %v977_v2, %v865_v3 }
 0x7be   : > { %v881_v6 = vadd.f32 %v978_v4, %v873_v5 }
 0x7c0   : > { %v882_v7 = vpack.c.bf16 %v881_v6, %v881_v6 }
 0x7c2   : > { %883 = vst [vmem:[%s266_s11] sm:$0xf] %v882_v7 }
 0x7c3 PF: > { %s16_s21 = sadd.s32 1, %s1122_s21  }
 0x7c4   : > { %p13_p4 = scmp.ge.s32.totalorder %s16_s21, 4  }
 0x7c6   :  { %15 = sbr.rel (!%p13_p4) target bundleno = 1 (0x1), region = 77 }

// kernel: seq2seq_transformer_forward.34
= control target key start
LH: loop header
LB: loop body
LE: loop exit
PB: predicated region body
PF: predicated region fallthrough
CT: control target
= control target key end

     0   :  { %s474_s12 = smov 0   ;;  %s546_s0 = inlined_call_operand.vmem [shape: bf16[16,128], index: 0, kind: input, shape index: {}]   ;;  %s547_s1 = inlined_call_operand.vmem [shape: bf16[128,256], index: 1, kind: input, shape index: {}]   ;;  %s548_s2 = inlined_call_operand.vmem [shape: f32[1,256], index: 2, kind: input, shape index: {}]   ;;  %s549_s3 = inlined_call_operand.vmem [shape: bf16[16,256], index: 3, kind: output, shape index: {}]  }
   0x1 LB: > { %s383_s13 = sadd.s32 4294967295, %s451_s12   ;;  %p387_p0 = scmp.ge.s32.totalorder %s451_s12, 1  ;;  %s451_s12 = sphi %s474_s12, %s13_s12  }
   0x2   : > { %p136_p1 = scmp.lt.s32.totalorder %s451_s12, 3 }
   0x4   : > { %p137_p2 = pnand %p387_p0, %p136_p1 }
   0x5   : > { %v421_v0 = vld [vmem:[%s547_s1 + $0x4] ss:$8 sps:$4 sm:$0xff] (!%p137_p2)   ;;  %v423_v1 = vld [vmem:[%s547_s1] ss:$8 sps:$4 sm:$0xff] (!%p137_p2)   ;;  %v453_v2 = vmov (!%p137_p2), 0   ;;  %p159_p3 = scmp.lt.s32.totalorder (!%p137_p2), %s383_s13, 1  ;;  %v188_v18 = vlaneseq (!%p137_p2) }
   0x6   : > { %140 = sbr.rel (%p137_p2) target bundleno = 256 (0x100), region = 32  ;;  %310 = vmatprep.mubr.bf16.mxu0 (!%p137_p2), %v453_v2  ;;  %278 = vmatprep.subr.bf16.mxu0 (!%p137_p2), %v421_v0  ;;  %v424_v3 = vld [vmem:[%s547_s1 + $0x14] ss:$8 sps:$4 sm:$0xff] (!%p137_p2)   ;;  %v426_v4 = vld [vmem:[%s547_s1 + $0x10] ss:$8 sps:$4 sm:$0xff] (!%p137_p2)  }
   0x7   : > { %279 = vmatpush1.bf16.msra.mxu0 (!%p137_p2), %v423_v1  ;;  %v427_v5 = vld [vmem:[%s547_s1 + $0x24] ss:$8 sps:$4 sm:$0xff] (!%p137_p2)   ;;  %v429_v6 = vld [vmem:[%s547_s1 + $0x20] ss:$8 sps:$4 sm:$0xff] (!%p137_p2)   ;;  %v430_v7 = vld [vmem:[%s547_s1 + $0x34] ss:$8 sps:$4 sm:$0xff] (!%p137_p2)  }
   0x8   : > { %280 = vmatprep.subr.bf16.mxu0 (!%p137_p2), %v424_v3  ;;  %v432_v8 = vld [vmem:[%s547_s1 + $0x30] ss:$8 sps:$4 sm:$0xff] (!%p137_p2)   ;;  %v433_v9 = vld [vmem:[%s547_s1 + $0x44] ss:$8 sps:$4 sm:$0xff] (!%p137_p2)   ;;  %v435_v10 = vld [vmem:[%s547_s1 + $0x40] ss:$8 sps:$4 sm:$0xff] (!%p137_p2)  }
   0x9   : > { %v436_v11 = vld [vmem:[%s547_s1 + $0x54] ss:$8 sps:$4 sm:$0xff] (!%p137_p2)   ;;  %v438_v12 = vld [vmem:[%s547_s1 + $0x50] ss:$8 sps:$4 sm:$0xff] (!%p137_p2)   ;;  %v439_v13 = vld [vmem:[%s547_s1 + $0x64] ss:$8 sps:$4 sm:$0xff] (!%p137_p2)  }
   0xa   : > { %v441_v14 = vld [vmem:[%s547_s1 + $0x60] ss:$8 sps:$4 sm:$0xff] (!%p137_p2)   ;;  %v442_v15 = vld [vmem:[%s547_s1 + $0x74] ss:$8 sps:$4 sm:$0xff] (!%p137_p2)   ;;  %v444_v16 = vld [vmem:[%s547_s1 + $0x70] ss:$8 sps:$4 sm:$0xff] (!%p137_p2)  }
   0xb   : > { %281 = vmatpush1.bf16.msra.mxu0 (!%p137_p2), %v426_v4  ;;  %v189_v19 = vshrl.u32 (!%p137_p2), %v188_v18, 7  ;;  %v186_v21 = vld [vmem:[%s548_s2] sm:$0x3] (!%p137_p2) }
   0xc   : > { %282 = vmatprep.subr.bf16.mxu0 (!%p137_p2), %v427_v5 }
   0xd   : > { %s551_s13 = smov (!%p159_p3, %s383_s13), 1  ;;  %v190_v20 = vsub.s32 0, %v189_v19  ;;  %v194_v22 = vsub.s32 1, %v189_v19 }
   0xe   : > { %s388_s19 = sshll.u32 %s551_s13, 2  ;;  %s410_s27 = sshll.u32 %s551_s13, 3 }
   0xf   : > { %283 = vmatpush1.bf16.msra.mxu0 %v429_v6  ;;  %s162_s24 = scalar_lea.vmem %s546_s0, %s388_s19  ;;  %v191_v23 = vrot.slane %v186_v21, %v190_v20  ;;  %v195_v24 = vrot.slane %v186_v21, %v194_v22  ;;  %s167_s30 = scalar_lea.vmem %s549_s3, %s410_s27 }
  0x10   : > { %284 = vmatprep.subr.bf16.mxu0 %v430_v7  ;;  %v169_v17 = vld [vmem:[%s162_s24] sm:$0xf] }
  0x13   : > { %285 = vmatpush1.bf16.msra.mxu0 %v432_v8 }
  0x14   : > { %286 = vmatprep.subr.bf16.mxu0 %v433_v9 }
  0x17   : > { %287 = vmatpush1.bf16.msra.mxu0 %v435_v10 }
  0x18   : > { %288 = vmatprep.subr.bf16.mxu0 %v436_v11 }
  0x1b   : > { %289 = vmatpush1.bf16.msra.mxu0 %v438_v12 }
  0x1c   : > { %290 = vmatprep.subr.bf16.mxu0 %v439_v13 }
  0x1f   : > { %291 = vmatpush1.bf16.msra.mxu0 %v441_v14 }
  0x20   : > { %292 = vmatprep.subr.bf16.mxu0 %v442_v15 }
  0x23   : > { %293 = vmatpush1.bf16.msra.mxu0 %v444_v16 }
  0x26   : > { %311 = vmatmul.mubr.bf16.vlgmr.msra.gmra.mrb[0].mxu0 %v169_v17 }
  0xf9   : > { %v312_v25 = vpop.f32.mrb[0].mxu0 }
  0xfa   : > { %v313_v26 = vadd.f32 %v312_v25, %v191_v23  ;;  %v314_v27 = vpop.f32.mrb[1].mxu0 }
  0xfb   : > { %v315_v28 = vadd.f32 %v314_v27, %v195_v24  ;;  %v316_v29 = vpop.f32.mrb[2].mxu0 }
  0xfc   : > { %v317_v30 = vpop.f32.mrb[3].mxu0 }
  0xfd   : > { %v411_v31 = vpack.c.bf16 %v315_v28, %v313_v26 }
  0xff   : > { %327 = vst [vmem:[%s167_s30] sm:$0xff] %v411_v31 }
 0x100 PF: > { %s13_s12 = sadd.s32 1, %s451_s12  }
 0x101   : > { %p10_p4 = scmp.ge.s32.totalorder %s13_s12, 4  }
 0x103   :  { %12 = sbr.rel (!%p10_p4) target bundleno = 1 (0x1), region = 62 }

// kernel: seq2seq_transformer_forward.30
= control target key start
LH: loop header
LB: loop body
LE: loop exit
PB: predicated region body
PF: predicated region fallthrough
CT: control target
= control target key end

     0   :  { %s300_s12 = smov 0   ;;  %s323_s0 = inlined_call_operand.vmem [shape: bf16[16,128], index: 0, kind: input, shape index: {}]   ;;  %s324_s1 = inlined_call_operand.vmem [shape: f32[1,128], index: 1, kind: input, shape index: {}]   ;;  %s325_s2 = inlined_call_operand.vmem [shape: f32[1,128], index: 2, kind: input, shape index: {}]   ;;  %s326_s3 = inlined_call_operand.vmem [shape: bf16[16,128], index: 3, kind: output, shape index: {}]  }
   0x1 LB: > { %s251_s13 = sadd.s32 4294967295, %s278_s12   ;;  %p255_p0 = scmp.ge.s32.totalorder %s278_s12, 1  ;;  %s278_s12 = sphi %s300_s12, %s13_s12  }
   0x2   : > { %p136_p1 = scmp.lt.s32.totalorder %s278_s12, 3 }
   0x4   : > { %p137_p2 = pnand %p255_p0, %p136_p1 }
   0x5   : > { %p158_p3 = scmp.lt.s32.totalorder (!%p137_p2), %s251_s13, 1  ;;  %v258_v10 = vld [vmem:[%s324_s1] ss:$0 sm:$0xff] (!%p137_p2) }
   0x6   : > { %140 = sbr.rel (%p137_p2) target bundleno = 333 (0x14d), region = 32  ;;  %v259_v12 = vld [vmem:[%s325_s2] ss:$0 sm:$0xff] (!%p137_p2) }
   0xd   : > { %s328_s13 = smov (!%p158_p3, %s251_s13), 1 }
   0xe   : > { %s256_s14 = sshll.u32 %s328_s13, 2 }
   0xf   : > { %s161_s17 = scalar_lea.vmem %s323_s0, %s256_s14  ;;  %s165_s24 = scalar_lea.vmem %s326_s3, %s256_s14 }
  0x10   : > { %v166_v0 = vld [vmem:[%s161_s17] sm:$0xf] }
  0x11   : > { %v167_v1 = vunpack.c.l.bf16 %v166_v0 }
  0x13   : > { %168 = vadd.xlane.f32.xlu0 %v167_v1 }
  0xa0   : > { %v169_v2 = vpop.xlane.xlu0 %168 }
  0xa1   : > { %v171_v3 = vmul.f32 0.0078125, %v169_v2 }
  0xa3   : > { %v172_v4 = vsub.f32 %v167_v1, %v171_v3 }
  0xa5   : > { %v173_v5 = vmul.f32 %v172_v4, %v172_v4 }
  0xa7   : > { %174 = vadd.xlane.f32.xlu0 %v173_v5 }
 0x134   : > { %v175_v6 = vpop.xlane.xlu0 %174 }
 0x135   : > { %v176_v7 = vmul.f32 0.0078125, %v175_v6 }
 0x137   : > { %v177_v8 = vadd.f32 1e-05, %v176_v7 }
 0x139   : > { %270 = vrsqrt.f32 %v177_v8 }
 0x143   : > { %v271_v9 = vpop.eup %270 }
 0x144   : > { %v179_v11 = vmul.f32 %v271_v9, %v172_v4 }
 0x146   : > { %v187_v13 = vmul.f32 %v258_v10, %v179_v11 }
 0x148   : > { %v195_v14 = vadd.f32 %v259_v12, %v187_v13 }
 0x14a   : > { %v196_v15 = vpack.c.bf16 %v195_v14, %v195_v14 }
 0x14c   : > { %197 = vst [vmem:[%s165_s24] sm:$0xf] %v196_v15 }
 0x14d PF: > { %s13_s12 = sadd.s32 1, %s278_s12  }
 0x14e   : > { %p10_p4 = scmp.ge.s32.totalorder %s13_s12, 4  }
 0x150   :  { %12 = sbr.rel (!%p10_p4) target bundleno = 1 (0x1), region = 62 }

// kernel: seq2seq_transformer_forward.33
= control target key start
LH: loop header
LB: loop body
LE: loop exit
PB: predicated region body
PF: predicated region fallthrough
CT: control target
= control target key end

     0   :  { %s429_s12 = smov 0   ;;  %s473_s0 = inlined_call_operand.vmem [shape: bf16[16,128], index: 0, kind: input, shape index: {}]   ;;  %s474_s1 = inlined_call_operand.vmem [shape: bf16[128,128], index: 1, kind: input, shape index: {}]   ;;  %s475_s2 = inlined_call_operand.vmem [shape: f32[1,128], index: 2, kind: input, shape index: {}]   ;;  %s476_s3 = inlined_call_operand.vmem [shape: bf16[16,128], index: 3, kind: output, shape index: {}]  }
   0x1 LB: > { %s334_s13 = sadd.s32 4294967295, %s405_s12   ;;  %p338_p0 = scmp.ge.s32.totalorder %s405_s12, 1  ;;  %s405_s12 = sphi %s429_s12, %s13_s12  }
   0x2   : > { %p136_p1 = scmp.lt.s32.totalorder %s405_s12, 3 }
   0x4   : > { %p137_p2 = pnand %p338_p0, %p136_p1 }
   0x5   : > { %v391_v0 = vld [vmem:[%s474_s1] sm:$0xff] (!%p137_p2)   ;;  %v407_v1 = vmov (!%p137_p2), 0.0   ;;  %v392_v2 = vld [vmem:[%s474_s1 + $0x8] sm:$0xff] (!%p137_p2)   ;;  %vm408_vm0 = vmmov (!%p137_p2), 0   ;;  %v393_v3 = vld [vmem:[%s474_s1 + $0x10] sm:$0xff] (!%p137_p2)   ;;  %p158_p3 = scmp.lt.s32.totalorder (!%p137_p2), %s334_s13, 1 }
   0x6   : > { %140 = sbr.rel (%p137_p2) target bundleno = 255 (0xff), region = 32  ;;  %361 = vmatprep.subr.bf16.mxu0 (!%p137_p2), %v407_v1  ;;  %377 = vmatprep.mubr.msk.bf16.mxu0 (!%p137_p2), %vm408_vm0, %v407_v1  ;;  %v394_v4 = vld [vmem:[%s474_s1 + $0x18] sm:$0xff] (!%p137_p2)   ;;  %v395_v5 = vld [vmem:[%s474_s1 + $0x20] sm:$0xff] (!%p137_p2)   ;;  %v396_v6 = vld [vmem:[%s474_s1 + $0x28] sm:$0xff] (!%p137_p2)  }
   0x7   : > { %362 = vmatpush3.bf16.msra.mxu0 (!%p137_p2), %v391_v0  ;;  %v397_v7 = vld [vmem:[%s474_s1 + $0x30] sm:$0xff] (!%p137_p2)   ;;  %v398_v8 = vld [vmem:[%s474_s1 + $0x38] sm:$0xff] (!%p137_p2)   ;;  %v341_v10 = vld [vmem:[%s475_s2] ss:$0 sm:$0xff] (!%p137_p2) }
   0x8   : > { %363 = vmatprep.subr.bf16.mxu0 (!%p137_p2), %v407_v1 }
   0xb   : > { %364 = vmatpush3.bf16.msra.mxu0 (!%p137_p2), %v392_v2 }
   0xc   : > { %365 = vmatprep.subr.bf16.mxu0 (!%p137_p2), %v407_v1 }
   0xd   : > { %s478_s13 = smov (!%p158_p3, %s334_s13), 1 }
   0xe   : > { %s339_s28 = sshll.u32 %s478_s13, 2 }
   0xf   : > { %366 = vmatpush3.bf16.msra.mxu0 %v393_v3  ;;  %s161_s6 = scalar_lea.vmem %s473_s0, %s339_s28  ;;  %s165_s11 = scalar_lea.vmem %s476_s3, %s339_s28 }
  0x10   : > { %367 = vmatprep.subr.bf16.mxu0 %v407_v1  ;;  %v167_v9 = vld [vmem:[%s161_s6] sm:$0xf] }
  0x13   : > { %368 = vmatpush3.bf16.msra.mxu0 %v394_v4 }
  0x14   : > { %369 = vmatprep.subr.bf16.mxu0 %v407_v1 }
  0x17   : > { %370 = vmatpush3.bf16.msra.mxu0 %v395_v5 }
  0x18   : > { %371 = vmatprep.subr.bf16.mxu0 %v407_v1 }
  0x1b   : > { %372 = vmatpush3.bf16.msra.mxu0 %v396_v6 }
  0x1c   : > { %373 = vmatprep.subr.bf16.mxu0 %v407_v1 }
  0x1f   : > { %374 = vmatpush3.bf16.msra.mxu0 %v397_v7 }
  0x20   : > { %375 = vmatprep.subr.bf16.mxu0 %v407_v1 }
  0x23   : > { %376 = vmatpush3.bf16.msra.mxu0 %v398_v8 }
  0x26   : > { %378 = vmatmul.mubr.bf16.vlgmr.msra.gmra.mrb[0].mxu0 %v167_v9 }
  0xf9   : > { %v273_v11 = vpop.f32.mrb[0].mxu0 }
  0xfa   : > { %v274_v12 = vadd.f32 %v341_v10, %v273_v11  ;;  %v379_v13 = vpop.f32.mrb[1].mxu0 }
  0xfb   : > { %v276_v14 = vpop.f32.mrb[2].mxu0 }
  0xfc   : > { %v279_v15 = vpack.c.bf16 %v274_v12, %v274_v12  ;;  %v380_v16 = vpop.f32.mrb[3].mxu0 }
  0xfe   : > { %280 = vst [vmem:[%s165_s11] sm:$0xf] %v279_v15 }
  0xff PF: > { %s13_s12 = sadd.s32 1, %s405_s12  }
 0x100   : > { %p10_p4 = scmp.ge.s32.totalorder %s13_s12, 4  }
 0x102   :  { %12 = sbr.rel (!%p10_p4) target bundleno = 1 (0x1), region = 62 }

// kernel: seq2seq_transformer_forward.32
= control target key start
LH: loop header
LB: loop body
LE: loop exit
PB: predicated region body
PF: predicated region fallthrough
CT: control target
= control target key end

     0   :  { %s1173_s21 = smov 0   ;;  %s1328_s0 = inlined_call_operand.vmem [shape: bf16[2,8,384], index: 0, kind: input, shape index: {}]   ;;  %s1329_s1 = inlined_call_operand.vmem [shape: bf16[2,8,128], index: 1, kind: input, shape index: {}]   ;;  %s1330_s2 = inlined_call_operand.vmem [shape: bf16[128,128], index: 2, kind: input, shape index: {}]   ;;  %s1331_s3 = inlined_call_operand.vmem [shape: f32[1,128], index: 3, kind: input, shape index: {}]   ;;  %s1332_s4 = inlined_call_operand.vmem [shape: f32[1,128], index: 4, kind: input, shape index: {}]   ;;  %s1333_s5 = inlined_call_operand.vmem [shape: f32[1,128], index: 5, kind: input, shape index: {}]   ;;  %s1334_s6 = inlined_call_operand.vmem [shape: bf16[2,8,128], index: 6, kind: output, shape index: {}]  }
   0x1 LB: > { %s958_s22 = sadd.s32 4294967295, %s1131_s21   ;;  %p962_p0 = scmp.ge.s32.totalorder %s1131_s21, 1  ;;  %s1131_s21 = sphi %s1173_s21, %s16_s21  }
   0x2   : > { %p221_p1 = scmp.lt.s32.totalorder %s1131_s21, 3 }
   0x4   : > { %p222_p2 = pnand %p962_p0, %p221_p1 }
   0x5   : > { %p254_p3 = scmp.lt.s32.totalorder (!%p222_p2), %s958_s22, 1  ;;  %v1133_v0 = vmov (!%p222_p2), 0.0   ;;  %vm1134_vm0 = vmmov (!%p222_p2), 0   ;;  %vm278_vm1 = vcmask (!%p222_p2), 261120   ;;  %v270_v4 = vlaneseq (!%p222_p2)  ;;  %s1135_s27 = smov (!%p222_p2), 96  }
   0x6   : > { %225 = sbr.rel (%p222_p2) target bundleno = 1989 (0x7c5), region = 44  ;;  %1015 = vmatprep.subr.bf16.mxu0 (!%p222_p2), %v1133_v0  ;;  %1017 = vmatprep.mubr.msk.bf16.mxu0 (!%p222_p2), %vm1134_vm0, %v1133_v0  ;;  %vm327_vm3 = vcmask (!%p222_p2), 64512   ;;  %s1136_s28 = smov (!%p222_p2), 64   ;;  %vm343_vm4 = vcmask (!%p222_p2), 1043456   ;;  %vm509_vm5 = vcmask (!%p222_p2), 523520   ;;  %vm627_vm6 = vcmask (!%p222_p2), 785920  }
   0x7   : > { %1039 = vmatprep.subr.bf16.mxu1 (!%p222_p2), %v1133_v0  ;;  %1041 = vmatprep.mubr.msk.bf16.mxu1 (!%p222_p2), %vm1134_vm0, %v1133_v0  ;;  %v1201_v5 = vshrl.u32 (!%p222_p2), %v270_v4, 7  ;;  %v1203_v6 = vand.u32 (!%p222_p2), 127, %v270_v4  ;;  %s1137_s29 = smov (!%p222_p2), 32   ;;  %vm745_vm7 = vcmask (!%p222_p2), 1048320  }
   0x9   : > { %vm274_vm2 = vcmp.gt.s32.totalorder (!%p222_p2), %v1203_v6, %v1201_v5 }
   0xd   : > { %s1336_s22 = smov (!%p254_p3, %s958_s22), 1 }
   0xe   : > { %s1083_s23 = smul.u32 12, %s1336_s22  ;;  %s964_s24 = sshll.u32 %s1336_s22, 2 }
   0xf   : > { %s266_s11 = scalar_lea.vmem %s1334_s6, %s964_s24 }
  0x10   : > { %s1193_s26 = scalar_lea.vmem %s1328_s0, %s1083_s23 }
  0x11   : > { %v268_v1 = vld [vmem:[%s1193_s26] sm:$0xff]  ;;  %v1218_v20 = vld [vmem:[%s1193_s26 + $0x8] sm:$0xf] }
  0x12   : > { %v966_v2 = vcombine.high %v268_v1, %v268_v1  ;;  %v969_v14 = vcombine.low %v268_v1, %v268_v1  ;;  %v345_v21 = vsel %vm343_vm4, %v1218_v20, 0 }
  0x14   : > { %v283_v3 = vsel %vm278_vm1, %v966_v2, 0  ;;  %392 = vrot.lane.b32.xlu1 %v966_v2, %s1135_s27 }
  0x15   : > { %1016 = vmatpush3.bf16.xpose.msra.mxu0 %v283_v3 }
  0x16   : > { %1021 = vmatprep.subr.bf16.mxu0 %v1133_v0 }
  0x18   : > { %390 = vrot.lane.b32.xlu1 %v969_v14, %s1135_s27 }
  0x1c   : > { %1018 = vmatmul.mubr.msk.bf16.vlgmr.msra.gmra.mrb[0].mxu0 %vm278_vm1, %v268_v1  ;;  %511 = vrot.lane.b32.xlu1 %v969_v14, %s1136_s28 }
  0x1d   : > { %1023 = vmatprep.mubr.msk.bf16.mxu0 %vm1134_vm0, %v1133_v0  ;;  %1022 = vmatpush3.bf16.msra.mxu0 %v345_v21 }
  0x1e   : > { %1027 = vmatprep.subr.bf16.mxu0 %v1133_v0 }
  0x20   : > { %631 = vrot.lane.b32.xlu1 %v966_v2, %s1137_s29 }
  0x24   : > { %629 = vrot.lane.b32.xlu1 %v969_v14, %s1137_s29 }
  0x86   : > { %v393_v22 = vpop.permute.xlu1 %392 }
  0x87   : > { %v398_v33 = vsel %vm278_vm1, %v393_v22, 0 }
  0x8a   : > { %v391_v23 = vpop.permute.xlu1 %390 }
  0x8e   : > { %v512_v25 = vpop.permute.xlu1 %511 }
  0x92   : > { %v632_v28 = vpop.permute.xlu1 %631 }
  0x93   : > { %v637_v30 = vsel %vm278_vm1, %v632_v28, 0 }
  0x96   : > { %v630_v34 = vpop.permute.xlu1 %629 }
  0xef   : > { %v319_v7 = vpop.f32.mrb[0].mxu0 }
  0xf0   : > { %v325_v8 = vmul.f32 0.17677669, %v319_v7  ;;  %v1019_v9 = vpop.f32.mrb[1].mxu0 }
  0xf1   : > { %v322_v10 = vpop.f32.mrb[2].mxu0 }
  0xf2   : > { %v1020_v11 = vpop.f32.mrb[3].mxu0  ;;  %v326_v12 = vsel %vm274_vm2, -1e+30, %v325_v8 }
  0xf3   : > { %v328_v13 = vsel %vm327_vm3, %v326_v12, -inf }
  0xf4   : > { %329 = vmax.xlane.f32.xlu0 %v328_v13 }
 0x181   : > { %v330_v15 = vpop.xlane.xlu0 %329 }
 0x182   : > { %v331_v16 = vsub.f32 %v326_v12, %v330_v15  ;;  %v971_v12 = vcombine.low %v1218_v20, %v1218_v20 }
 0x184   : > { %v332_v17 = vmul.f32 1.442695, %v331_v16 }
 0x186   : > { %1107 = vpow2.f32 %v332_v17 }
 0x190   : > { %v1108_v18 = vpop.eup %1107 }
 0x191   : > { %v334_v19 = vsel %vm327_vm3, %v1108_v18, 0.0 }
 0x192   : > { %335 = vadd.xlane.f32.xlu0 %v334_v19 }
 0x1a8   : > { %513 = vrot.lane.b32.xlu0 %v966_v2, %s1136_s28 }
 0x21f   : > { %v336_v24 = vpop.xlane.xlu0 %335 }
 0x220   : > { %1109 = vrcp.f32 %v336_v24 }
 0x223   : > { %v514_v26 = vpop.permute.xlu0 %513 }
 0x224   : > { %v519_v27 = vsel %vm278_vm1, %v514_v26, 0 }
 0x225   : > { %1040 = vmatpush3.bf16.xpose.msra.mxu1 %v519_v27 }
 0x226   : > { %1051 = vmatprep.subr.bf16.mxu1 %v1133_v0 }
 0x22a   : > { %v1110_v29 = vpop.eup %1109 }
 0x22b   : > { %v338_v31 = vmul.f32 %v1110_v29, %v1108_v18 }
 0x22c   : > { %1042 = vmatmul.mubr.msk.bf16.vlgmr.msra.gmra.mrb[0].mxu1 %vm278_vm1, %v512_v25 }
 0x22d   : > { %v339_v32 = vpack.c.bf16 %v338_v31, %v338_v31  ;;  %1052 = vmatpush3.bf16.xpose.msra.mxu1 %v637_v30  ;;  %1053 = vmatprep.mubr.msk.bf16.mxu1 %vm1134_vm0, %v1133_v0  ;;  %v1099_v31 = vld [vmem:[%s1330_s2] sm:$0xff]  }
 0x22e   : > { %1063 = vmatprep.subr.bf16.mxu1 %v1133_v0 }
 0x22f   : > { %1024 = vmatmul.mubr.msk.bf16.vlgmr.msra.gmra.mrb[4].mxu0 %vm327_vm3, %v339_v32  ;;  %v1100_v32 = vld [vmem:[%s1330_s2 + $0x8] sm:$0xff]  }
 0x230   : > { %1028 = vmatpush3.bf16.xpose.msra.mxu0 %v398_v33  ;;  %1029 = vmatprep.mubr.msk.bf16.mxu0 %vm1134_vm0, %v1133_v0  ;;  %v1101_v33 = vld [vmem:[%s1330_s2 + $0x10] sm:$0xff]  }
 0x231   : > { %1033 = vmatprep.subr.bf16.mxu0 %v1133_v0 }
 0x234   : > { %1054 = vmatmul.mubr.msk.bf16.vlgmr.msra.gmra.mrb[4].mxu1 %vm278_vm1, %v630_v34  ;;  %v1102_v34 = vld [vmem:[%s1330_s2 + $0x18] sm:$0xff]  }
 0x235   : > { %1079 = vmatprep.mubr.msk.bf16.mxu1 %vm1134_vm0, %v1133_v0  ;;  %1064 = vmatpush3.bf16.msra.mxu1 %v1099_v31 }
 0x236   : > { %1065 = vmatprep.subr.bf16.mxu1 %v1133_v0 }
 0x237   : > { %1030 = vmatmul.mubr.msk.bf16.vlgmr.msra.gmra.mrb[8].mxu0 %vm278_vm1, %v391_v23 }
 0x238   : > { %1035 = vmatprep.mubr.msk.bf16.mxu0 %vm1134_vm0, %v1133_v0 }
 0x239   : > { %1066 = vmatpush3.bf16.msra.mxu1 %v1100_v32 }
 0x23a   : > { %1067 = vmatprep.subr.bf16.mxu1 %v1133_v0 }
 0x23d   : > { %1068 = vmatpush3.bf16.msra.mxu1 %v1101_v33 }
 0x23e   : > { %1069 = vmatprep.subr.bf16.mxu1 %v1133_v0 }
 0x241   : > { %1070 = vmatpush3.bf16.msra.mxu1 %v1102_v34 }
 0x242   : > { %1071 = vmatprep.subr.bf16.mxu1 %v1133_v0 }
 0x2ff   : > { %v555_v35 = vpop.f32.mrb[0].mxu1 }
 0x300   : > { %v561_v36 = vmul.f32 0.17677669, %v555_v35  ;;  %v1043_v37 = vpop.f32.mrb[1].mxu1  ;;  %v1103_v35 = vld [vmem:[%s1330_s2 + $0x20] sm:$0xff]  }
 0x301   : > { %v558_v38 = vpop.f32.mrb[2].mxu1  ;;  %1072 = vmatpush3.bf16.msra.mxu1 %v1103_v35 }
 0x302   : > { %v381_v39 = vpop.f32.mrb[4].mxu0  ;;  %v1044_v40 = vpop.f32.mrb[3].mxu1  ;;  %v562_v41 = vsel %vm274_vm2, -1e+30, %v561_v36  ;;  %v1104_v36 = vld [vmem:[%s1330_s2 + $0x28] sm:$0xff]   ;;  %1073 = vmatprep.subr.bf16.mxu1 %v1133_v0 }
 0x303   : > { %387 = vst.msk [vmem:[#allocation2] sm:$0xff] %vm278_vm1, %v381_v39  ;;  %v1025_v42 = vpop.f32.mrb[5].mxu0  ;;  %v563_v43 = vsel %vm327_vm3, %v562_v41, -inf }
 0x304   : > { %564 = vmax.xlane.f32.xlu0 %v563_v43  ;;  %v384_v44 = vpop.f32.mrb[6].mxu0  ;;  %v1106_v42 = vld [vmem:[%s1330_s2 + $0x38] sm:$0xff]  }
 0x305   : > { %v1026_v45 = vpop.f32.mrb[7].mxu0  ;;  %1074 = vmatpush3.bf16.msra.mxu1 %v1104_v36 }
 0x306   : > { %1075 = vmatprep.subr.bf16.mxu1 %v1133_v0 }
 0x307   : > { %v673_v46 = vpop.f32.mrb[4].mxu1 }
 0x308   : > { %v1055_v47 = vpop.f32.mrb[5].mxu1  ;;  %v679_v48 = vmul.f32 0.17677669, %v673_v46 }
 0x309   : > { %v676_v49 = vpop.f32.mrb[6].mxu1 }
 0x30a   : > { %v434_v50 = vpop.f32.mrb[8].mxu0  ;;  %v1056_v51 = vpop.f32.mrb[7].mxu1  ;;  %v680_v57 = vsel %vm274_vm2, -1e+30, %v679_v48 }
 0x30b   : > { %v440_v52 = vmul.f32 0.17677669, %v434_v50  ;;  %v1031_v53 = vpop.f32.mrb[9].mxu0  ;;  %v681_v59 = vsel %vm327_vm3, %v680_v57, -inf }
 0x30c   : > { %v437_v54 = vpop.f32.mrb[10].mxu0 }
 0x30d   : > { %v1032_v55 = vpop.f32.mrb[11].mxu0  ;;  %v441_v56 = vsel %vm274_vm2, -1e+30, %v440_v52 }
 0x30e   : > { %v442_v58 = vsel %vm327_vm3, %v441_v56, -inf }
 0x30f   : > { %443 = vmax.xlane.f32.xlu1 %v442_v58 }
 0x313   : > { %682 = vmax.xlane.f32.xlu1 %v681_v59 }
 0x391   : > { %v565_v60 = vpop.xlane.xlu0 %564 }
 0x392   : > { %v566_v61 = vsub.f32 %v562_v41, %v565_v60  ;;  %v1105_v41 = vld [vmem:[%s1330_s2 + $0x30] sm:$0xff]  }
 0x393   : > { %1076 = vmatpush3.bf16.msra.mxu1 %v1105_v41 }
 0x394   : > { %v567_v62 = vmul.f32 1.442695, %v566_v61  ;;  %1077 = vmatprep.subr.bf16.mxu1 %v1133_v0 }
 0x396   : > { %1111 = vpow2.f32 %v567_v62 }
 0x397   : > { %1078 = vmatpush3.bf16.msra.mxu1 %v1106_v42 }
 0x39c   : > { %v444_v63 = vpop.xlane.xlu1 %443 }
 0x39d   : > { %v445_v1 = vsub.f32 %v441_v56, %v444_v63  ;;  %v977_v56 = vld [vmem:[%s1331_s3] ss:$0 sm:$0xff] }
 0x39f   : > { %v446_v5 = vmul.f32 1.442695, %v445_v1 }
 0x3a0   : > { %v1112_v2 = vpop.eup %1111  ;;  %v683_v3 = vpop.xlane.xlu1 %682 }
 0x3a1   : > { %v684_v4 = vsub.f32 %v680_v57, %v683_v3  ;;  %v569_v7 = vsel %vm327_vm3, %v1112_v2, 0.0 }
 0x3a2   : > { %570 = vadd.xlane.f32.xlu0 %v569_v7 }
 0x3a3   : > { %v685_v6 = vmul.f32 1.442695, %v684_v4 }
 0x3a5   : > { %1113 = vpow2.f32 %v685_v6 }
 0x3a6   : > { %1115 = vpow2.f32 %v446_v5 }
 0x3af   : > { %v1114_v8 = vpop.eup %1113 }
 0x3b0   : > { %v687_v9 = vsel %vm327_vm3, %v1114_v8, 0.0  ;;  %v1116_v10 = vpop.eup %1115 }
 0x3b1   : > { %688 = vadd.xlane.f32.xlu1 %v687_v9  ;;  %v448_v11 = vsel %vm327_vm3, %v1116_v10, 0.0  ;;  %v986_v9 = vld [vmem:[%s1332_s4] ss:$0 sm:$0xff] }
 0x3b5   : > { %449 = vadd.xlane.f32.xlu1 %v448_v11  ;;  %v987_v11 = vld [vmem:[%s1333_s5] ss:$0 sm:$0xff] }
 0x3b8   : > { %457 = vrot.lane.b32.xlu0 %v971_v12, %s1135_s27 }
 0x3c6   : > { %575 = vrot.lane.b32.xlu1 %v971_v12, %s1136_s28 }
 0x3ca   : > { %693 = vrot.lane.b32.xlu1 %v971_v12, %s1137_s29 }
 0x42f   : > { %v571_v13 = vpop.xlane.xlu0 %570 }
 0x433   : > { %v458_v14 = vpop.permute.xlu0 %457 }
 0x434   : > { %v463_v15 = vsel %vm343_vm4, %v458_v14, 0 }
 0x435   : > { %1034 = vmatpush3.bf16.msra.mxu0 %v463_v15 }
 0x436   : > { %1045 = vmatprep.subr.bf16.mxu0 %v1133_v0 }
 0x43e   : > { %v689_v16 = vpop.xlane.xlu1 %688 }
 0x442   : > { %v450_v17 = vpop.xlane.xlu1 %449 }
 0x443   : > { %1117 = vrcp.f32 %v450_v17 }
 0x444   : > { %1119 = vrcp.f32 %v571_v13 }
 0x445   : > { %1121 = vrcp.f32 %v689_v16 }
 0x446   : > { %v576_v19 = vpop.permute.xlu1 %575 }
 0x447   : > { %v581_v21 = vsel %vm343_vm4, %v576_v19, 0 }
 0x44a   : > { %v694_v25 = vpop.permute.xlu1 %693 }
 0x44b   : > { %v699_v26 = vsel %vm343_vm4, %v694_v25, 0 }
 0x44d   : > { %v1118_v18 = vpop.eup %1117 }
 0x44e   : > { %v452_v20 = vmul.f32 %v1118_v18, %v1116_v10  ;;  %v1120_v23 = vpop.eup %1119 }
 0x44f   : > { %v573_v24 = vmul.f32 %v1120_v23, %v1112_v2  ;;  %v1122_v28 = vpop.eup %1121 }
 0x450   : > { %v453_v22 = vpack.c.bf16 %v452_v20, %v452_v20  ;;  %v691_v29 = vmul.f32 %v1122_v28, %v1114_v8 }
 0x451   : > { %v574_v27 = vpack.c.bf16 %v573_v24, %v573_v24 }
 0x452   : > { %1036 = vmatmul.mubr.msk.bf16.vlgmr.msra.gmra.mrb[12].mxu0 %vm327_vm3, %v453_v22  ;;  %v692_v30 = vpack.c.bf16 %v691_v29, %v691_v29 }
 0x453   : > { %1046 = vmatpush3.bf16.msra.mxu0 %v581_v21  ;;  %1047 = vmatprep.mubr.msk.bf16.mxu0 %vm1134_vm0, %v1133_v0 }
 0x454   : > { %1057 = vmatprep.subr.bf16.mxu0 %v1133_v0 }
 0x45a   : > { %1048 = vmatmul.mubr.msk.bf16.vlgmr.msra.gmra.mrb[16].mxu0 %vm327_vm3, %v574_v27 }
 0x45b   : > { %1058 = vmatpush3.bf16.msra.mxu0 %v699_v26  ;;  %1059 = vmatprep.mubr.msk.bf16.mxu0 %vm1134_vm0, %v1133_v0 }
 0x462   : > { %1060 = vmatmul.mubr.msk.bf16.vlgmr.msra.gmra.mrb[20].mxu0 %vm327_vm3, %v692_v30 }
 0x525   : > { %v499_v37 = vpop.f32.mrb[12].mxu0 }
 0x526   : > { %506 = vrot.lane.b32.xlu0 %v499_v37, %s1137_s29  ;;  %v1037_v38 = vpop.f32.mrb[13].mxu0 }
 0x527   : > { %v502_v39 = vpop.f32.mrb[14].mxu0 }
 0x528   : > { %v1038_v40 = vpop.f32.mrb[15].mxu0 }
 0x52d   : > { %v617_v43 = vpop.f32.mrb[16].mxu0 }
 0x52e   : > { %624 = vrot.lane.b32.xlu1 %v617_v43, %s1136_s28  ;;  %v1049_v44 = vpop.f32.mrb[17].mxu0 }
 0x52f   : > { %v620_v45 = vpop.f32.mrb[18].mxu0 }
 0x530   : > { %v1050_v46 = vpop.f32.mrb[19].mxu0 }
 0x535   : > { %v735_v47 = vpop.f32.mrb[20].mxu0 }
 0x536   : > { %742 = vrot.lane.b32.xlu0 %v735_v47, %s1135_s27  ;;  %v1061_v48 = vpop.f32.mrb[21].mxu0  ;;  %s262_s27 = scalar_lea.vmem %s1329_s1, %s964_s24 }
 0x537   : > { %v738_v49 = vpop.f32.mrb[22].mxu0  ;;  %v747_v55 = vld [vmem:[%s262_s27] sm:$0xf] }
 0x538   : > { %v1062_v50 = vpop.f32.mrb[23].mxu0  ;;  %v861_v57 = vunpack.c.l.bf16 %v747_v55 }
 0x598   : > { %v507_v51 = vpop.permute.xlu0 %506 }
 0x599   : > { %510 = vst.msk [vmem:[#allocation2] sm:$0xff] %vm509_vm5, %v507_v51 }
 0x5a0   : > { %v625_v52 = vpop.permute.xlu1 %624 }
 0x5a1   : > { %628 = vst.msk [vmem:[#allocation2] sm:$0xff] %vm627_vm6, %v625_v52 }
 0x5a8   : > { %v743_v0 = vpop.permute.xlu0 %742 }
 0x5a9   : > { %746 = vst.msk [vmem:[#allocation2] sm:$0xff] %vm745_vm7, %v743_v0 }
 0x5b0   : > { %v748_v53 = vld [vmem:[#allocation2] sm:$0xff] }
 0x5b1   : > { %v749_v54 = vpack.c.bf16 %v748_v53, %v748_v53 }
 0x5b3   : > { %1080 = vmatmul.mubr.bf16.vlgmr.msra.gmra.mrb[8].mxu1 %v749_v54 }
 0x686   : > { %v855_v58 = vpop.f32.mrb[8].mxu1 }
 0x687   : > { %v856_v59 = vadd.f32 %v977_v56, %v855_v58  ;;  %v1081_v60 = vpop.f32.mrb[9].mxu1 }
 0x688   : > { %v858_v61 = vpop.f32.mrb[10].mxu1 }
 0x689   : > { %v1082_v62 = vpop.f32.mrb[11].mxu1  ;;  %v862_v63 = vadd.f32 %v861_v57, %v856_v59 }
 0x68b   : > { %863 = vadd.xlane.f32.xlu1 %v862_v63 }
 0x718   : > { %v864_v1 = vpop.xlane.xlu1 %863 }
 0x719   : > { %v866_v2 = vmul.f32 0.0078125, %v864_v1 }
 0x71b   : > { %v867_v3 = vsub.f32 %v862_v63, %v866_v2 }
 0x71d   : > { %v868_v4 = vmul.f32 %v867_v3, %v867_v3 }
 0x71f   : > { %869 = vadd.xlane.f32.xlu0 %v868_v4 }
 0x7ac   : > { %v870_v7 = vpop.xlane.xlu0 %869 }
 0x7ad   : > { %v871_v5 = vmul.f32 0.0078125, %v870_v7 }
 0x7af   : > { %v872_v6 = vadd.f32 1e-05, %v871_v5 }
 0x7b1   : > { %1123 = vrsqrt.f32 %v872_v6 }
 0x7bb   : > { %v1124_v8 = vpop.eup %1123 }
 0x7bc   : > { %v874_v10 = vmul.f32 %v1124_v8, %v867_v3 }
 0x7be   : > { %v882_v12 = vmul.f32 %v986_v9, %v874_v10 }
 0x7c0   : > { %v890_v13 = vadd.f32 %v987_v11, %v882_v12 }
 0x7c2   : > { %v891_v14 = vpack.c.bf16 %v890_v13, %v890_v13 }
 0x7c4   : > { %892 = vst [vmem:[%s266_s11] sm:$0xf] %v891_v14 }
 0x7c5 PF: > { %s16_s21 = sadd.s32 1, %s1131_s21  }
 0x7c6   : > { %p13_p4 = scmp.ge.s32.totalorder %s16_s21, 4  }
 0x7c8   :  { %15 = sbr.rel (!%p13_p4) target bundleno = 1 (0x1), region = 77 }

// kernel: seq2seq_transformer_forward.35
= control target key start
LH: loop header
LB: loop body
LE: loop exit
PB: predicated region body
PF: predicated region fallthrough
CT: control target
= control target key end

     0   :  { %s1228_s24 = smov 0   ;;  %s1366_s0 = inlined_call_operand.vmem [shape: bf16[2,8,128], index: 0, kind: input, shape index: {}]   ;;  %s1367_s1 = inlined_call_operand.vmem [shape: bf16[2,8,256], index: 1, kind: input, shape index: {}]   ;;  %s1368_s2 = inlined_call_operand.vmem [shape: bf16[2,8,128], index: 2, kind: input, shape index: {}]   ;;  %s1369_s3 = inlined_call_operand.vmem [shape: bf16[128,128], index: 3, kind: input, shape index: {}]   ;;  %s1370_s4 = inlined_call_operand.vmem [shape: f32[1,128], index: 4, kind: input, shape index: {}]   ;;  %s1371_s5 = inlined_call_operand.vmem [shape: f32[1,128], index: 5, kind: input, shape index: {}]   ;;  %s1372_s6 = inlined_call_operand.vmem [shape: f32[1,128], index: 6, kind: input, shape index: {}]   ;;  %s1373_s7 = inlined_call_operand.vmem [shape: bf16[2,8,128], index: 7, kind: output, shape index: {}]  }
   0x1 LB: > { %s1005_s25 = sadd.s32 4294967295, %s1181_s24   ;;  %p1009_p0 = scmp.ge.s32.totalorder %s1181_s24, 1  ;;  %s1181_s24 = sphi %s1228_s24, %s17_s24  }
   0x2   : > { %p255_p1 = scmp.lt.s32.totalorder %s1181_s24, 3 }
   0x4   : > { %p256_p2 = pnand %p1009_p0, %p255_p1 }
   0x5   : > { %p294_p3 = scmp.lt.s32.totalorder (!%p256_p2), %s1005_s25, 1  ;;  %v1183_v0 = vmov (!%p256_p2), 0.0   ;;  %vm1184_vm0 = vmmov (!%p256_p2), 0   ;;  %vm314_vm1 = vcmask (!%p256_p2), 261120   ;;  %vm362_vm2 = vcmask (!%p256_p2), 64512   ;;  %s1185_s11 = smov (!%p256_p2), 96  }
   0x6   : > { %259 = sbr.rel (%p256_p2) target bundleno = 1984 (0x7c0), region = 48  ;;  %1065 = vmatprep.subr.bf16.mxu0 (!%p256_p2), %v1183_v0  ;;  %1067 = vmatprep.mubr.msk.bf16.mxu0 (!%p256_p2), %vm1184_vm0, %v1183_v0  ;;  %s1186_s12 = smov (!%p256_p2), 64   ;;  %vm381_vm3 = vcmask (!%p256_p2), 1043456   ;;  %vm546_vm4 = vcmask (!%p256_p2), 523520   ;;  %vm663_vm5 = vcmask (!%p256_p2), 785920   ;;  %vm780_vm6 = vcmask (!%p256_p2), 1048320  }
   0x7   : > { %1089 = vmatprep.subr.bf16.mxu1 (!%p256_p2), %v1183_v0  ;;  %1091 = vmatprep.mubr.msk.bf16.mxu1 (!%p256_p2), %vm1184_vm0, %v1183_v0  ;;  %s1187_s13 = smov (!%p256_p2), 32  }
   0xd   : > { %s1375_s25 = smov (!%p294_p3, %s1005_s25), 1 }
   0xe   : > { %s1039_s26 = sshll.u32 %s1375_s25, 3  ;;  %s1245_s30 = sshll.u32 %s1375_s25, 2 }
   0xf   : > { %s302_s29 = scalar_lea.vmem %s1367_s1, %s1039_s26  ;;  %s297_s10 = scalar_lea.vmem %s1366_s0, %s1245_s30 }
  0x10   : > { %v313_v1 = vld [vmem:[%s302_s29] sm:$0xff]  ;;  %s310_s20 = scalar_lea.vmem %s1373_s7, %s1245_s30 }
  0x11   : > { %v319_v2 = vsel %vm314_vm1, %v313_v1, 0  ;;  %v312_v3 = vld [vmem:[%s297_s10] sm:$0xf]  ;;  %v1019_v10 = vcombine.low %v313_v1, %v313_v1  ;;  %v1263_v17 = vcombine.high %v313_v1, %v313_v1 }
  0x12   : > { %1066 = vmatpush3.bf16.xpose.msra.mxu0 %v319_v2  ;;  %v1018_v11 = vcombine.low %v312_v3, %v312_v3 }
  0x13   : > { %1071 = vmatprep.subr.bf16.mxu0 %v1183_v0  ;;  %433 = vrot.lane.b32.xlu1 %v1019_v10, %s1185_s11  ;;  %v383_v18 = vsel %vm381_vm3, %v1263_v17, 0 }
  0x17   : > { %429 = vrot.lane.b32.xlu1 %v1018_v11, %s1185_s11 }
  0x19   : > { %1068 = vmatmul.mubr.msk.bf16.vlgmr.msra.gmra.mrb[0].mxu0 %vm314_vm1, %v312_v3 }
  0x1a   : > { %1073 = vmatprep.mubr.msk.bf16.mxu0 %vm1184_vm0, %v1183_v0  ;;  %1072 = vmatpush3.bf16.msra.mxu0 %v383_v18 }
  0x1b   : > { %548 = vrot.lane.b32.xlu1 %v1018_v11, %s1186_s12  ;;  %1077 = vmatprep.subr.bf16.mxu0 %v1183_v0 }
  0x1f   : > { %667 = vrot.lane.b32.xlu1 %v1019_v10, %s1187_s13 }
  0x23   : > { %665 = vrot.lane.b32.xlu1 %v1018_v11, %s1187_s13 }
  0x85   : > { %v434_v19 = vpop.permute.xlu1 %433 }
  0x86   : > { %v439_v30 = vsel %vm314_vm1, %v434_v19, 0 }
  0x89   : > { %v430_v20 = vpop.permute.xlu1 %429 }
  0x8d   : > { %v549_v22 = vpop.permute.xlu1 %548 }
  0x91   : > { %v668_v25 = vpop.permute.xlu1 %667 }
  0x92   : > { %v673_v27 = vsel %vm314_vm1, %v668_v25, 0  ;;  %v1150_v25 = vld [vmem:[%s1369_s3 + $0x8] sm:$0xff]  }
  0x95   : > { %v666_v31 = vpop.permute.xlu1 %665 }
  0xec   : > { %v355_v4 = vpop.f32.mrb[0].mxu0 }
  0xed   : > { %v361_v5 = vmul.f32 0.17677669, %v355_v4  ;;  %v1069_v6 = vpop.f32.mrb[1].mxu0 }
  0xee   : > { %v358_v7 = vpop.f32.mrb[2].mxu0 }
  0xef   : > { %v1070_v8 = vpop.f32.mrb[3].mxu0  ;;  %v363_v9 = vsel %vm362_vm2, %v361_v5, -inf }
  0xf0   : > { %364 = vmax.xlane.f32.xlu0 %v363_v9 }
 0x17d   : > { %v365_v12 = vpop.xlane.xlu0 %364 }
 0x17e   : > { %v366_v13 = vsub.f32 %v361_v5, %v365_v12 }
 0x180   : > { %v367_v14 = vmul.f32 1.442695, %v366_v13 }
 0x182   : > { %1157 = vpow2.f32 %v367_v14 }
 0x18c   : > { %v1158_v15 = vpop.eup %1157 }
 0x18d   : > { %v369_v16 = vsel %vm362_vm2, %v1158_v15, 0.0 }
 0x18e   : > { %370 = vadd.xlane.f32.xlu0 %v369_v16 }
 0x1a4   : > { %550 = vrot.lane.b32.xlu0 %v1019_v10, %s1186_s12 }
 0x21b   : > { %v371_v21 = vpop.xlane.xlu0 %370 }
 0x21c   : > { %1159 = vrcp.f32 %v371_v21 }
 0x21f   : > { %v551_v23 = vpop.permute.xlu0 %550 }
 0x220   : > { %v556_v24 = vsel %vm314_vm1, %v551_v23, 0 }
 0x221   : > { %1090 = vmatpush3.bf16.xpose.msra.mxu1 %v556_v24  ;;  %v1149_v24 = vld [vmem:[%s1369_s3] sm:$0xff]  }
 0x222   : > { %1101 = vmatprep.subr.bf16.mxu1 %v1183_v0 }
 0x226   : > { %v1160_v26 = vpop.eup %1159 }
 0x227   : > { %v373_v28 = vmul.f32 %v1160_v26, %v1158_v15  ;;  %v1151_v26 = vld [vmem:[%s1369_s3 + $0x10] sm:$0xff]  }
 0x228   : > { %1092 = vmatmul.mubr.msk.bf16.vlgmr.msra.gmra.mrb[0].mxu1 %vm314_vm1, %v549_v22 }
 0x229   : > { %v374_v29 = vpack.c.bf16 %v373_v28, %v373_v28  ;;  %1102 = vmatpush3.bf16.xpose.msra.mxu1 %v673_v27  ;;  %1103 = vmatprep.mubr.msk.bf16.mxu1 %vm1184_vm0, %v1183_v0  ;;  %v1152_v27 = vld [vmem:[%s1369_s3 + $0x18] sm:$0xff]   ;;  %v1153_v28 = vld [vmem:[%s1369_s3 + $0x20] sm:$0xff]  }
 0x22a   : > { %1113 = vmatprep.subr.bf16.mxu1 %v1183_v0 }
 0x22b   : > { %1074 = vmatmul.mubr.msk.bf16.vlgmr.msra.gmra.mrb[4].mxu0 %vm362_vm2, %v374_v29  ;;  %v1154_v29 = vld [vmem:[%s1369_s3 + $0x28] sm:$0xff]  }
 0x22c   : > { %1078 = vmatpush3.bf16.xpose.msra.mxu0 %v439_v30  ;;  %1079 = vmatprep.mubr.msk.bf16.mxu0 %vm1184_vm0, %v1183_v0 }
 0x22d   : > { %1083 = vmatprep.subr.bf16.mxu0 %v1183_v0 }
 0x230   : > { %1104 = vmatmul.mubr.msk.bf16.vlgmr.msra.gmra.mrb[4].mxu1 %vm314_vm1, %v666_v31 }
 0x231   : > { %1129 = vmatprep.mubr.msk.bf16.mxu1 %vm1184_vm0, %v1183_v0  ;;  %1114 = vmatpush3.bf16.msra.mxu1 %v1149_v24 }
 0x232   : > { %1115 = vmatprep.subr.bf16.mxu1 %v1183_v0 }
 0x233   : > { %1080 = vmatmul.mubr.msk.bf16.vlgmr.msra.gmra.mrb[8].mxu0 %vm314_vm1, %v430_v20 }
 0x234   : > { %1085 = vmatprep.mubr.msk.bf16.mxu0 %vm1184_vm0, %v1183_v0 }
 0x235   : > { %1116 = vmatpush3.bf16.msra.mxu1 %v1150_v25 }
 0x236   : > { %1117 = vmatprep.subr.bf16.mxu1 %v1183_v0 }
 0x239   : > { %1118 = vmatpush3.bf16.msra.mxu1 %v1151_v26 }
 0x23a   : > { %1119 = vmatprep.subr.bf16.mxu1 %v1183_v0 }
 0x23d   : > { %1120 = vmatpush3.bf16.msra.mxu1 %v1152_v27 }
 0x23e   : > { %1121 = vmatprep.subr.bf16.mxu1 %v1183_v0 }
 0x241   : > { %1122 = vmatpush3.bf16.msra.mxu1 %v1153_v28 }
 0x242   : > { %1123 = vmatprep.subr.bf16.mxu1 %v1183_v0 }
 0x245   : > { %1124 = vmatpush3.bf16.msra.mxu1 %v1154_v29 }
 0x246   : > { %1125 = vmatprep.subr.bf16.mxu1 %v1183_v0 }
 0x2fb   : > { %v592_v32 = vpop.f32.mrb[0].mxu1 }
 0x2fc   : > { %v598_v33 = vmul.f32 0.17677669, %v592_v32  ;;  %v1093_v34 = vpop.f32.mrb[1].mxu1 }
 0x2fd   : > { %v595_v35 = vpop.f32.mrb[2].mxu1  ;;  %v1155_v34 = vld [vmem:[%s1369_s3 + $0x30] sm:$0xff]  }
 0x2fe   : > { %v419_v36 = vpop.f32.mrb[4].mxu0  ;;  %v1094_v37 = vpop.f32.mrb[3].mxu1  ;;  %v599_v38 = vsel %vm362_vm2, %v598_v33, -inf  ;;  %1126 = vmatpush3.bf16.msra.mxu1 %v1155_v34  ;;  %v1156_v35 = vld [vmem:[%s1369_s3 + $0x38] sm:$0xff]  }
 0x2ff   : > { %425 = vst.msk [vmem:[#allocation2] sm:$0xff] %vm314_vm1, %v419_v36  ;;  %600 = vmax.xlane.f32.xlu0 %v599_v38  ;;  %v1075_v39 = vpop.f32.mrb[5].mxu0  ;;  %1127 = vmatprep.subr.bf16.mxu1 %v1183_v0 }
 0x300   : > { %v422_v40 = vpop.f32.mrb[6].mxu0 }
 0x301   : > { %v1076_v41 = vpop.f32.mrb[7].mxu0 }
 0x302   : > { %1128 = vmatpush3.bf16.msra.mxu1 %v1156_v35 }
 0x303   : > { %v709_v42 = vpop.f32.mrb[4].mxu1 }
 0x304   : > { %v1105_v43 = vpop.f32.mrb[5].mxu1  ;;  %v715_v49 = vmul.f32 0.17677669, %v709_v42 }
 0x305   : > { %v712_v44 = vpop.f32.mrb[6].mxu1 }
 0x306   : > { %v475_v45 = vpop.f32.mrb[8].mxu0  ;;  %v1106_v46 = vpop.f32.mrb[7].mxu1  ;;  %v716_v53 = vsel %vm362_vm2, %v715_v49, -inf }
 0x307   : > { %v481_v47 = vmul.f32 0.17677669, %v475_v45  ;;  %v1081_v48 = vpop.f32.mrb[9].mxu0 }
 0x308   : > { %v478_v50 = vpop.f32.mrb[10].mxu0 }
 0x309   : > { %v1082_v51 = vpop.f32.mrb[11].mxu0  ;;  %v482_v52 = vsel %vm362_vm2, %v481_v47, -inf }
 0x30a   : > { %483 = vmax.xlane.f32.xlu1 %v482_v52 }
 0x30e   : > { %717 = vmax.xlane.f32.xlu1 %v716_v53 }
 0x38c   : > { %v601_v54 = vpop.xlane.xlu0 %600 }
 0x38d   : > { %v602_v55 = vsub.f32 %v598_v33, %v601_v54 }
 0x38f   : > { %v603_v56 = vmul.f32 1.442695, %v602_v55 }
 0x391   : > { %1161 = vpow2.f32 %v603_v56 }
 0x397   : > { %v484_v57 = vpop.xlane.xlu1 %483 }
 0x398   : > { %v485_v58 = vsub.f32 %v481_v47, %v484_v57 }
 0x39a   : > { %v486_v63 = vmul.f32 1.442695, %v485_v58 }
 0x39b   : > { %v1162_v59 = vpop.eup %1161  ;;  %v718_v60 = vpop.xlane.xlu1 %717 }
 0x39c   : > { %v719_v61 = vsub.f32 %v715_v49, %v718_v60  ;;  %v605_v62 = vsel %vm362_vm2, %v1162_v59, 0.0  ;;  %v1026_v49 = vld [vmem:[%s1370_s4] ss:$0 sm:$0xff] }
 0x39d   : > { %606 = vadd.xlane.f32.xlu0 %v605_v62 }
 0x39e   : > { %v720_v1 = vmul.f32 1.442695, %v719_v61 }
 0x3a0   : > { %1163 = vpow2.f32 %v720_v1 }
 0x3a1   : > { %1165 = vpow2.f32 %v486_v63 }
 0x3aa   : > { %v1164_v2 = vpop.eup %1163 }
 0x3ab   : > { %v722_v3 = vsel %vm362_vm2, %v1164_v2, 0.0  ;;  %v1166_v4 = vpop.eup %1165 }
 0x3ac   : > { %723 = vadd.xlane.f32.xlu1 %v722_v3  ;;  %v488_v5 = vsel %vm362_vm2, %v1166_v4, 0.0 }
 0x3b0   : > { %489 = vadd.xlane.f32.xlu1 %v488_v5 }
 0x3b3   : > { %494 = vrot.lane.b32.xlu0 %v1263_v17, %s1185_s11 }
 0x3c1   : > { %611 = vrot.lane.b32.xlu1 %v1263_v17, %s1186_s12 }
 0x3c5   : > { %728 = vrot.lane.b32.xlu1 %v1263_v17, %s1187_s13 }
 0x42a   : > { %v607_v6 = vpop.xlane.xlu0 %606 }
 0x42e   : > { %v495_v7 = vpop.permute.xlu0 %494 }
 0x42f   : > { %v500_v8 = vsel %vm381_vm3, %v495_v7, 0 }
 0x430   : > { %1084 = vmatpush3.bf16.msra.mxu0 %v500_v8 }
 0x431   : > { %1095 = vmatprep.subr.bf16.mxu0 %v1183_v0 }
 0x439   : > { %v724_v9 = vpop.xlane.xlu1 %723 }
 0x43d   : > { %v490_v10 = vpop.xlane.xlu1 %489 }
 0x43e   : > { %1167 = vrcp.f32 %v490_v10 }
 0x43f   : > { %1169 = vrcp.f32 %v607_v6 }
 0x440   : > { %1171 = vrcp.f32 %v724_v9 }
 0x441   : > { %v612_v12 = vpop.permute.xlu1 %611 }
 0x442   : > { %v617_v14 = vsel %vm381_vm3, %v612_v12, 0 }
 0x445   : > { %v729_v18 = vpop.permute.xlu1 %728 }
 0x446   : > { %v734_v19 = vsel %vm381_vm3, %v729_v18, 0 }
 0x448   : > { %v1168_v11 = vpop.eup %1167 }
 0x449   : > { %v492_v13 = vmul.f32 %v1168_v11, %v1166_v4  ;;  %v1170_v16 = vpop.eup %1169  ;;  %v1036_v4 = vld [vmem:[%s1372_s6] ss:$0 sm:$0xff] }
 0x44a   : > { %v609_v17 = vmul.f32 %v1170_v16, %v1162_v59  ;;  %v1172_v21 = vpop.eup %1171 }
 0x44b   : > { %v493_v15 = vpack.c.bf16 %v492_v13, %v492_v13  ;;  %v726_v22 = vmul.f32 %v1172_v21, %v1164_v2  ;;  %v1035_v2 = vld [vmem:[%s1371_s5] ss:$0 sm:$0xff] }
 0x44c   : > { %v610_v20 = vpack.c.bf16 %v609_v17, %v609_v17 }
 0x44d   : > { %1086 = vmatmul.mubr.msk.bf16.vlgmr.msra.gmra.mrb[12].mxu0 %vm362_vm2, %v493_v15  ;;  %v727_v23 = vpack.c.bf16 %v726_v22, %v726_v22 }
 0x44e   : > { %1096 = vmatpush3.bf16.msra.mxu0 %v617_v14  ;;  %1097 = vmatprep.mubr.msk.bf16.mxu0 %vm1184_vm0, %v1183_v0 }
 0x44f   : > { %1107 = vmatprep.subr.bf16.mxu0 %v1183_v0 }
 0x455   : > { %1098 = vmatmul.mubr.msk.bf16.vlgmr.msra.gmra.mrb[16].mxu0 %vm362_vm2, %v610_v20 }
 0x456   : > { %1108 = vmatpush3.bf16.msra.mxu0 %v734_v19  ;;  %1109 = vmatprep.mubr.msk.bf16.mxu0 %vm1184_vm0, %v1183_v0 }
 0x45d   : > { %1110 = vmatmul.mubr.msk.bf16.vlgmr.msra.gmra.mrb[20].mxu0 %vm362_vm2, %v727_v23 }
 0x520   : > { %v536_v30 = vpop.f32.mrb[12].mxu0 }
 0x521   : > { %543 = vrot.lane.b32.xlu0 %v536_v30, %s1187_s13  ;;  %v1087_v31 = vpop.f32.mrb[13].mxu0 }
 0x522   : > { %v539_v32 = vpop.f32.mrb[14].mxu0 }
 0x523   : > { %v1088_v33 = vpop.f32.mrb[15].mxu0 }
 0x528   : > { %v653_v36 = vpop.f32.mrb[16].mxu0 }
 0x529   : > { %660 = vrot.lane.b32.xlu1 %v653_v36, %s1186_s12  ;;  %v1099_v37 = vpop.f32.mrb[17].mxu0 }
 0x52a   : > { %v656_v38 = vpop.f32.mrb[18].mxu0 }
 0x52b   : > { %v1100_v39 = vpop.f32.mrb[19].mxu0 }
 0x530   : > { %v770_v40 = vpop.f32.mrb[20].mxu0 }
 0x531   : > { %777 = vrot.lane.b32.xlu0 %v770_v40, %s1185_s11  ;;  %v1111_v41 = vpop.f32.mrb[21].mxu0  ;;  %s306_s11 = scalar_lea.vmem %s1368_s2, %s1245_s30 }
 0x532   : > { %v773_v42 = vpop.f32.mrb[22].mxu0  ;;  %v782_v48 = vld [vmem:[%s306_s11] sm:$0xf] }
 0x533   : > { %v1112_v43 = vpop.f32.mrb[23].mxu0  ;;  %v896_v50 = vunpack.c.l.bf16 %v782_v48 }
 0x593   : > { %v544_v44 = vpop.permute.xlu0 %543 }
 0x594   : > { %547 = vst.msk [vmem:[#allocation2] sm:$0xff] %vm546_vm4, %v544_v44 }
 0x59b   : > { %v661_v45 = vpop.permute.xlu1 %660 }
 0x59c   : > { %664 = vst.msk [vmem:[#allocation2] sm:$0xff] %vm663_vm5, %v661_v45 }
 0x5a3   : > { %v778_v0 = vpop.permute.xlu0 %777 }
 0x5a4   : > { %781 = vst.msk [vmem:[#allocation2] sm:$0xff] %vm780_vm6, %v778_v0 }
 0x5ab   : > { %v783_v46 = vld [vmem:[#allocation2] sm:$0xff] }
 0x5ac   : > { %v784_v47 = vpack.c.bf16 %v783_v46, %v783_v46 }
 0x5ae   : > { %1130 = vmatmul.mubr.bf16.vlgmr.msra.gmra.mrb[8].mxu1 %v784_v47 }
 0x681   : > { %v890_v51 = vpop.f32.mrb[8].mxu1 }
 0x682   : > { %v891_v52 = vadd.f32 %v1026_v49, %v890_v51  ;;  %v1131_v53 = vpop.f32.mrb[9].mxu1 }
 0x683   : > { %v893_v54 = vpop.f32.mrb[10].mxu1 }
 0x684   : > { %v1132_v55 = vpop.f32.mrb[11].mxu1  ;;  %v897_v56 = vadd.f32 %v896_v50, %v891_v52 }
 0x686   : > { %898 = vadd.xlane.f32.xlu1 %v897_v56 }
 0x713   : > { %v899_v57 = vpop.xlane.xlu1 %898 }
 0x714   : > { %v901_v58 = vmul.f32 0.0078125, %v899_v57 }
 0x716   : > { %v902_v59 = vsub.f32 %v897_v56, %v901_v58 }
 0x718   : > { %v903_v60 = vmul.f32 %v902_v59, %v902_v59 }
 0x71a   : > { %904 = vadd.xlane.f32.xlu0 %v903_v60 }
 0x7a7   : > { %v905_v61 = vpop.xlane.xlu0 %904 }
 0x7a8   : > { %v906_v62 = vmul.f32 0.0078125, %v905_v61 }
 0x7aa   : > { %v907_v63 = vadd.f32 1e-05, %v906_v62 }
 0x7ac   : > { %1173 = vrsqrt.f32 %v907_v63 }
 0x7b6   : > { %v1174_v1 = vpop.eup %1173 }
 0x7b7   : > { %v909_v3 = vmul.f32 %v1174_v1, %v902_v59 }
 0x7b9   : > { %v917_v5 = vmul.f32 %v1035_v2, %v909_v3 }
 0x7bb   : > { %v925_v6 = vadd.f32 %v1036_v4, %v917_v5 }
 0x7bd   : > { %v926_v7 = vpack.c.bf16 %v925_v6, %v925_v6 }
 0x7bf   : > { %927 = vst [vmem:[%s310_s20] sm:$0xf] %v926_v7 }
 0x7c0 PF: > { %s17_s24 = sadd.s32 1, %s1181_s24  }
 0x7c1   : > { %p14_p4 = scmp.ge.s32.totalorder %s17_s24, 4  }
 0x7c3   :  { %16 = sbr.rel (!%p14_p4) target bundleno = 1 (0x1), region = 84 }

// kernel: seq2seq_transformer_forward.43
= control target key start
LH: loop header
LB: loop body
LE: loop exit
PB: predicated region body
PF: predicated region fallthrough
CT: control target
= control target key end

     0   :  { %s527_s18 = smov 0   ;;  %s581_s0 = inlined_call_operand.vmem [shape: bf16[16,128], index: 0, kind: input, shape index: {}]   ;;  %s582_s1 = inlined_call_operand.vmem [shape: f32[1,128], index: 1, kind: input, shape index: {}]   ;;  %s583_s2 = inlined_call_operand.vmem [shape: f32[1,128], index: 2, kind: input, shape index: {}]   ;;  %s584_s3 = inlined_call_operand.vmem [shape: bf16[128,4], index: 3, kind: input, shape index: {}]   ;;  %s585_s4 = inlined_call_operand.vmem [shape: f32[1,4], index: 4, kind: input, shape index: {}]   ;;  %s586_s5 = inlined_call_operand.vmem [shape: f32[16,4], index: 5, kind: output, shape index: {}]  }
   0x1 LB: > { %s418_s19 = sadd.s32 4294967295, %s493_s18   ;;  %p422_p0 = scmp.ge.s32.totalorder %s493_s18, 1  ;;  %s493_s18 = sphi %s527_s18, %s15_s18  }
   0x2   : > { %p186_p1 = scmp.lt.s32.totalorder %s493_s18, 3 }
   0x4   : > { %p187_p2 = pnand %p422_p0, %p186_p1 }
   0x5   : > { %p212_p3 = scmp.lt.s32.totalorder (!%p187_p2), %s418_s19, 1  ;;  %v477_v2 = vld [vmem:[%s584_s3] sm:$0xff] (!%p187_p2)   ;;  %v495_v3 = vmov (!%p187_p2), 0.0   ;;  %v478_v4 = vld [vmem:[%s584_s3 + $0x8] sm:$0xff] (!%p187_p2)   ;;  %v479_v9 = vld [vmem:[%s584_s3 + $0x10] sm:$0xff] (!%p187_p2)   ;;  %vm496_vm0 = vmmov (!%p187_p2), 0  }
   0x6   : > { %190 = sbr.rel (%p187_p2) target bundleno = 547 (0x223), region = 40  ;;  %447 = vmatprep.subr.bf16.mxu0 (!%p187_p2), %v495_v3  ;;  %v480_v10 = vld [vmem:[%s584_s3 + $0x18] sm:$0xff] (!%p187_p2)   ;;  %v481_v11 = vld [vmem:[%s584_s3 + $0x20] sm:$0xff] (!%p187_p2)   ;;  %463 = vmatprep.mubr.msk.bf16.mxu0 (!%p187_p2), %vm496_vm0, %v495_v3  ;;  %v482_v12 = vld [vmem:[%s584_s3 + $0x28] sm:$0xff] (!%p187_p2)   ;;  %vm363_vm1 = vcmask (!%p187_p2), 31744  }
   0x7   : > { %448 = vmatpush3.bf16.msra.mxu0 (!%p187_p2), %v477_v2  ;;  %v483_v13 = vld [vmem:[%s584_s3 + $0x30] sm:$0xff] (!%p187_p2)   ;;  %v484_v14 = vld [vmem:[%s584_s3 + $0x38] sm:$0xff] (!%p187_p2)   ;;  %v425_v19 = vld [vmem:[%s582_s1] ss:$0 sm:$0xff] (!%p187_p2) }
   0x8   : > { %449 = vmatprep.subr.bf16.mxu0 (!%p187_p2), %v495_v3  ;;  %v426_v21 = vld [vmem:[%s583_s2] ss:$0 sm:$0xff] (!%p187_p2) }
   0x9   : > { %v427_v25 = vld [vmem:[%s585_s4] ss:$0 sm:$0xff] (!%p187_p2) }
   0xb   : > { %450 = vmatpush3.bf16.msra.mxu0 (!%p187_p2), %v478_v4 }
   0xc   : > { %451 = vmatprep.subr.bf16.mxu0 (!%p187_p2), %v495_v3 }
   0xd   : > { %s588_s19 = smov (!%p212_p3, %s418_s19), 1 }
   0xe   : > { %s423_s20 = sshll.u32 %s588_s19, 2  ;;  %s424_s21 = sshll.u32 %s588_s19, 3 }
   0xf   : > { %s215_s23 = scalar_lea.vmem %s581_s0, %s423_s20  ;;  %452 = vmatpush3.bf16.msra.mxu0 %v479_v9  ;;  %s219_s26 = scalar_lea.vmem %s586_s5, %s424_s21 }
  0x10   : > { %v221_v0 = vld [vmem:[%s215_s23] sm:$0xf]  ;;  %453 = vmatprep.subr.bf16.mxu0 %v495_v3 }
  0x11   : > { %v222_v1 = vunpack.c.l.bf16 %v221_v0 }
  0x13   : > { %223 = vadd.xlane.f32.xlu0 %v222_v1  ;;  %454 = vmatpush3.bf16.msra.mxu0 %v480_v10 }
  0x14   : > { %455 = vmatprep.subr.bf16.mxu0 %v495_v3 }
  0x17   : > { %456 = vmatpush3.bf16.msra.mxu0 %v481_v11 }
  0x18   : > { %457 = vmatprep.subr.bf16.mxu0 %v495_v3 }
  0x1b   : > { %458 = vmatpush3.bf16.msra.mxu0 %v482_v12 }
  0x1c   : > { %459 = vmatprep.subr.bf16.mxu0 %v495_v3 }
  0x1f   : > { %460 = vmatpush3.bf16.msra.mxu0 %v483_v13 }
  0x20   : > { %461 = vmatprep.subr.bf16.mxu0 %v495_v3 }
  0x23   : > { %462 = vmatpush3.bf16.msra.mxu0 %v484_v14 }
  0xa0   : > { %v224_v5 = vpop.xlane.xlu0 %223 }
  0xa1   : > { %v226_v6 = vmul.f32 0.0078125, %v224_v5 }
  0xa3   : > { %v227_v7 = vsub.f32 %v222_v1, %v226_v6 }
  0xa5   : > { %v228_v8 = vmul.f32 %v227_v7, %v227_v7 }
  0xa7   : > { %229 = vadd.xlane.f32.xlu0 %v228_v8 }
 0x134   : > { %v230_v15 = vpop.xlane.xlu0 %229 }
 0x135   : > { %v231_v16 = vmul.f32 0.0078125, %v230_v15 }
 0x137   : > { %v232_v17 = vadd.f32 1e-05, %v231_v16 }
 0x139   : > { %485 = vrsqrt.f32 %v232_v17 }
 0x143   : > { %v486_v18 = vpop.eup %485 }
 0x144   : > { %v234_v20 = vmul.f32 %v486_v18, %v227_v7 }
 0x146   : > { %v242_v22 = vmul.f32 %v425_v19, %v234_v20 }
 0x148   : > { %v250_v23 = vadd.f32 %v426_v21, %v242_v22 }
 0x14a   : > { %v251_v24 = vpack.c.bf16 %v250_v23, %v250_v23 }
 0x14c   : > { %464 = vmatmul.mubr.bf16.vlgmr.msra.gmra.mrb[0].mxu0 %v251_v24 }
 0x21f   : > { %v357_v26 = vpop.f32.mrb[0].mxu0 }
 0x220   : > { %v358_v27 = vadd.f32 %v427_v25, %v357_v26  ;;  %v465_v28 = vpop.f32.mrb[1].mxu0 }
 0x221   : > { %v360_v29 = vpop.f32.mrb[2].mxu0 }
 0x222   : > { %364 = vst.msk [vmem:[%s219_s26] sm:$0xff] %vm363_vm1, %v358_v27  ;;  %v466_v30 = vpop.f32.mrb[3].mxu0 }
 0x223 PF: > { %s15_s18 = sadd.s32 1, %s493_s18  }
 0x224   : > { %p12_p4 = scmp.ge.s32.totalorder %s15_s18, 4  }
 0x226   :  { %14 = sbr.rel (!%p12_p4) target bundleno = 1 (0x1), region = 70 }

</bundles_post_ra>
